<compile_context>
chip_gen: v6e
topology: v6e:2x2x1
jax: 0.10.0
libtpu: 0.0.40
codegen_flags: <defaults>
</compile_context>

<pallas_src>
import jax
import jax.numpy as jnp
import numpy as np
from jax import lax
from jax.experimental import pallas as pl
from jax.experimental.pallas import tpu as pltpu

KH = KW = 3  # fixed 3x3 depthwise kernel


def dwconv3x3_kernel(x_ref, w_ref, o_ref):
    # x_ref: (1, H, W, Cb)  un-padded NHWC input block (channels on lanes)
    # w_ref: (KH*KW, Cb)    per-channel weights, row k = kh*KW + kw
    # o_ref: (1, H, W, Cb)  output block
    _, H, W, Cb = o_ref.shape

    wv = w_ref[...].astype(jnp.float32)                  # (9, Cb), tiny
    wtap = [wv[k:k + 1, :] for k in range(KH * KW)]      # hoisted (1, Cb) taps

    zrow = jnp.zeros((1, Cb), jnp.float32)

    def shift_right(t):   # out[w] = t[w-1], zero at w = 0
        return jnp.concatenate([zrow, t[:W - 1, :]], axis=0)

    def shift_left(t):    # out[w] = t[w+1], zero at w = W-1
        return jnp.concatenate([t[1:, :], zrow], axis=0)

    # Static unroll over the output rows; padding=(1,1) is realized by simply
    # skipping out-of-range input rows / zero-filling shifted columns.
    for h in range(H):
        khs = [kh for kh in range(KH) if 0 <= h + kh - 1 < H]
        rows = {kh: x_ref[0, h + kh - 1, :, :].astype(jnp.float32)
                for kh in khs}

        # t[kw] = sum_kh rows[kh] * w[kh, kw]   (aligned lane-dense FMAs)
        t = []
        for kw in range(KW):
            acc = None
            for kh in khs:
                term = rows[kh] * wtap[kh * KW + kw]
                acc = term if acc is None else acc + term
            t.append(acc)

        # out[h, w] = t1[w] + t0[w-1] + t2[w+1]
        out_row = t[1] + shift_right(t[0]) + shift_left(t[2])
        o_ref[0, h, :, :] = out_row.astype(o_ref.dtype)


def depthwise_conv3x3(x_nchw, w_oihw, *, c_blk=384):
    """x_nchw: (B, C, H, W); w_oihw: (C, 1, 3, 3).  Matches PyTorch
    Conv2d(C, C, 3, stride=1, padding=1, groups=C, bias=False)."""
    B, C, H, W = x_nchw.shape
    assert w_oihw.shape == (C, 1, KH, KW)

    # Lane-axis block: a multiple of 128, or the full channel dim if small.
    if C <= c_blk:
        c_blk = C
    n_c = pl.cdiv(C, c_blk)

    # NCHW -> NHWC (one transpose each way is forced by the NCHW interface;
    # there is no separate padding pass any more).
    x_nhwc = jnp.transpose(x_nchw, (0, 2, 3, 1))
    # (C, 1, KH, KW) -> (KH*KW, C)
    w_flat = jnp.transpose(w_oihw[:, 0, :, :], (1, 2, 0)).reshape(KH * KW, C)

    out_nhwc = pl.pallas_call(
        dwconv3x3_kernel,
        out_shape=jax.ShapeDtypeStruct((B, H, W, C), x_nchw.dtype),
        grid=(B, n_c),
        in_specs=[
            pl.BlockSpec((1, H, W, c_blk), lambda b, c: (b, 0, 0, c)),
            pl.BlockSpec((KH * KW, c_blk), lambda b, c: (0, c)),
        ],
        out_specs=pl.BlockSpec((1, H, W, c_blk), lambda b, c: (b, 0, 0, c)),
        compiler_params=pltpu.CompilerParams(
            dimension_semantics=("parallel", "parallel")),
    )(x_nhwc, w_flat)

    # NHWC -> NCHW
    return jnp.transpose(out_nhwc, (0, 3, 1, 2))


def reference_conv(x_nchw, w_oihw):
    C = x_nchw.shape[1]
    return lax.conv_general_dilated(
        x_nchw, w_oihw,
        window_strides=(1, 1),
        padding=((1, 1), (1, 1)),
        dimension_numbers=("NCHW", "OIHW", "NCHW"),
        feature_group_count=C,
    )


if __name__ == "__main__":
    key = jax.random.PRNGKey(0)
    kx, kw = jax.random.split(key)

    B, C, H, W = 1, 1056, 14, 14  # shapes implied by the module's forward
    x = jax.random.normal(kx, (B, C, H, W), dtype=jnp.float32)
    # Depthwise weights, PyTorch Conv2d layout (C, 1, 3, 3).
    w = jax.random.normal(kw, (C, 1, KH, KW), dtype=jnp.float32) * (1.0 / 3.0)

    out = jax.block_until_ready(depthwise_conv3x3(x, w))
    ref = jax.block_until_ready(reference_conv(x, w))
    np.testing.assert_allclose(np.asarray(out), np.asarray(ref),
                               rtol=1e-5, atol=1e-5)

    print("KERNEL_OK")
</pallas_src>

<mosaic_0001>
module attributes {stable_mosaic.version = 11 : i64} {
  func.func @dwconv3x3_kernel(%arg0: i32, %arg1: i32, %arg2: memref<1x14x14x384xf32, #tpu.memory_space<vmem>>, %arg3: memref<9x384xf32, #tpu.memory_space<vmem>>, %arg4: memref<1x14x14x384xf32, #tpu.memory_space<vmem>>) attributes {dimension_semantics = [#tpu.dimension_semantics<parallel>, #tpu.dimension_semantics<parallel>], iteration_bounds = array<i64: 1, 3>, scalar_prefetch = 0 : i64, scratch_operands = 0 : i64, tpu.core_type = #tpu.core_type<tc>, window_params = [{transform_indices = @transform_0, window_bounds = array<i64: 1, 14, 14, 384>}, {transform_indices = @transform_1, window_bounds = array<i64: 9, 384>}, {transform_indices = @transform_2, window_bounds = array<i64: 1, 14, 14, 384>}]} {
    %c0 = arith.constant 0 : index
    %c0_0 = arith.constant 0 : index
    %0 = vector.load %arg3[%c0, %c0_0] : memref<9x384xf32, #tpu.memory_space<vmem>>, vector<9x384xf32>
    %1 = vector.extract_strided_slice %0 {offsets = [0, 0], sizes = [1, 384], strides = [1, 1]} : vector<9x384xf32> to vector<1x384xf32>
    %2 = vector.extract_strided_slice %0 {offsets = [1, 0], sizes = [1, 384], strides = [1, 1]} : vector<9x384xf32> to vector<1x384xf32>
    %3 = vector.extract_strided_slice %0 {offsets = [2, 0], sizes = [1, 384], strides = [1, 1]} : vector<9x384xf32> to vector<1x384xf32>
    %4 = vector.extract_strided_slice %0 {offsets = [3, 0], sizes = [1, 384], strides = [1, 1]} : vector<9x384xf32> to vector<1x384xf32>
    %5 = vector.extract_strided_slice %0 {offsets = [4, 0], sizes = [1, 384], strides = [1, 1]} : vector<9x384xf32> to vector<1x384xf32>
    %6 = vector.extract_strided_slice %0 {offsets = [5, 0], sizes = [1, 384], strides = [1, 1]} : vector<9x384xf32> to vector<1x384xf32>
    %7 = vector.extract_strided_slice %0 {offsets = [6, 0], sizes = [1, 384], strides = [1, 1]} : vector<9x384xf32> to vector<1x384xf32>
    %8 = vector.extract_strided_slice %0 {offsets = [7, 0], sizes = [1, 384], strides = [1, 1]} : vector<9x384xf32> to vector<1x384xf32>
    %9 = vector.extract_strided_slice %0 {offsets = [8, 0], sizes = [1, 384], strides = [1, 1]} : vector<9x384xf32> to vector<1x384xf32>
    %cst = arith.constant 0.000000e+00 : f32
    %10 = vector.broadcast %cst : f32 to vector<1x384xf32>
    %c0_1 = arith.constant 0 : index
    %c0_2 = arith.constant 0 : index
    %c0_3 = arith.constant 0 : index
    %c0_4 = arith.constant 0 : index
    %11 = vector.load %arg2[%c0_1, %c0_2, %c0_3, %c0_4] : memref<1x14x14x384xf32, #tpu.memory_space<vmem>>, vector<1x1x14x384xf32>
    %12 = vector.shape_cast %11 : vector<1x1x14x384xf32> to vector<14x384xf32>
    %c0_5 = arith.constant 0 : index
    %c1 = arith.constant 1 : index
    %c0_6 = arith.constant 0 : index
    %c0_7 = arith.constant 0 : index
    %13 = vector.load %arg2[%c0_5, %c1, %c0_6, %c0_7] : memref<1x14x14x384xf32, #tpu.memory_space<vmem>>, vector<1x1x14x384xf32>
    %14 = vector.shape_cast %13 : vector<1x1x14x384xf32> to vector<14x384xf32>
    %15 = vector.broadcast %4 : vector<1x384xf32> to vector<14x384xf32>
    %16 = arith.mulf %12, %15 : vector<14x384xf32>
    %17 = vector.broadcast %7 : vector<1x384xf32> to vector<14x384xf32>
    %18 = arith.mulf %14, %17 : vector<14x384xf32>
    %19 = arith.addf %16, %18 : vector<14x384xf32>
    %20 = vector.broadcast %5 : vector<1x384xf32> to vector<14x384xf32>
    %21 = arith.mulf %12, %20 : vector<14x384xf32>
    %22 = vector.broadcast %8 : vector<1x384xf32> to vector<14x384xf32>
    %23 = arith.mulf %14, %22 : vector<14x384xf32>
    %24 = arith.addf %21, %23 : vector<14x384xf32>
    %25 = vector.broadcast %6 : vector<1x384xf32> to vector<14x384xf32>
    %26 = arith.mulf %12, %25 : vector<14x384xf32>
    %27 = vector.broadcast %9 : vector<1x384xf32> to vector<14x384xf32>
    %28 = arith.mulf %14, %27 : vector<14x384xf32>
    %29 = arith.addf %26, %28 : vector<14x384xf32>
    %30 = vector.extract_strided_slice %19 {offsets = [0, 0], sizes = [13, 384], strides = [1, 1]} : vector<14x384xf32> to vector<13x384xf32>
    %31 = tpu.concatenate %10, %30 in 0 : vector<1x384xf32>, vector<13x384xf32> -> vector<14x384xf32>
    %32 = arith.addf %24, %31 : vector<14x384xf32>
    %33 = vector.extract_strided_slice %29 {offsets = [1, 0], sizes = [13, 384], strides = [1, 1]} : vector<14x384xf32> to vector<13x384xf32>
    %34 = tpu.concatenate %33, %10 in 0 : vector<13x384xf32>, vector<1x384xf32> -> vector<14x384xf32>
    %35 = arith.addf %32, %34 : vector<14x384xf32>
    %c0_8 = arith.constant 0 : index
    %c0_9 = arith.constant 0 : index
    %c0_10 = arith.constant 0 : index
    %c0_11 = arith.constant 0 : index
    %36 = vector.load %arg4[%c0_8, %c0_9, %c0_10, %c0_11] : memref<1x14x14x384xf32, #tpu.memory_space<vmem>>, vector<1x1x14x384xf32>
    %37 = vector.shape_cast %36 : vector<1x1x14x384xf32> to vector<14x384xf32>
    %38 = vector.shape_cast %35 : vector<14x384xf32> to vector<1x1x14x384xf32>
    tpu.vector_store %arg4[%c0_8, %c0_9, %c0_10, %c0_11], %38 {strides = array<i32>} : memref<1x14x14x384xf32, #tpu.memory_space<vmem>>, vector<1x1x14x384xf32>,
    %c0_12 = arith.constant 0 : index
    %c0_13 = arith.constant 0 : index
    %c0_14 = arith.constant 0 : index
    %c0_15 = arith.constant 0 : index
    %39 = vector.load %arg2[%c0_12, %c0_13, %c0_14, %c0_15] : memref<1x14x14x384xf32, #tpu.memory_space<vmem>>, vector<1x1x14x384xf32>
    %40 = vector.shape_cast %39 : vector<1x1x14x384xf32> to vector<14x384xf32>
    %c0_16 = arith.constant 0 : index
    %c1_17 = arith.constant 1 : index
    %c0_18 = arith.constant 0 : index
    %c0_19 = arith.constant 0 : index
    %41 = vector.load %arg2[%c0_16, %c1_17, %c0_18, %c0_19] : memref<1x14x14x384xf32, #tpu.memory_space<vmem>>, vector<1x1x14x384xf32>
    %42 = vector.shape_cast %41 : vector<1x1x14x384xf32> to vector<14x384xf32>
    %c0_20 = arith.constant 0 : index
    %c2 = arith.constant 2 : index
    %c0_21 = arith.constant 0 : index
    %c0_22 = arith.constant 0 : index
    %43 = vector.load %arg2[%c0_20, %c2, %c0_21, %c0_22] : memref<1x14x14x384xf32, #tpu.memory_space<vmem>>, vector<1x1x14x384xf32>
    %44 = vector.shape_cast %43 : vector<1x1x14x384xf32> to vector<14x384xf32>
    %45 = vector.broadcast %1 : vector<1x384xf32> to vector<14x384xf32>
    %46 = arith.mulf %40, %45 : vector<14x384xf32>
    %47 = vector.broadcast %4 : vector<1x384xf32> to vector<14x384xf32>
    %48 = arith.mulf %42, %47 : vector<14x384xf32>
    %49 = arith.addf %46, %48 : vector<14x384xf32>
    %50 = vector.broadcast %7 : vector<1x384xf32> to vector<14x384xf32>
    %51 = arith.mulf %44, %50 : vector<14x384xf32>
    %52 = arith.addf %49, %51 : vector<14x384xf32>
    %53 = vector.broadcast %2 : vector<1x384xf32> to vector<14x384xf32>
    %54 = arith.mulf %40, %53 : vector<14x384xf32>
    %55 = vector.broadcast %5 : vector<1x384xf32> to vector<14x384xf32>
    %56 = arith.mulf %42, %55 : vector<14x384xf32>
    %57 = arith.addf %54, %56 : vector<14x384xf32>
    %58 = vector.broadcast %8 : vector<1x384xf32> to vector<14x384xf32>
    %59 = arith.mulf %44, %58 : vector<14x384xf32>
    %60 = arith.addf %57, %59 : vector<14x384xf32>
    %61 = vector.broadcast %3 : vector<1x384xf32> to vector<14x384xf32>
    %62 = arith.mulf %40, %61 : vector<14x384xf32>
    %63 = vector.broadcast %6 : vector<1x384xf32> to vector<14x384xf32>
    %64 = arith.mulf %42, %63 : vector<14x384xf32>
    %65 = arith.addf %62, %64 : vector<14x384xf32>
    %66 = vector.broadcast %9 : vector<1x384xf32> to vector<14x384xf32>
    %67 = arith.mulf %44, %66 : vector<14x384xf32>
    %68 = arith.addf %65, %67 : vector<14x384xf32>
    %69 = vector.extract_strided_slice %52 {offsets = [0, 0], sizes = [13, 384], strides = [1, 1]} : vector<14x384xf32> to vector<13x384xf32>
    %70 = tpu.concatenate %10, %69 in 0 : vector<1x384xf32>, vector<13x384xf32> -> vector<14x384xf32>
    %71 = arith.addf %60, %70 : vector<14x384xf32>
    %72 = vector.extract_strided_slice %68 {offsets = [1, 0], sizes = [13, 384], strides = [1, 1]} : vector<14x384xf32> to vector<13x384xf32>
    %73 = tpu.concatenate %72, %10 in 0 : vector<13x384xf32>, vector<1x384xf32> -> vector<14x384xf32>
    %74 = arith.addf %71, %73 : vector<14x384xf32>
    %c0_23 = arith.constant 0 : index
    %c1_24 = arith.constant 1 : index
    %c0_25 = arith.constant 0 : index
    %c0_26 = arith.constant 0 : index
    %75 = vector.load %arg4[%c0_23, %c1_24, %c0_25, %c0_26] : memref<1x14x14x384xf32, #tpu.memory_space<vmem>>, vector<1x1x14x384xf32>
    %76 = vector.shape_cast %75 : vector<1x1x14x384xf32> to vector<14x384xf32>
    %77 = vector.shape_cast %74 : vector<14x384xf32> to vector<1x1x14x384xf32>
    tpu.vector_store %arg4[%c0_23, %c1_24, %c0_25, %c0_26], %77 {strides = array<i32>} : memref<1x14x14x384xf32, #tpu.memory_space<vmem>>, vector<1x1x14x384xf32>,
    %c0_27 = arith.constant 0 : index
    %c1_28 = arith.constant 1 : index
    %c0_29 = arith.constant 0 : index
    %c0_30 = arith.constant 0 : index
    %78 = vector.load %arg2[%c0_27, %c1_28, %c0_29, %c0_30] : memref<1x14x14x384xf32, #tpu.memory_space<vmem>>, vector<1x1x14x384xf32>
    %79 = vector.shape_cast %78 : vector<1x1x14x384xf32> to vector<14x384xf32>
    %c0_31 = arith.constant 0 : index
    %c2_32 = arith.constant 2 : index
    %c0_33 = arith.constant 0 : index
    %c0_34 = arith.constant 0 : index
    %80 = vector.load %arg2[%c0_31, %c2_32, %c0_33, %c0_34] : memref<1x14x14x384xf32, #tpu.memory_space<vmem>>, vector<1x1x14x384xf32>
    %81 = vector.shape_cast %80 : vector<1x1x14x384xf32> to vector<14x384xf32>
    %c0_35 = arith.constant 0 : index
    %c3 = arith.constant 3 : index
    %c0_36 = arith.constant 0 : index
    %c0_37 = arith.constant 0 : index
    %82 = vector.load %arg2[%c0_35, %c3, %c0_36, %c0_37] : memref<1x14x14x384xf32, #tpu.memory_space<vmem>>, vector<1x1x14x384xf32>
    %83 = vector.shape_cast %82 : vector<1x1x14x384xf32> to vector<14x384xf32>
    %84 = vector.broadcast %1 : vector<1x384xf32> to vector<14x384xf32>
    %85 = arith.mulf %79, %84 : vector<14x384xf32>
    %86 = vector.broadcast %4 : vector<1x384xf32> to vector<14x384xf32>
    %87 = arith.mulf %81, %86 : vector<14x384xf32>
    %88 = arith.addf %85, %87 : vector<14x384xf32>
    %89 = vector.broadcast %7 : vector<1x384xf32> to vector<14x384xf32>
    %90 = arith.mulf %83, %89 : vector<14x384xf32>
    %91 = arith.addf %88, %90 : vector<14x384xf32>
    %92 = vector.broadcast %2 : vector<1x384xf32> to vector<14x384xf32>
    %93 = arith.mulf %79, %92 : vector<14x384xf32>
    %94 = vector.broadcast %5 : vector<1x384xf32> to vector<14x384xf32>
    %95 = arith.mulf %81, %94 : vector<14x384xf32>
    %96 = arith.addf %93, %95 : vector<14x384xf32>
    %97 = vector.broadcast %8 : vector<1x384xf32> to vector<14x384xf32>
    %98 = arith.mulf %83, %97 : vector<14x384xf32>
    %99 = arith.addf %96, %98 : vector<14x384xf32>
    %100 = vector.broadcast %3 : vector<1x384xf32> to vector<14x384xf32>
    %101 = arith.mulf %79, %100 : vector<14x384xf32>
    %102 = vector.broadcast %6 : vector<1x384xf32> to vector<14x384xf32>
    %103 = arith.mulf %81, %102 : vector<14x384xf32>
    %104 = arith.addf %101, %103 : vector<14x384xf32>
    %105 = vector.broadcast %9 : vector<1x384xf32> to vector<14x384xf32>
    %106 = arith.mulf %83, %105 : vector<14x384xf32>
    %107 = arith.addf %104, %106 : vector<14x384xf32>
    %108 = vector.extract_strided_slice %91 {offsets = [0, 0], sizes = [13, 384], strides = [1, 1]} : vector<14x384xf32> to vector<13x384xf32>
    %109 = tpu.concatenate %10, %108 in 0 : vector<1x384xf32>, vector<13x384xf32> -> vector<14x384xf32>
    %110 = arith.addf %99, %109 : vector<14x384xf32>
    %111 = vector.extract_strided_slice %107 {offsets = [1, 0], sizes = [13, 384], strides = [1, 1]} : vector<14x384xf32> to vector<13x384xf32>
    %112 = tpu.concatenate %111, %10 in 0 : vector<13x384xf32>, vector<1x384xf32> -> vector<14x384xf32>
    %113 = arith.addf %110, %112 : vector<14x384xf32>
    %c0_38 = arith.constant 0 : index
    %c2_39 = arith.constant 2 : index
    %c0_40 = arith.constant 0 : index
    %c0_41 = arith.constant 0 : index
    %114 = vector.load %arg4[%c0_38, %c2_39, %c0_40, %c0_41] : memref<1x14x14x384xf32, #tpu.memory_space<vmem>>, vector<1x1x14x384xf32>
    %115 = vector.shape_cast %114 : vector<1x1x14x384xf32> to vector<14x384xf32>
    %116 = vector.shape_cast %113 : vector<14x384xf32> to vector<1x1x14x384xf32>
    tpu.vector_store %arg4[%c0_38, %c2_39, %c0_40, %c0_41], %116 {strides = array<i32>} : memref<1x14x14x384xf32, #tpu.memory_space<vmem>>, vector<1x1x14x384xf32>,
    %c0_42 = arith.constant 0 : index
    %c2_43 = arith.constant 2 : index
    %c0_44 = arith.constant 0 : index
    %c0_45 = arith.constant 0 : index
    %117 = vector.load %arg2[%c0_42, %c2_43, %c0_44, %c0_45] : memref<1x14x14x384xf32, #tpu.memory_space<vmem>>, vector<1x1x14x384xf32>
    %118 = vector.shape_cast %117 : vector<1x1x14x384xf32> to vector<14x384xf32>
    %c0_46 = arith.constant 0 : index
    %c3_47 = arith.constant 3 : index
    %c0_48 = arith.constant 0 : index
    %c0_49 = arith.constant 0 : index
    %119 = vector.load %arg2[%c0_46, %c3_47, %c0_48, %c0_49] : memref<1x14x14x384xf32, #tpu.memory_space<vmem>>, vector<1x1x14x384xf32>
    %120 = vector.shape_cast %119 : vector<1x1x14x384xf32> to vector<14x384xf32>
    %c0_50 = arith.constant 0 : index
    %c4 = arith.constant 4 : index
    %c0_51 = arith.constant 0 : index
    %c0_52 = arith.constant 0 : index
    %121 = vector.load %arg2[%c0_50, %c4, %c0_51, %c0_52] : memref<1x14x14x384xf32, #tpu.memory_space<vmem>>, vector<1x1x14x384xf32>
    %122 = vector.shape_cast %121 : vector<1x1x14x384xf32> to vector<14x384xf32>
    %123 = vector.broadcast %1 : vector<1x384xf32> to vector<14x384xf32>
    %124 = arith.mulf %118, %123 : vector<14x384xf32>
    %125 = vector.broadcast %4 : vector<1x384xf32> to vector<14x384xf32>
    %126 = arith.mulf %120, %125 : vector<14x384xf32>
    %127 = arith.addf %124, %126 : vector<14x384xf32>
    %128 = vector.broadcast %7 : vector<1x384xf32> to vector<14x384xf32>
    %129 = arith.mulf %122, %128 : vector<14x384xf32>
    %130 = arith.addf %127, %129 : vector<14x384xf32>
    %131 = vector.broadcast %2 : vector<1x384xf32> to vector<14x384xf32>
    %132 = arith.mulf %118, %131 : vector<14x384xf32>
    %133 = vector.broadcast %5 : vector<1x384xf32> to vector<14x384xf32>
    %134 = arith.mulf %120, %133 : vector<14x384xf32>
    %135 = arith.addf %132, %134 : vector<14x384xf32>
    %136 = vector.broadcast %8 : vector<1x384xf32> to vector<14x384xf32>
    %137 = arith.mulf %122, %136 : vector<14x384xf32>
    %138 = arith.addf %135, %137 : vector<14x384xf32>
    %139 = vector.broadcast %3 : vector<1x384xf32> to vector<14x384xf32>
    %140 = arith.mulf %118, %139 : vector<14x384xf32>
    %141 = vector.broadcast %6 : vector<1x384xf32> to vector<14x384xf32>
    %142 = arith.mulf %120, %141 : vector<14x384xf32>
    %143 = arith.addf %140, %142 : vector<14x384xf32>
    %144 = vector.broadcast %9 : vector<1x384xf32> to vector<14x384xf32>
    %145 = arith.mulf %122, %144 : vector<14x384xf32>
    %146 = arith.addf %143, %145 : vector<14x384xf32>
    %147 = vector.extract_strided_slice %130 {offsets = [0, 0], sizes = [13, 384], strides = [1, 1]} : vector<14x384xf32> to vector<13x384xf32>
    %148 = tpu.concatenate %10, %147 in 0 : vector<1x384xf32>, vector<13x384xf32> -> vector<14x384xf32>
    %149 = arith.addf %138, %148 : vector<14x384xf32>
    %150 = vector.extract_strided_slice %146 {offsets = [1, 0], sizes = [13, 384], strides = [1, 1]} : vector<14x384xf32> to vector<13x384xf32>
    %151 = tpu.concatenate %150, %10 in 0 : vector<13x384xf32>, vector<1x384xf32> -> vector<14x384xf32>
    %152 = arith.addf %149, %151 : vector<14x384xf32>
    %c0_53 = arith.constant 0 : index
    %c3_54 = arith.constant 3 : index
    %c0_55 = arith.constant 0 : index
    %c0_56 = arith.constant 0 : index
    %153 = vector.load %arg4[%c0_53, %c3_54, %c0_55, %c0_56] : memref<1x14x14x384xf32, #tpu.memory_space<vmem>>, vector<1x1x14x384xf32>
    %154 = vector.shape_cast %153 : vector<1x1x14x384xf32> to vector<14x384xf32>
    %155 = vector.shape_cast %152 : vector<14x384xf32> to vector<1x1x14x384xf32>
    tpu.vector_store %arg4[%c0_53, %c3_54, %c0_55, %c0_56], %155 {strides = array<i32>} : memref<1x14x14x384xf32, #tpu.memory_space<vmem>>, vector<1x1x14x384xf32>,
    %c0_57 = arith.constant 0 : index
    %c3_58 = arith.constant 3 : index
    %c0_59 = arith.constant 0 : index
    %c0_60 = arith.constant 0 : index
    %156 = vector.load %arg2[%c0_57, %c3_58, %c0_59, %c0_60] : memref<1x14x14x384xf32, #tpu.memory_space<vmem>>, vector<1x1x14x384xf32>
    %157 = vector.shape_cast %156 : vector<1x1x14x384xf32> to vector<14x384xf32>
    %c0_61 = arith.constant 0 : index
    %c4_62 = arith.constant 4 : index
    %c0_63 = arith.constant 0 : index
    %c0_64 = arith.constant 0 : index
    %158 = vector.load %arg2[%c0_61, %c4_62, %c0_63, %c0_64] : memref<1x14x14x384xf32, #tpu.memory_space<vmem>>, vector<1x1x14x384xf32>
    %159 = vector.shape_cast %158 : vector<1x1x14x384xf32> to vector<14x384xf32>
    %c0_65 = arith.constant 0 : index
    %c5 = arith.constant 5 : index
    %c0_66 = arith.constant 0 : index
    %c0_67 = arith.constant 0 : index
    %160 = vector.load %arg2[%c0_65, %c5, %c0_66, %c0_67] : memref<1x14x14x384xf32, #tpu.memory_space<vmem>>, vector<1x1x14x384xf32>
    %161 = vector.shape_cast %160 : vector<1x1x14x384xf32> to vector<14x384xf32>
    %162 = vector.broadcast %1 : vector<1x384xf32> to vector<14x384xf32>
    %163 = arith.mulf %157, %162 : vector<14x384xf32>
    %164 = vector.broadcast %4 : vector<1x384xf32> to vector<14x384xf32>
    %165 = arith.mulf %159, %164 : vector<14x384xf32>
    %166 = arith.addf %163, %165 : vector<14x384xf32>
    %167 = vector.broadcast %7 : vector<1x384xf32> to vector<14x384xf32>
    %168 = arith.mulf %161, %167 : vector<14x384xf32>
    %169 = arith.addf %166, %168 : vector<14x384xf32>
    %170 = vector.broadcast %2 : vector<1x384xf32> to vector<14x384xf32>
    %171 = arith.mulf %157, %170 : vector<14x384xf32>
    %172 = vector.broadcast %5 : vector<1x384xf32> to vector<14x384xf32>
    %173 = arith.mulf %159, %172 : vector<14x384xf32>
    %174 = arith.addf %171, %173 : vector<14x384xf32>
    %175 = vector.broadcast %8 : vector<1x384xf32> to vector<14x384xf32>
    %176 = arith.mulf %161, %175 : vector<14x384xf32>
    %177 = arith.addf %174, %176 : vector<14x384xf32>
    %178 = vector.broadcast %3 : vector<1x384xf32> to vector<14x384xf32>
    %179 = arith.mulf %157, %178 : vector<14x384xf32>
    %180 = vector.broadcast %6 : vector<1x384xf32> to vector<14x384xf32>
    %181 = arith.mulf %159, %180 : vector<14x384xf32>
    %182 = arith.addf %179, %181 : vector<14x384xf32>
    %183 = vector.broadcast %9 : vector<1x384xf32> to vector<14x384xf32>
    %184 = arith.mulf %161, %183 : vector<14x384xf32>
    %185 = arith.addf %182, %184 : vector<14x384xf32>
    %186 = vector.extract_strided_slice %169 {offsets = [0, 0], sizes = [13, 384], strides = [1, 1]} : vector<14x384xf32> to vector<13x384xf32>
    %187 = tpu.concatenate %10, %186 in 0 : vector<1x384xf32>, vector<13x384xf32> -> vector<14x384xf32>
    %188 = arith.addf %177, %187 : vector<14x384xf32>
    %189 = vector.extract_strided_slice %185 {offsets = [1, 0], sizes = [13, 384], strides = [1, 1]} : vector<14x384xf32> to vector<13x384xf32>
    %190 = tpu.concatenate %189, %10 in 0 : vector<13x384xf32>, vector<1x384xf32> -> vector<14x384xf32>
    %191 = arith.addf %188, %190 : vector<14x384xf32>
    %c0_68 = arith.constant 0 : index
    %c4_69 = arith.constant 4 : index
    %c0_70 = arith.constant 0 : index
    %c0_71 = arith.constant 0 : index
    %192 = vector.load %arg4[%c0_68, %c4_69, %c0_70, %c0_71] : memref<1x14x14x384xf32, #tpu.memory_space<vmem>>, vector<1x1x14x384xf32>
    %193 = vector.shape_cast %192 : vector<1x1x14x384xf32> to vector<14x384xf32>
    %194 = vector.shape_cast %191 : vector<14x384xf32> to vector<1x1x14x384xf32>
    tpu.vector_store %arg4[%c0_68, %c4_69, %c0_70, %c0_71], %194 {strides = array<i32>} : memref<1x14x14x384xf32, #tpu.memory_space<vmem>>, vector<1x1x14x384xf32>,
    %c0_72 = arith.constant 0 : index
    %c4_73 = arith.constant 4 : index
    %c0_74 = arith.constant 0 : index
    %c0_75 = arith.constant 0 : index
    %195 = vector.load %arg2[%c0_72, %c4_73, %c0_74, %c0_75] : memref<1x14x14x384xf32, #tpu.memory_space<vmem>>, vector<1x1x14x384xf32>
    %196 = vector.shape_cast %195 : vector<1x1x14x384xf32> to vector<14x384xf32>
    %c0_76 = arith.constant 0 : index
    %c5_77 = arith.constant 5 : index
    %c0_78 = arith.constant 0 : index
    %c0_79 = arith.constant 0 : index
    %197 = vector.load %arg2[%c0_76, %c5_77, %c0_78, %c0_79] : memref<1x14x14x384xf32, #tpu.memory_space<vmem>>, vector<1x1x14x384xf32>
    %198 = vector.shape_cast %197 : vector<1x1x14x384xf32> to vector<14x384xf32>
    %c0_80 = arith.constant 0 : index
    %c6 = arith.constant 6 : index
    %c0_81 = arith.constant 0 : index
    %c0_82 = arith.constant 0 : index
    %199 = vector.load %arg2[%c0_80, %c6, %c0_81, %c0_82] : memref<1x14x14x384xf32, #tpu.memory_space<vmem>>, vector<1x1x14x384xf32>
    %200 = vector.shape_cast %199 : vector<1x1x14x384xf32> to vector<14x384xf32>
    %201 = vector.broadcast %1 : vector<1x384xf32> to vector<14x384xf32>
    %202 = arith.mulf %196, %201 : vector<14x384xf32>
    %203 = vector.broadcast %4 : vector<1x384xf32> to vector<14x384xf32>
    %204 = arith.mulf %198, %203 : vector<14x384xf32>
    %205 = arith.addf %202, %204 : vector<14x384xf32>
    %206 = vector.broadcast %7 : vector<1x384xf32> to vector<14x384xf32>
    %207 = arith.mulf %200, %206 : vector<14x384xf32>
    %208 = arith.addf %205, %207 : vector<14x384xf32>
    %209 = vector.broadcast %2 : vector<1x384xf32> to vector<14x384xf32>
    %210 = arith.mulf %196, %209 : vector<14x384xf32>
    %211 = vector.broadcast %5 : vector<1x384xf32> to vector<14x384xf32>
    %212 = arith.mulf %198, %211 : vector<14x384xf32>
    %213 = arith.addf %210, %212 : vector<14x384xf32>
    %214 = vector.broadcast %8 : vector<1x384xf32> to vector<14x384xf32>
    %215 = arith.mulf %200, %214 : vector<14x384xf32>
    %216 = arith.addf %213, %215 : vector<14x384xf32>
    %217 = vector.broadcast %3 : vector<1x384xf32> to vector<14x384xf32>
    %218 = arith.mulf %196, %217 : vector<14x384xf32>
    %219 = vector.broadcast %6 : vector<1x384xf32> to vector<14x384xf32>
    %220 = arith.mulf %198, %219 : vector<14x384xf32>
    %221 = arith.addf %218, %220 : vector<14x384xf32>
    %222 = vector.broadcast %9 : vector<1x384xf32> to vector<14x384xf32>
    %223 = arith.mulf %200, %222 : vector<14x384xf32>
    %224 = arith.addf %221, %223 : vector<14x384xf32>
    %225 = vector.extract_strided_slice %208 {offsets = [0, 0], sizes = [13, 384], strides = [1, 1]} : vector<14x384xf32> to vector<13x384xf32>
    %226 = tpu.concatenate %10, %225 in 0 : vector<1x384xf32>, vector<13x384xf32> -> vector<14x384xf32>
    %227 = arith.addf %216, %226 : vector<14x384xf32>
    %228 = vector.extract_strided_slice %224 {offsets = [1, 0], sizes = [13, 384], strides = [1, 1]} : vector<14x384xf32> to vector<13x384xf32>
    %229 = tpu.concatenate %228, %10 in 0 : vector<13x384xf32>, vector<1x384xf32> -> vector<14x384xf32>
    %230 = arith.addf %227, %229 : vector<14x384xf32>
    %c0_83 = arith.constant 0 : index
    %c5_84 = arith.constant 5 : index
    %c0_85 = arith.constant 0 : index
    %c0_86 = arith.constant 0 : index
    %231 = vector.load %arg4[%c0_83, %c5_84, %c0_85, %c0_86] : memref<1x14x14x384xf32, #tpu.memory_space<vmem>>, vector<1x1x14x384xf32>
    %232 = vector.shape_cast %231 : vector<1x1x14x384xf32> to vector<14x384xf32>
    %233 = vector.shape_cast %230 : vector<14x384xf32> to vector<1x1x14x384xf32>
    tpu.vector_store %arg4[%c0_83, %c5_84, %c0_85, %c0_86], %233 {strides = array<i32>} : memref<1x14x14x384xf32, #tpu.memory_space<vmem>>, vector<1x1x14x384xf32>,
    %c0_87 = arith.constant 0 : index
    %c5_88 = arith.constant 5 : index
    %c0_89 = arith.constant 0 : index
    %c0_90 = arith.constant 0 : index
    %234 = vector.load %arg2[%c0_87, %c5_88, %c0_89, %c0_90] : memref<1x14x14x384xf32, #tpu.memory_space<vmem>>, vector<1x1x14x384xf32>
    %235 = vector.shape_cast %234 : vector<1x1x14x384xf32> to vector<14x384xf32>
    %c0_91 = arith.constant 0 : index
    %c6_92 = arith.constant 6 : index
    %c0_93 = arith.constant 0 : index
    %c0_94 = arith.constant 0 : index
    %236 = vector.load %arg2[%c0_91, %c6_92, %c0_93, %c0_94] : memref<1x14x14x384xf32, #tpu.memory_space<vmem>>, vector<1x1x14x384xf32>
    %237 = vector.shape_cast %236 : vector<1x1x14x384xf32> to vector<14x384xf32>
    %c0_95 = arith.constant 0 : index
    %c7 = arith.constant 7 : index
    %c0_96 = arith.constant 0 : index
    %c0_97 = arith.constant 0 : index
    %238 = vector.load %arg2[%c0_95, %c7, %c0_96, %c0_97] : memref<1x14x14x384xf32, #tpu.memory_space<vmem>>, vector<1x1x14x384xf32>
    %239 = vector.shape_cast %238 : vector<1x1x14x384xf32> to vector<14x384xf32>
    %240 = vector.broadcast %1 : vector<1x384xf32> to vector<14x384xf32>
    %241 = arith.mulf %235, %240 : vector<14x384xf32>
    %242 = vector.broadcast %4 : vector<1x384xf32> to vector<14x384xf32>
    %243 = arith.mulf %237, %242 : vector<14x384xf32>
    %244 = arith.addf %241, %243 : vector<14x384xf32>
    %245 = vector.broadcast %7 : vector<1x384xf32> to vector<14x384xf32>
    %246 = arith.mulf %239, %245 : vector<14x384xf32>
    %247 = arith.addf %244, %246 : vector<14x384xf32>
    %248 = vector.broadcast %2 : vector<1x384xf32> to vector<14x384xf32>
    %249 = arith.mulf %235, %248 : vector<14x384xf32>
    %250 = vector.broadcast %5 : vector<1x384xf32> to vector<14x384xf32>
    %251 = arith.mulf %237, %250 : vector<14x384xf32>
    %252 = arith.addf %249, %251 : vector<14x384xf32>
    %253 = vector.broadcast %8 : vector<1x384xf32> to vector<14x384xf32>
    %254 = arith.mulf %239, %253 : vector<14x384xf32>
    %255 = arith.addf %252, %254 : vector<14x384xf32>
    %256 = vector.broadcast %3 : vector<1x384xf32> to vector<14x384xf32>
    %257 = arith.mulf %235, %256 : vector<14x384xf32>
    %258 = vector.broadcast %6 : vector<1x384xf32> to vector<14x384xf32>
    %259 = arith.mulf %237, %258 : vector<14x384xf32>
    %260 = arith.addf %257, %259 : vector<14x384xf32>
    %261 = vector.broadcast %9 : vector<1x384xf32> to vector<14x384xf32>
    %262 = arith.mulf %239, %261 : vector<14x384xf32>
    %263 = arith.addf %260, %262 : vector<14x384xf32>
    %264 = vector.extract_strided_slice %247 {offsets = [0, 0], sizes = [13, 384], strides = [1, 1]} : vector<14x384xf32> to vector<13x384xf32>
    %265 = tpu.concatenate %10, %264 in 0 : vector<1x384xf32>, vector<13x384xf32> -> vector<14x384xf32>
    %266 = arith.addf %255, %265 : vector<14x384xf32>
    %267 = vector.extract_strided_slice %263 {offsets = [1, 0], sizes = [13, 384], strides = [1, 1]} : vector<14x384xf32> to vector<13x384xf32>
    %268 = tpu.concatenate %267, %10 in 0 : vector<13x384xf32>, vector<1x384xf32> -> vector<14x384xf32>
    %269 = arith.addf %266, %268 : vector<14x384xf32>
    %c0_98 = arith.constant 0 : index
    %c6_99 = arith.constant 6 : index
    %c0_100 = arith.constant 0 : index
    %c0_101 = arith.constant 0 : index
    %270 = vector.load %arg4[%c0_98, %c6_99, %c0_100, %c0_101] : memref<1x14x14x384xf32, #tpu.memory_space<vmem>>, vector<1x1x14x384xf32>
    %271 = vector.shape_cast %270 : vector<1x1x14x384xf32> to vector<14x384xf32>
    %272 = vector.shape_cast %269 : vector<14x384xf32> to vector<1x1x14x384xf32>
    tpu.vector_store %arg4[%c0_98, %c6_99, %c0_100, %c0_101], %272 {strides = array<i32>} : memref<1x14x14x384xf32, #tpu.memory_space<vmem>>, vector<1x1x14x384xf32>,
    %c0_102 = arith.constant 0 : index
    %c6_103 = arith.constant 6 : index
    %c0_104 = arith.constant 0 : index
    %c0_105 = arith.constant 0 : index
    %273 = vector.load %arg2[%c0_102, %c6_103, %c0_104, %c0_105] : memref<1x14x14x384xf32, #tpu.memory_space<vmem>>, vector<1x1x14x384xf32>
    %274 = vector.shape_cast %273 : vector<1x1x14x384xf32> to vector<14x384xf32>
    %c0_106 = arith.constant 0 : index
    %c7_107 = arith.constant 7 : index
    %c0_108 = arith.constant 0 : index
    %c0_109 = arith.constant 0 : index
    %275 = vector.load %arg2[%c0_106, %c7_107, %c0_108, %c0_109] : memref<1x14x14x384xf32, #tpu.memory_space<vmem>>, vector<1x1x14x384xf32>
    %276 = vector.shape_cast %275 : vector<1x1x14x384xf32> to vector<14x384xf32>
    %c0_110 = arith.constant 0 : index
    %c8 = arith.constant 8 : index
    %c0_111 = arith.constant 0 : index
    %c0_112 = arith.constant 0 : index
    %277 = vector.load %arg2[%c0_110, %c8, %c0_111, %c0_112] : memref<1x14x14x384xf32, #tpu.memory_space<vmem>>, vector<1x1x14x384xf32>
    %278 = vector.shape_cast %277 : vector<1x1x14x384xf32> to vector<14x384xf32>
    %279 = vector.broadcast %1 : vector<1x384xf32> to vector<14x384xf32>
    %280 = arith.mulf %274, %279 : vector<14x384xf32>
    %281 = vector.broadcast %4 : vector<1x384xf32> to vector<14x384xf32>
    %282 = arith.mulf %276, %281 : vector<14x384xf32>
    %283 = arith.addf %280, %282 : vector<14x384xf32>
    %284 = vector.broadcast %7 : vector<1x384xf32> to vector<14x384xf32>
    %285 = arith.mulf %278, %284 : vector<14x384xf32>
    %286 = arith.addf %283, %285 : vector<14x384xf32>
    %287 = vector.broadcast %2 : vector<1x384xf32> to vector<14x384xf32>
    %288 = arith.mulf %274, %287 : vector<14x384xf32>
    %289 = vector.broadcast %5 : vector<1x384xf32> to vector<14x384xf32>
    %290 = arith.mulf %276, %289 : vector<14x384xf32>
    %291 = arith.addf %288, %290 : vector<14x384xf32>
    %292 = vector.broadcast %8 : vector<1x384xf32> to vector<14x384xf32>
    %293 = arith.mulf %278, %292 : vector<14x384xf32>
    %294 = arith.addf %291, %293 : vector<14x384xf32>
    %295 = vector.broadcast %3 : vector<1x384xf32> to vector<14x384xf32>
    %296 = arith.mulf %274, %295 : vector<14x384xf32>
    %297 = vector.broadcast %6 : vector<1x384xf32> to vector<14x384xf32>
    %298 = arith.mulf %276, %297 : vector<14x384xf32>
    %299 = arith.addf %296, %298 : vector<14x384xf32>
    %300 = vector.broadcast %9 : vector<1x384xf32> to vector<14x384xf32>
    %301 = arith.mulf %278, %300 : vector<14x384xf32>
    %302 = arith.addf %299, %301 : vector<14x384xf32>
    %303 = vector.extract_strided_slice %286 {offsets = [0, 0], sizes = [13, 384], strides = [1, 1]} : vector<14x384xf32> to vector<13x384xf32>
    %304 = tpu.concatenate %10, %303 in 0 : vector<1x384xf32>, vector<13x384xf32> -> vector<14x384xf32>
    %305 = arith.addf %294, %304 : vector<14x384xf32>
    %306 = vector.extract_strided_slice %302 {offsets = [1, 0], sizes = [13, 384], strides = [1, 1]} : vector<14x384xf32> to vector<13x384xf32>
    %307 = tpu.concatenate %306, %10 in 0 : vector<13x384xf32>, vector<1x384xf32> -> vector<14x384xf32>
    %308 = arith.addf %305, %307 : vector<14x384xf32>
    %c0_113 = arith.constant 0 : index
    %c7_114 = arith.constant 7 : index
    %c0_115 = arith.constant 0 : index
    %c0_116 = arith.constant 0 : index
    %309 = vector.load %arg4[%c0_113, %c7_114, %c0_115, %c0_116] : memref<1x14x14x384xf32, #tpu.memory_space<vmem>>, vector<1x1x14x384xf32>
    %310 = vector.shape_cast %309 : vector<1x1x14x384xf32> to vector<14x384xf32>
    %311 = vector.shape_cast %308 : vector<14x384xf32> to vector<1x1x14x384xf32>
    tpu.vector_store %arg4[%c0_113, %c7_114, %c0_115, %c0_116], %311 {strides = array<i32>} : memref<1x14x14x384xf32, #tpu.memory_space<vmem>>, vector<1x1x14x384xf32>,
    %c0_117 = arith.constant 0 : index
    %c7_118 = arith.constant 7 : index
    %c0_119 = arith.constant 0 : index
    %c0_120 = arith.constant 0 : index
    %312 = vector.load %arg2[%c0_117, %c7_118, %c0_119, %c0_120] : memref<1x14x14x384xf32, #tpu.memory_space<vmem>>, vector<1x1x14x384xf32>
    %313 = vector.shape_cast %312 : vector<1x1x14x384xf32> to vector<14x384xf32>
    %c0_121 = arith.constant 0 : index
    %c8_122 = arith.constant 8 : index
    %c0_123 = arith.constant 0 : index
    %c0_124 = arith.constant 0 : index
    %314 = vector.load %arg2[%c0_121, %c8_122, %c0_123, %c0_124] : memref<1x14x14x384xf32, #tpu.memory_space<vmem>>, vector<1x1x14x384xf32>
    %315 = vector.shape_cast %314 : vector<1x1x14x384xf32> to vector<14x384xf32>
    %c0_125 = arith.constant 0 : index
    %c9 = arith.constant 9 : index
    %c0_126 = arith.constant 0 : index
    %c0_127 = arith.constant 0 : index
    %316 = vector.load %arg2[%c0_125, %c9, %c0_126, %c0_127] : memref<1x14x14x384xf32, #tpu.memory_space<vmem>>, vector<1x1x14x384xf32>
    %317 = vector.shape_cast %316 : vector<1x1x14x384xf32> to vector<14x384xf32>
    %318 = vector.broadcast %1 : vector<1x384xf32> to vector<14x384xf32>
    %319 = arith.mulf %313, %318 : vector<14x384xf32>
    %320 = vector.broadcast %4 : vector<1x384xf32> to vector<14x384xf32>
    %321 = arith.mulf %315, %320 : vector<14x384xf32>
    %322 = arith.addf %319, %321 : vector<14x384xf32>
    %323 = vector.broadcast %7 : vector<1x384xf32> to vector<14x384xf32>
    %324 = arith.mulf %317, %323 : vector<14x384xf32>
    %325 = arith.addf %322, %324 : vector<14x384xf32>
    %326 = vector.broadcast %2 : vector<1x384xf32> to vector<14x384xf32>
    %327 = arith.mulf %313, %326 : vector<14x384xf32>
    %328 = vector.broadcast %5 : vector<1x384xf32> to vector<14x384xf32>
    %329 = arith.mulf %315, %328 : vector<14x384xf32>
    %330 = arith.addf %327, %329 : vector<14x384xf32>
    %331 = vector.broadcast %8 : vector<1x384xf32> to vector<14x384xf32>
    %332 = arith.mulf %317, %331 : vector<14x384xf32>
    %333 = arith.addf %330, %332 : vector<14x384xf32>
    %334 = vector.broadcast %3 : vector<1x384xf32> to vector<14x384xf32>
    %335 = arith.mulf %313, %334 : vector<14x384xf32>
    %336 = vector.broadcast %6 : vector<1x384xf32> to vector<14x384xf32>
    %337 = arith.mulf %315, %336 : vector<14x384xf32>
    %338 = arith.addf %335, %337 : vector<14x384xf32>
    %339 = vector.broadcast %9 : vector<1x384xf32> to vector<14x384xf32>
    %340 = arith.mulf %317, %339 : vector<14x384xf32>
    %341 = arith.addf %338, %340 : vector<14x384xf32>
    %342 = vector.extract_strided_slice %325 {offsets = [0, 0], sizes = [13, 384], strides = [1, 1]} : vector<14x384xf32> to vector<13x384xf32>
    %343 = tpu.concatenate %10, %342 in 0 : vector<1x384xf32>, vector<13x384xf32> -> vector<14x384xf32>
    %344 = arith.addf %333, %343 : vector<14x384xf32>
    %345 = vector.extract_strided_slice %341 {offsets = [1, 0], sizes = [13, 384], strides = [1, 1]} : vector<14x384xf32> to vector<13x384xf32>
    %346 = tpu.concatenate %345, %10 in 0 : vector<13x384xf32>, vector<1x384xf32> -> vector<14x384xf32>
    %347 = arith.addf %344, %346 : vector<14x384xf32>
    %c0_128 = arith.constant 0 : index
    %c8_129 = arith.constant 8 : index
    %c0_130 = arith.constant 0 : index
    %c0_131 = arith.constant 0 : index
    %348 = vector.load %arg4[%c0_128, %c8_129, %c0_130, %c0_131] : memref<1x14x14x384xf32, #tpu.memory_space<vmem>>, vector<1x1x14x384xf32>
    %349 = vector.shape_cast %348 : vector<1x1x14x384xf32> to vector<14x384xf32>
    %350 = vector.shape_cast %347 : vector<14x384xf32> to vector<1x1x14x384xf32>
    tpu.vector_store %arg4[%c0_128, %c8_129, %c0_130, %c0_131], %350 {strides = array<i32>} : memref<1x14x14x384xf32, #tpu.memory_space<vmem>>, vector<1x1x14x384xf32>,
    %c0_132 = arith.constant 0 : index
    %c8_133 = arith.constant 8 : index
    %c0_134 = arith.constant 0 : index
    %c0_135 = arith.constant 0 : index
    %351 = vector.load %arg2[%c0_132, %c8_133, %c0_134, %c0_135] : memref<1x14x14x384xf32, #tpu.memory_space<vmem>>, vector<1x1x14x384xf32>
    %352 = vector.shape_cast %351 : vector<1x1x14x384xf32> to vector<14x384xf32>
    %c0_136 = arith.constant 0 : index
    %c9_137 = arith.constant 9 : index
    %c0_138 = arith.constant 0 : index
    %c0_139 = arith.constant 0 : index
    %353 = vector.load %arg2[%c0_136, %c9_137, %c0_138, %c0_139] : memref<1x14x14x384xf32, #tpu.memory_space<vmem>>, vector<1x1x14x384xf32>
    %354 = vector.shape_cast %353 : vector<1x1x14x384xf32> to vector<14x384xf32>
    %c0_140 = arith.constant 0 : index
    %c10 = arith.constant 10 : index
    %c0_141 = arith.constant 0 : index
    %c0_142 = arith.constant 0 : index
    %355 = vector.load %arg2[%c0_140, %c10, %c0_141, %c0_142] : memref<1x14x14x384xf32, #tpu.memory_space<vmem>>, vector<1x1x14x384xf32>
    %356 = vector.shape_cast %355 : vector<1x1x14x384xf32> to vector<14x384xf32>
    %357 = vector.broadcast %1 : vector<1x384xf32> to vector<14x384xf32>
    %358 = arith.mulf %352, %357 : vector<14x384xf32>
    %359 = vector.broadcast %4 : vector<1x384xf32> to vector<14x384xf32>
    %360 = arith.mulf %354, %359 : vector<14x384xf32>
    %361 = arith.addf %358, %360 : vector<14x384xf32>
    %362 = vector.broadcast %7 : vector<1x384xf32> to vector<14x384xf32>
    %363 = arith.mulf %356, %362 : vector<14x384xf32>
    %364 = arith.addf %361, %363 : vector<14x384xf32>
    %365 = vector.broadcast %2 : vector<1x384xf32> to vector<14x384xf32>
    %366 = arith.mulf %352, %365 : vector<14x384xf32>
    %367 = vector.broadcast %5 : vector<1x384xf32> to vector<14x384xf32>
    %368 = arith.mulf %354, %367 : vector<14x384xf32>
    %369 = arith.addf %366, %368 : vector<14x384xf32>
    %370 = vector.broadcast %8 : vector<1x384xf32> to vector<14x384xf32>
    %371 = arith.mulf %356, %370 : vector<14x384xf32>
    %372 = arith.addf %369, %371 : vector<14x384xf32>
    %373 = vector.broadcast %3 : vector<1x384xf32> to vector<14x384xf32>
    %374 = arith.mulf %352, %373 : vector<14x384xf32>
    %375 = vector.broadcast %6 : vector<1x384xf32> to vector<14x384xf32>
    %376 = arith.mulf %354, %375 : vector<14x384xf32>
    %377 = arith.addf %374, %376 : vector<14x384xf32>
    %378 = vector.broadcast %9 : vector<1x384xf32> to vector<14x384xf32>
    %379 = arith.mulf %356, %378 : vector<14x384xf32>
    %380 = arith.addf %377, %379 : vector<14x384xf32>
    %381 = vector.extract_strided_slice %364 {offsets = [0, 0], sizes = [13, 384], strides = [1, 1]} : vector<14x384xf32> to vector<13x384xf32>
    %382 = tpu.concatenate %10, %381 in 0 : vector<1x384xf32>, vector<13x384xf32> -> vector<14x384xf32>
    %383 = arith.addf %372, %382 : vector<14x384xf32>
    %384 = vector.extract_strided_slice %380 {offsets = [1, 0], sizes = [13, 384], strides = [1, 1]} : vector<14x384xf32> to vector<13x384xf32>
    %385 = tpu.concatenate %384, %10 in 0 : vector<13x384xf32>, vector<1x384xf32> -> vector<14x384xf32>
    %386 = arith.addf %383, %385 : vector<14x384xf32>
    %c0_143 = arith.constant 0 : index
    %c9_144 = arith.constant 9 : index
    %c0_145 = arith.constant 0 : index
    %c0_146 = arith.constant 0 : index
    %387 = vector.load %arg4[%c0_143, %c9_144, %c0_145, %c0_146] : memref<1x14x14x384xf32, #tpu.memory_space<vmem>>, vector<1x1x14x384xf32>
    %388 = vector.shape_cast %387 : vector<1x1x14x384xf32> to vector<14x384xf32>
    %389 = vector.shape_cast %386 : vector<14x384xf32> to vector<1x1x14x384xf32>
    tpu.vector_store %arg4[%c0_143, %c9_144, %c0_145, %c0_146], %389 {strides = array<i32>} : memref<1x14x14x384xf32, #tpu.memory_space<vmem>>, vector<1x1x14x384xf32>,
    %c0_147 = arith.constant 0 : index
    %c9_148 = arith.constant 9 : index
    %c0_149 = arith.constant 0 : index
    %c0_150 = arith.constant 0 : index
    %390 = vector.load %arg2[%c0_147, %c9_148, %c0_149, %c0_150] : memref<1x14x14x384xf32, #tpu.memory_space<vmem>>, vector<1x1x14x384xf32>
    %391 = vector.shape_cast %390 : vector<1x1x14x384xf32> to vector<14x384xf32>
    %c0_151 = arith.constant 0 : index
    %c10_152 = arith.constant 10 : index
    %c0_153 = arith.constant 0 : index
    %c0_154 = arith.constant 0 : index
    %392 = vector.load %arg2[%c0_151, %c10_152, %c0_153, %c0_154] : memref<1x14x14x384xf32, #tpu.memory_space<vmem>>, vector<1x1x14x384xf32>
    %393 = vector.shape_cast %392 : vector<1x1x14x384xf32> to vector<14x384xf32>
    %c0_155 = arith.constant 0 : index
    %c11 = arith.constant 11 : index
    %c0_156 = arith.constant 0 : index
    %c0_157 = arith.constant 0 : index
    %394 = vector.load %arg2[%c0_155, %c11, %c0_156, %c0_157] : memref<1x14x14x384xf32, #tpu.memory_space<vmem>>, vector<1x1x14x384xf32>
    %395 = vector.shape_cast %394 : vector<1x1x14x384xf32> to vector<14x384xf32>
    %396 = vector.broadcast %1 : vector<1x384xf32> to vector<14x384xf32>
    %397 = arith.mulf %391, %396 : vector<14x384xf32>
    %398 = vector.broadcast %4 : vector<1x384xf32> to vector<14x384xf32>
    %399 = arith.mulf %393, %398 : vector<14x384xf32>
    %400 = arith.addf %397, %399 : vector<14x384xf32>
    %401 = vector.broadcast %7 : vector<1x384xf32> to vector<14x384xf32>
    %402 = arith.mulf %395, %401 : vector<14x384xf32>
    %403 = arith.addf %400, %402 : vector<14x384xf32>
    %404 = vector.broadcast %2 : vector<1x384xf32> to vector<14x384xf32>
    %405 = arith.mulf %391, %404 : vector<14x384xf32>
    %406 = vector.broadcast %5 : vector<1x384xf32> to vector<14x384xf32>
    %407 = arith.mulf %393, %406 : vector<14x384xf32>
    %408 = arith.addf %405, %407 : vector<14x384xf32>
    %409 = vector.broadcast %8 : vector<1x384xf32> to vector<14x384xf32>
    %410 = arith.mulf %395, %409 : vector<14x384xf32>
    %411 = arith.addf %408, %410 : vector<14x384xf32>
    %412 = vector.broadcast %3 : vector<1x384xf32> to vector<14x384xf32>
    %413 = arith.mulf %391, %412 : vector<14x384xf32>
    %414 = vector.broadcast %6 : vector<1x384xf32> to vector<14x384xf32>
    %415 = arith.mulf %393, %414 : vector<14x384xf32>
    %416 = arith.addf %413, %415 : vector<14x384xf32>
    %417 = vector.broadcast %9 : vector<1x384xf32> to vector<14x384xf32>
    %418 = arith.mulf %395, %417 : vector<14x384xf32>
    %419 = arith.addf %416, %418 : vector<14x384xf32>
    %420 = vector.extract_strided_slice %403 {offsets = [0, 0], sizes = [13, 384], strides = [1, 1]} : vector<14x384xf32> to vector<13x384xf32>
    %421 = tpu.concatenate %10, %420 in 0 : vector<1x384xf32>, vector<13x384xf32> -> vector<14x384xf32>
    %422 = arith.addf %411, %421 : vector<14x384xf32>
    %423 = vector.extract_strided_slice %419 {offsets = [1, 0], sizes = [13, 384], strides = [1, 1]} : vector<14x384xf32> to vector<13x384xf32>
    %424 = tpu.concatenate %423, %10 in 0 : vector<13x384xf32>, vector<1x384xf32> -> vector<14x384xf32>
    %425 = arith.addf %422, %424 : vector<14x384xf32>
    %c0_158 = arith.constant 0 : index
    %c10_159 = arith.constant 10 : index
    %c0_160 = arith.constant 0 : index
    %c0_161 = arith.constant 0 : index
    %426 = vector.load %arg4[%c0_158, %c10_159, %c0_160, %c0_161] : memref<1x14x14x384xf32, #tpu.memory_space<vmem>>, vector<1x1x14x384xf32>
    %427 = vector.shape_cast %426 : vector<1x1x14x384xf32> to vector<14x384xf32>
    %428 = vector.shape_cast %425 : vector<14x384xf32> to vector<1x1x14x384xf32>
    tpu.vector_store %arg4[%c0_158, %c10_159, %c0_160, %c0_161], %428 {strides = array<i32>} : memref<1x14x14x384xf32, #tpu.memory_space<vmem>>, vector<1x1x14x384xf32>,
    %c0_162 = arith.constant 0 : index
    %c10_163 = arith.constant 10 : index
    %c0_164 = arith.constant 0 : index
    %c0_165 = arith.constant 0 : index
    %429 = vector.load %arg2[%c0_162, %c10_163, %c0_164, %c0_165] : memref<1x14x14x384xf32, #tpu.memory_space<vmem>>, vector<1x1x14x384xf32>
    %430 = vector.shape_cast %429 : vector<1x1x14x384xf32> to vector<14x384xf32>
    %c0_166 = arith.constant 0 : index
    %c11_167 = arith.constant 11 : index
    %c0_168 = arith.constant 0 : index
    %c0_169 = arith.constant 0 : index
    %431 = vector.load %arg2[%c0_166, %c11_167, %c0_168, %c0_169] : memref<1x14x14x384xf32, #tpu.memory_space<vmem>>, vector<1x1x14x384xf32>
    %432 = vector.shape_cast %431 : vector<1x1x14x384xf32> to vector<14x384xf32>
    %c0_170 = arith.constant 0 : index
    %c12 = arith.constant 12 : index
    %c0_171 = arith.constant 0 : index
    %c0_172 = arith.constant 0 : index
    %433 = vector.load %arg2[%c0_170, %c12, %c0_171, %c0_172] : memref<1x14x14x384xf32, #tpu.memory_space<vmem>>, vector<1x1x14x384xf32>
    %434 = vector.shape_cast %433 : vector<1x1x14x384xf32> to vector<14x384xf32>
    %435 = vector.broadcast %1 : vector<1x384xf32> to vector<14x384xf32>
    %436 = arith.mulf %430, %435 : vector<14x384xf32>
    %437 = vector.broadcast %4 : vector<1x384xf32> to vector<14x384xf32>
    %438 = arith.mulf %432, %437 : vector<14x384xf32>
    %439 = arith.addf %436, %438 : vector<14x384xf32>
    %440 = vector.broadcast %7 : vector<1x384xf32> to vector<14x384xf32>
    %441 = arith.mulf %434, %440 : vector<14x384xf32>
    %442 = arith.addf %439, %441 : vector<14x384xf32>
    %443 = vector.broadcast %2 : vector<1x384xf32> to vector<14x384xf32>
    %444 = arith.mulf %430, %443 : vector<14x384xf32>
    %445 = vector.broadcast %5 : vector<1x384xf32> to vector<14x384xf32>
    %446 = arith.mulf %432, %445 : vector<14x384xf32>
    %447 = arith.addf %444, %446 : vector<14x384xf32>
    %448 = vector.broadcast %8 : vector<1x384xf32> to vector<14x384xf32>
    %449 = arith.mulf %434, %448 : vector<14x384xf32>
    %450 = arith.addf %447, %449 : vector<14x384xf32>
    %451 = vector.broadcast %3 : vector<1x384xf32> to vector<14x384xf32>
    %452 = arith.mulf %430, %451 : vector<14x384xf32>
    %453 = vector.broadcast %6 : vector<1x384xf32> to vector<14x384xf32>
    %454 = arith.mulf %432, %453 : vector<14x384xf32>
    %455 = arith.addf %452, %454 : vector<14x384xf32>
    %456 = vector.broadcast %9 : vector<1x384xf32> to vector<14x384xf32>
    %457 = arith.mulf %434, %456 : vector<14x384xf32>
    %458 = arith.addf %455, %457 : vector<14x384xf32>
    %459 = vector.extract_strided_slice %442 {offsets = [0, 0], sizes = [13, 384], strides = [1, 1]} : vector<14x384xf32> to vector<13x384xf32>
    %460 = tpu.concatenate %10, %459 in 0 : vector<1x384xf32>, vector<13x384xf32> -> vector<14x384xf32>
    %461 = arith.addf %450, %460 : vector<14x384xf32>
    %462 = vector.extract_strided_slice %458 {offsets = [1, 0], sizes = [13, 384], strides = [1, 1]} : vector<14x384xf32> to vector<13x384xf32>
    %463 = tpu.concatenate %462, %10 in 0 : vector<13x384xf32>, vector<1x384xf32> -> vector<14x384xf32>
    %464 = arith.addf %461, %463 : vector<14x384xf32>
    %c0_173 = arith.constant 0 : index
    %c11_174 = arith.constant 11 : index
    %c0_175 = arith.constant 0 : index
    %c0_176 = arith.constant 0 : index
    %465 = vector.load %arg4[%c0_173, %c11_174, %c0_175, %c0_176] : memref<1x14x14x384xf32, #tpu.memory_space<vmem>>, vector<1x1x14x384xf32>
    %466 = vector.shape_cast %465 : vector<1x1x14x384xf32> to vector<14x384xf32>
    %467 = vector.shape_cast %464 : vector<14x384xf32> to vector<1x1x14x384xf32>
    tpu.vector_store %arg4[%c0_173, %c11_174, %c0_175, %c0_176], %467 {strides = array<i32>} : memref<1x14x14x384xf32, #tpu.memory_space<vmem>>, vector<1x1x14x384xf32>,
    %c0_177 = arith.constant 0 : index
    %c11_178 = arith.constant 11 : index
    %c0_179 = arith.constant 0 : index
    %c0_180 = arith.constant 0 : index
    %468 = vector.load %arg2[%c0_177, %c11_178, %c0_179, %c0_180] : memref<1x14x14x384xf32, #tpu.memory_space<vmem>>, vector<1x1x14x384xf32>
    %469 = vector.shape_cast %468 : vector<1x1x14x384xf32> to vector<14x384xf32>
    %c0_181 = arith.constant 0 : index
    %c12_182 = arith.constant 12 : index
    %c0_183 = arith.constant 0 : index
    %c0_184 = arith.constant 0 : index
    %470 = vector.load %arg2[%c0_181, %c12_182, %c0_183, %c0_184] : memref<1x14x14x384xf32, #tpu.memory_space<vmem>>, vector<1x1x14x384xf32>
    %471 = vector.shape_cast %470 : vector<1x1x14x384xf32> to vector<14x384xf32>
    %c0_185 = arith.constant 0 : index
    %c13 = arith.constant 13 : index
    %c0_186 = arith.constant 0 : index
    %c0_187 = arith.constant 0 : index
    %472 = vector.load %arg2[%c0_185, %c13, %c0_186, %c0_187] : memref<1x14x14x384xf32, #tpu.memory_space<vmem>>, vector<1x1x14x384xf32>
    %473 = vector.shape_cast %472 : vector<1x1x14x384xf32> to vector<14x384xf32>
    %474 = vector.broadcast %1 : vector<1x384xf32> to vector<14x384xf32>
    %475 = arith.mulf %469, %474 : vector<14x384xf32>
    %476 = vector.broadcast %4 : vector<1x384xf32> to vector<14x384xf32>
    %477 = arith.mulf %471, %476 : vector<14x384xf32>
    %478 = arith.addf %475, %477 : vector<14x384xf32>
    %479 = vector.broadcast %7 : vector<1x384xf32> to vector<14x384xf32>
    %480 = arith.mulf %473, %479 : vector<14x384xf32>
    %481 = arith.addf %478, %480 : vector<14x384xf32>
    %482 = vector.broadcast %2 : vector<1x384xf32> to vector<14x384xf32>
    %483 = arith.mulf %469, %482 : vector<14x384xf32>
    %484 = vector.broadcast %5 : vector<1x384xf32> to vector<14x384xf32>
    %485 = arith.mulf %471, %484 : vector<14x384xf32>
    %486 = arith.addf %483, %485 : vector<14x384xf32>
    %487 = vector.broadcast %8 : vector<1x384xf32> to vector<14x384xf32>
    %488 = arith.mulf %473, %487 : vector<14x384xf32>
    %489 = arith.addf %486, %488 : vector<14x384xf32>
    %490 = vector.broadcast %3 : vector<1x384xf32> to vector<14x384xf32>
    %491 = arith.mulf %469, %490 : vector<14x384xf32>
    %492 = vector.broadcast %6 : vector<1x384xf32> to vector<14x384xf32>
    %493 = arith.mulf %471, %492 : vector<14x384xf32>
    %494 = arith.addf %491, %493 : vector<14x384xf32>
    %495 = vector.broadcast %9 : vector<1x384xf32> to vector<14x384xf32>
    %496 = arith.mulf %473, %495 : vector<14x384xf32>
    %497 = arith.addf %494, %496 : vector<14x384xf32>
    %498 = vector.extract_strided_slice %481 {offsets = [0, 0], sizes = [13, 384], strides = [1, 1]} : vector<14x384xf32> to vector<13x384xf32>
    %499 = tpu.concatenate %10, %498 in 0 : vector<1x384xf32>, vector<13x384xf32> -> vector<14x384xf32>
    %500 = arith.addf %489, %499 : vector<14x384xf32>
    %501 = vector.extract_strided_slice %497 {offsets = [1, 0], sizes = [13, 384], strides = [1, 1]} : vector<14x384xf32> to vector<13x384xf32>
    %502 = tpu.concatenate %501, %10 in 0 : vector<13x384xf32>, vector<1x384xf32> -> vector<14x384xf32>
    %503 = arith.addf %500, %502 : vector<14x384xf32>
    %c0_188 = arith.constant 0 : index
    %c12_189 = arith.constant 12 : index
    %c0_190 = arith.constant 0 : index
    %c0_191 = arith.constant 0 : index
    %504 = vector.load %arg4[%c0_188, %c12_189, %c0_190, %c0_191] : memref<1x14x14x384xf32, #tpu.memory_space<vmem>>, vector<1x1x14x384xf32>
    %505 = vector.shape_cast %504 : vector<1x1x14x384xf32> to vector<14x384xf32>
    %506 = vector.shape_cast %503 : vector<14x384xf32> to vector<1x1x14x384xf32>
    tpu.vector_store %arg4[%c0_188, %c12_189, %c0_190, %c0_191], %506 {strides = array<i32>} : memref<1x14x14x384xf32, #tpu.memory_space<vmem>>, vector<1x1x14x384xf32>,
    %c0_192 = arith.constant 0 : index
    %c12_193 = arith.constant 12 : index
    %c0_194 = arith.constant 0 : index
    %c0_195 = arith.constant 0 : index
    %507 = vector.load %arg2[%c0_192, %c12_193, %c0_194, %c0_195] : memref<1x14x14x384xf32, #tpu.memory_space<vmem>>, vector<1x1x14x384xf32>
    %508 = vector.shape_cast %507 : vector<1x1x14x384xf32> to vector<14x384xf32>
    %c0_196 = arith.constant 0 : index
    %c13_197 = arith.constant 13 : index
    %c0_198 = arith.constant 0 : index
    %c0_199 = arith.constant 0 : index
    %509 = vector.load %arg2[%c0_196, %c13_197, %c0_198, %c0_199] : memref<1x14x14x384xf32, #tpu.memory_space<vmem>>, vector<1x1x14x384xf32>
    %510 = vector.shape_cast %509 : vector<1x1x14x384xf32> to vector<14x384xf32>
    %511 = vector.broadcast %1 : vector<1x384xf32> to vector<14x384xf32>
    %512 = arith.mulf %508, %511 : vector<14x384xf32>
    %513 = vector.broadcast %4 : vector<1x384xf32> to vector<14x384xf32>
    %514 = arith.mulf %510, %513 : vector<14x384xf32>
    %515 = arith.addf %512, %514 : vector<14x384xf32>
    %516 = vector.broadcast %2 : vector<1x384xf32> to vector<14x384xf32>
    %517 = arith.mulf %508, %516 : vector<14x384xf32>
    %518 = vector.broadcast %5 : vector<1x384xf32> to vector<14x384xf32>
    %519 = arith.mulf %510, %518 : vector<14x384xf32>
    %520 = arith.addf %517, %519 : vector<14x384xf32>
    %521 = vector.broadcast %3 : vector<1x384xf32> to vector<14x384xf32>
    %522 = arith.mulf %508, %521 : vector<14x384xf32>
    %523 = vector.broadcast %6 : vector<1x384xf32> to vector<14x384xf32>
    %524 = arith.mulf %510, %523 : vector<14x384xf32>
    %525 = arith.addf %522, %524 : vector<14x384xf32>
    %526 = vector.extract_strided_slice %515 {offsets = [0, 0], sizes = [13, 384], strides = [1, 1]} : vector<14x384xf32> to vector<13x384xf32>
    %527 = tpu.concatenate %10, %526 in 0 : vector<1x384xf32>, vector<13x384xf32> -> vector<14x384xf32>
    %528 = arith.addf %520, %527 : vector<14x384xf32>
    %529 = vector.extract_strided_slice %525 {offsets = [1, 0], sizes = [13, 384], strides = [1, 1]} : vector<14x384xf32> to vector<13x384xf32>
    %530 = tpu.concatenate %529, %10 in 0 : vector<13x384xf32>, vector<1x384xf32> -> vector<14x384xf32>
    %531 = arith.addf %528, %530 : vector<14x384xf32>
    %c0_200 = arith.constant 0 : index
    %c13_201 = arith.constant 13 : index
    %c0_202 = arith.constant 0 : index
    %c0_203 = arith.constant 0 : index
    %532 = vector.load %arg4[%c0_200, %c13_201, %c0_202, %c0_203] : memref<1x14x14x384xf32, #tpu.memory_space<vmem>>, vector<1x1x14x384xf32>
    %533 = vector.shape_cast %532 : vector<1x1x14x384xf32> to vector<14x384xf32>
    %534 = vector.shape_cast %531 : vector<14x384xf32> to vector<1x1x14x384xf32>
    tpu.vector_store %arg4[%c0_200, %c13_201, %c0_202, %c0_203], %534 {strides = array<i32>} : memref<1x14x14x384xf32, #tpu.memory_space<vmem>>, vector<1x1x14x384xf32>,
    return
  }
  func.func @transform_0(%arg0: i32, %arg1: i32) -> (i32, i32, i32, i32) {
    %c0_i32 = arith.constant 0 : i32
    %c0_i32_0 = arith.constant 0 : i32
    %c0_i32_1 = arith.constant 0 : i32
    return %arg0, %c0_i32, %c0_i32_0, %arg1 : i32, i32, i32, i32
  }
  func.func @transform_1(%arg0: i32, %arg1: i32) -> (i32, i32) {
    %c0_i32 = arith.constant 0 : i32
    %c0_i32_0 = arith.constant 0 : i32
    return %c0_i32, %arg1 : i32, i32
  }
  func.func @transform_2(%arg0: i32, %arg1: i32) -> (i32, i32, i32, i32) {
    %c0_i32 = arith.constant 0 : i32
    %c0_i32_0 = arith.constant 0 : i32
    %c0_i32_1 = arith.constant 0 : i32
    return %arg0, %c0_i32, %c0_i32_0, %arg1 : i32, i32, i32, i32
  }
}

</mosaic_0001>

<bundles_post_ra>
// kernel: tpu_custom_call.1
= control target key start
LH: loop header
LB: loop body
LE: loop exit
PB: predicated region body
PF: predicated region fallthrough
CT: control target
= control target key end

     0   :  { %s3604_s9 = smov 0   ;;  %s3606_s10 = smov 0   ;;  %s6397_s0 = inlined_call_operand.vmem [shape: f32[1,14,14,1056], index: 0, kind: input, shape index: {}]   ;;  %s6398_s1 = inlined_call_operand.vmem [shape: f32[9,1056], index: 1, kind: input, shape index: {}]   ;;  %s6399_s2 = inlined_call_operand.vmem [shape: f32[1,14,14,1056], index: 2, kind: output, shape index: {}]  }
   0x1   :  { %s3608_s11 = smov 0   ;;  %s3610_s12 = smov 0  }
   0x2   :  { %s3612_s13 = smov 0  }
   0x3 LB: > { %s21_s14 = sadd.s32 1, %s3583_s12  ;;  %s3174_s15 = sadd.s32 4294967295, %s3587_s13   ;;  %s3587_s13 = sphi %s3612_s13, %s12_s13   ;;  %s3583_s12 = sphi %s3610_s12, %s6576_s12   ;;  %s3579_s11 = sphi %s3608_s11, %s6575_s11   ;;  %s3575_s10 = sphi %s3606_s10, %s6574_s10   ;;  %s3571_s9 = sphi %s3604_s9, %s6573_s9  }
   0x4   : > { %p22_p0 = scmp.ge.s32.totalorder %s21_s14, 3  ;;  %p40_p1 = scmp.ne.s32.totalorder %s3575_s10, %s3571_s9 }
   0x5   : > { %p41_p2 = scmp.eq.s32.totalorder %s3587_s13, 0  ;;  %p98_p4 = scmp.eq.s32.totalorder %s3174_s15, 2 }
   0x6   : > { %s6578_s14 = smov (%p22_p0, %s21_s14), 0  ;;  %s33_s18 = sadd.s32 1, %s3575_s10 }
   0x7   : > { %p3636_p3 = por %p41_p2, %p40_p1  ;;  %s29_s17 = ssub.s32 %s3583_s12, %s6578_s14 }
   0x8   : > { %p31_p5 = scmp.eq.s32.totalorder %s29_s17, 0  ;;  %p3643_p6 = por %p98_p4, %p40_p1 }
   0x9   : > { %p3177_p7 = scmp.ge.s32.totalorder %s3587_s13, 3 }
   0xa   : > { %s3648_s20 = scalar_select %p31_p5, %s3575_s10, %s33_s18  }
   0xb   : > { %120 = sbr.rel (%p3177_p7) target bundleno = 71 (0x47), region = 16 }
  0x10   : > { %123 = sbr.rel (!%p3636_p3) target bundleno = 63 (0x3f), region = 20  ;;  %s125_s21 = sand.u32 (%p3636_p3), 1, %s3575_s10  }
  0x11   : > { %s3493_s22 = smul.u32 (%p3636_p3), 24, %s3583_s12 }
  0x12   : > { %s3496_s23 = smul.u32 (%p3636_p3), 672, %s125_s21 }
  0x13   : > { %s3658_s26 = scalar_lea.vmem (%p3636_p3), %s6397_s0, %s3493_s22 }
  0x14   : > { %v145_v0 = vld [vmem:[%s3658_s26] sm:$0xff] (%p3636_p3)  ;;  %v147_v1 = vld [vmem:[%s3658_s26 + $0x8] sm:$0xff] (%p3636_p3)  ;;  %v149_v2 = vld [vmem:[%s3658_s26 + $0x10] sm:$0xff] (%p3636_p3)  ;;  %s3663_s27 = scalar_lea.vmem (%p3636_p3), [#allocation2], %s3496_s23 }
  0x15   : > { %146 = vst [vmem:[%s3663_s27] sm:$0xff] %v145_v0  ;;  %148 = vst [vmem:[%s3663_s27 + $0x8] sm:$0xff] %v147_v1  ;;  %v151_v3 = vld [vmem:[%s3658_s26 + $0x48] sm:$0xff]  ;;  %v153_v4 = vld [vmem:[%s3658_s26 + $0x50] sm:$0xff] }
  0x16   : > { %150 = vst [vmem:[%s3663_s27 + $0x10] sm:$0xff] %v149_v2  ;;  %v155_v5 = vld [vmem:[%s3658_s26 + $0x58] sm:$0xff]  ;;  %152 = vst [vmem:[%s3663_s27 + $0x18] sm:$0xff] %v151_v3  ;;  %v157_v6 = vld [vmem:[%s3658_s26 + $0x90] sm:$0xff] }
  0x17   : > { %154 = vst [vmem:[%s3663_s27 + $0x20] sm:$0xff] %v153_v4  ;;  %156 = vst [vmem:[%s3663_s27 + $0x28] sm:$0xff] %v155_v5  ;;  %v159_v7 = vld [vmem:[%s3658_s26 + $0x98] sm:$0xff]  ;;  %v161_v8 = vld [vmem:[%s3658_s26 + $0xa0] sm:$0xff] }
  0x18   : > { %158 = vst [vmem:[%s3663_s27 + $0x30] sm:$0xff] %v157_v6  ;;  %160 = vst [vmem:[%s3663_s27 + $0x38] sm:$0xff] %v159_v7  ;;  %v163_v9 = vld [vmem:[%s3658_s26 + $0xd8] sm:$0xff]  ;;  %v165_v10 = vld [vmem:[%s3658_s26 + $0xe0] sm:$0xff] }
  0x19   : > { %162 = vst [vmem:[%s3663_s27 + $0x40] sm:$0xff] %v161_v8  ;;  %v167_v11 = vld [vmem:[%s3658_s26 + $0xe8] sm:$0xff]  ;;  %164 = vst [vmem:[%s3663_s27 + $0x48] sm:$0xff] %v163_v9  ;;  %v169_v12 = vld [vmem:[%s3658_s26 + $0x120] sm:$0xff] }
  0x1a   : > { %166 = vst [vmem:[%s3663_s27 + $0x50] sm:$0xff] %v165_v10  ;;  %168 = vst [vmem:[%s3663_s27 + $0x58] sm:$0xff] %v167_v11  ;;  %v171_v13 = vld [vmem:[%s3658_s26 + $0x128] sm:$0xff]  ;;  %v173_v14 = vld [vmem:[%s3658_s26 + $0x130] sm:$0xff] }
  0x1b   : > { %170 = vst [vmem:[%s3663_s27 + $0x60] sm:$0xff] %v169_v12  ;;  %172 = vst [vmem:[%s3663_s27 + $0x68] sm:$0xff] %v171_v13  ;;  %v175_v15 = vld [vmem:[%s3658_s26 + $0x168] sm:$0xff]  ;;  %v177_v16 = vld [vmem:[%s3658_s26 + $0x170] sm:$0xff] }
  0x1c   : > { %174 = vst [vmem:[%s3663_s27 + $0x70] sm:$0xff] %v173_v14  ;;  %v179_v17 = vld [vmem:[%s3658_s26 + $0x178] sm:$0xff]  ;;  %176 = vst [vmem:[%s3663_s27 + $0x78] sm:$0xff] %v175_v15  ;;  %v181_v18 = vld [vmem:[%s3658_s26 + $0x1b0] sm:$0xff] }
  0x1d   : > { %178 = vst [vmem:[%s3663_s27 + $0x80] sm:$0xff] %v177_v16  ;;  %180 = vst [vmem:[%s3663_s27 + $0x88] sm:$0xff] %v179_v17  ;;  %v183_v19 = vld [vmem:[%s3658_s26 + $0x1b8] sm:$0xff]  ;;  %v185_v20 = vld [vmem:[%s3658_s26 + $0x1c0] sm:$0xff] }
  0x1e   : > { %182 = vst [vmem:[%s3663_s27 + $0x90] sm:$0xff] %v181_v18  ;;  %184 = vst [vmem:[%s3663_s27 + $0x98] sm:$0xff] %v183_v19  ;;  %v187_v21 = vld [vmem:[%s3658_s26 + $0x1f8] sm:$0xff]  ;;  %v189_v22 = vld [vmem:[%s3658_s26 + $0x200] sm:$0xff] }
  0x1f   : > { %186 = vst [vmem:[%s3663_s27 + $0xa0] sm:$0xff] %v185_v20  ;;  %v191_v23 = vld [vmem:[%s3658_s26 + $0x208] sm:$0xff]  ;;  %188 = vst [vmem:[%s3663_s27 + $0xa8] sm:$0xff] %v187_v21  ;;  %v193_v24 = vld [vmem:[%s3658_s26 + $0x240] sm:$0xff] }
  0x20   : > { %190 = vst [vmem:[%s3663_s27 + $0xb0] sm:$0xff] %v189_v22  ;;  %192 = vst [vmem:[%s3663_s27 + $0xb8] sm:$0xff] %v191_v23  ;;  %v195_v25 = vld [vmem:[%s3658_s26 + $0x248] sm:$0xff]  ;;  %v197_v26 = vld [vmem:[%s3658_s26 + $0x250] sm:$0xff] }
  0x21   : > { %194 = vst [vmem:[%s3663_s27 + $0xc0] sm:$0xff] %v193_v24  ;;  %196 = vst [vmem:[%s3663_s27 + $0xc8] sm:$0xff] %v195_v25  ;;  %v199_v27 = vld [vmem:[%s3658_s26 + $0x288] sm:$0xff]  ;;  %v201_v28 = vld [vmem:[%s3658_s26 + $0x290] sm:$0xff] }
  0x22   : > { %198 = vst [vmem:[%s3663_s27 + $0xd0] sm:$0xff] %v197_v26  ;;  %v203_v29 = vld [vmem:[%s3658_s26 + $0x298] sm:$0xff]  ;;  %200 = vst [vmem:[%s3663_s27 + $0xd8] sm:$0xff] %v199_v27  ;;  %v205_v30 = vld [vmem:[%s3658_s26 + $0x2d0] sm:$0xff] }
  0x23   : > { %202 = vst [vmem:[%s3663_s27 + $0xe0] sm:$0xff] %v201_v28  ;;  %204 = vst [vmem:[%s3663_s27 + $0xe8] sm:$0xff] %v203_v29  ;;  %v207_v31 = vld [vmem:[%s3658_s26 + $0x2d8] sm:$0xff]  ;;  %v209_v32 = vld [vmem:[%s3658_s26 + $0x2e0] sm:$0xff] }
  0x24   : > { %206 = vst [vmem:[%s3663_s27 + $0xf0] sm:$0xff] %v205_v30  ;;  %208 = vst [vmem:[%s3663_s27 + $0xf8] sm:$0xff] %v207_v31  ;;  %v211_v33 = vld [vmem:[%s3658_s26 + $0x318] sm:$0xff]  ;;  %v213_v34 = vld [vmem:[%s3658_s26 + $0x320] sm:$0xff] }
  0x25   : > { %210 = vst [vmem:[%s3663_s27 + $0x100] sm:$0xff] %v209_v32  ;;  %v215_v35 = vld [vmem:[%s3658_s26 + $0x328] sm:$0xff]  ;;  %212 = vst [vmem:[%s3663_s27 + $0x108] sm:$0xff] %v211_v33  ;;  %v217_v36 = vld [vmem:[%s3658_s26 + $0x360] sm:$0xff] }
  0x26   : > { %214 = vst [vmem:[%s3663_s27 + $0x110] sm:$0xff] %v213_v34  ;;  %216 = vst [vmem:[%s3663_s27 + $0x118] sm:$0xff] %v215_v35  ;;  %v219_v37 = vld [vmem:[%s3658_s26 + $0x368] sm:$0xff]  ;;  %v221_v38 = vld [vmem:[%s3658_s26 + $0x370] sm:$0xff] }
  0x27   : > { %218 = vst [vmem:[%s3663_s27 + $0x120] sm:$0xff] %v217_v36  ;;  %220 = vst [vmem:[%s3663_s27 + $0x128] sm:$0xff] %v219_v37  ;;  %v223_v39 = vld [vmem:[%s3658_s26 + $0x3a8] sm:$0xff]  ;;  %v225_v40 = vld [vmem:[%s3658_s26 + $0x3b0] sm:$0xff] }
  0x28   : > { %222 = vst [vmem:[%s3663_s27 + $0x130] sm:$0xff] %v221_v38  ;;  %v227_v41 = vld [vmem:[%s3658_s26 + $0x3b8] sm:$0xff]  ;;  %224 = vst [vmem:[%s3663_s27 + $0x138] sm:$0xff] %v223_v39  ;;  %v229_v42 = vld [vmem:[%s3658_s26 + $0x3f0] sm:$0xff] }
  0x29   : > { %226 = vst [vmem:[%s3663_s27 + $0x140] sm:$0xff] %v225_v40  ;;  %228 = vst [vmem:[%s3663_s27 + $0x148] sm:$0xff] %v227_v41  ;;  %v231_v43 = vld [vmem:[%s3658_s26 + $0x3f8] sm:$0xff]  ;;  %v233_v44 = vld [vmem:[%s3658_s26 + $0x400] sm:$0xff] }
  0x2a   : > { %230 = vst [vmem:[%s3663_s27 + $0x150] sm:$0xff] %v229_v42  ;;  %232 = vst [vmem:[%s3663_s27 + $0x158] sm:$0xff] %v231_v43  ;;  %v235_v45 = vld [vmem:[%s3658_s26 + $0x438] sm:$0xff]  ;;  %v237_v46 = vld [vmem:[%s3658_s26 + $0x440] sm:$0xff] }
  0x2b   : > { %234 = vst [vmem:[%s3663_s27 + $0x160] sm:$0xff] %v233_v44  ;;  %v239_v47 = vld [vmem:[%s3658_s26 + $0x448] sm:$0xff]  ;;  %236 = vst [vmem:[%s3663_s27 + $0x168] sm:$0xff] %v235_v45  ;;  %v241_v48 = vld [vmem:[%s3658_s26 + $0x480] sm:$0xff] }
  0x2c   : > { %238 = vst [vmem:[%s3663_s27 + $0x170] sm:$0xff] %v237_v46  ;;  %240 = vst [vmem:[%s3663_s27 + $0x178] sm:$0xff] %v239_v47  ;;  %v243_v49 = vld [vmem:[%s3658_s26 + $0x488] sm:$0xff]  ;;  %v245_v50 = vld [vmem:[%s3658_s26 + $0x490] sm:$0xff] }
  0x2d   : > { %242 = vst [vmem:[%s3663_s27 + $0x180] sm:$0xff] %v241_v48  ;;  %244 = vst [vmem:[%s3663_s27 + $0x188] sm:$0xff] %v243_v49  ;;  %v247_v51 = vld [vmem:[%s3658_s26 + $0x4c8] sm:$0xff]  ;;  %v249_v52 = vld [vmem:[%s3658_s26 + $0x4d0] sm:$0xff] }
  0x2e   : > { %246 = vst [vmem:[%s3663_s27 + $0x190] sm:$0xff] %v245_v50  ;;  %v251_v53 = vld [vmem:[%s3658_s26 + $0x4d8] sm:$0xff]  ;;  %248 = vst [vmem:[%s3663_s27 + $0x198] sm:$0xff] %v247_v51  ;;  %v253_v54 = vld [vmem:[%s3658_s26 + $0x510] sm:$0xff] }
  0x2f   : > { %250 = vst [vmem:[%s3663_s27 + $0x1a0] sm:$0xff] %v249_v52  ;;  %252 = vst [vmem:[%s3663_s27 + $0x1a8] sm:$0xff] %v251_v53  ;;  %v255_v55 = vld [vmem:[%s3658_s26 + $0x518] sm:$0xff]  ;;  %v257_v56 = vld [vmem:[%s3658_s26 + $0x520] sm:$0xff] }
  0x30   : > { %254 = vst [vmem:[%s3663_s27 + $0x1b0] sm:$0xff] %v253_v54  ;;  %256 = vst [vmem:[%s3663_s27 + $0x1b8] sm:$0xff] %v255_v55  ;;  %v259_v57 = vld [vmem:[%s3658_s26 + $0x558] sm:$0xff]  ;;  %v261_v58 = vld [vmem:[%s3658_s26 + $0x560] sm:$0xff] }
  0x31   : > { %258 = vst [vmem:[%s3663_s27 + $0x1c0] sm:$0xff] %v257_v56  ;;  %v263_v59 = vld [vmem:[%s3658_s26 + $0x568] sm:$0xff]  ;;  %260 = vst [vmem:[%s3663_s27 + $0x1c8] sm:$0xff] %v259_v57  ;;  %v265_v60 = vld [vmem:[%s3658_s26 + $0x5a0] sm:$0xff] }
  0x32   : > { %262 = vst [vmem:[%s3663_s27 + $0x1d0] sm:$0xff] %v261_v58  ;;  %264 = vst [vmem:[%s3663_s27 + $0x1d8] sm:$0xff] %v263_v59  ;;  %v267_v61 = vld [vmem:[%s3658_s26 + $0x5a8] sm:$0xff]  ;;  %v269_v62 = vld [vmem:[%s3658_s26 + $0x5b0] sm:$0xff] }
  0x33   : > { %266 = vst [vmem:[%s3663_s27 + $0x1e0] sm:$0xff] %v265_v60  ;;  %268 = vst [vmem:[%s3663_s27 + $0x1e8] sm:$0xff] %v267_v61  ;;  %v271_v63 = vld [vmem:[%s3658_s26 + $0x5e8] sm:$0xff]  ;;  %v273_v0 = vld [vmem:[%s3658_s26 + $0x5f0] sm:$0xff] }
  0x34   : > { %270 = vst [vmem:[%s3663_s27 + $0x1f0] sm:$0xff] %v269_v62  ;;  %v275_v1 = vld [vmem:[%s3658_s26 + $0x5f8] sm:$0xff]  ;;  %272 = vst [vmem:[%s3663_s27 + $0x1f8] sm:$0xff] %v271_v63  ;;  %v277_v2 = vld [vmem:[%s3658_s26 + $0x630] sm:$0xff] }
  0x35   : > { %274 = vst [vmem:[%s3663_s27 + $0x200] sm:$0xff] %v273_v0  ;;  %276 = vst [vmem:[%s3663_s27 + $0x208] sm:$0xff] %v275_v1  ;;  %v279_v3 = vld [vmem:[%s3658_s26 + $0x638] sm:$0xff]  ;;  %v281_v4 = vld [vmem:[%s3658_s26 + $0x640] sm:$0xff] }
  0x36   : > { %278 = vst [vmem:[%s3663_s27 + $0x210] sm:$0xff] %v277_v2  ;;  %280 = vst [vmem:[%s3663_s27 + $0x218] sm:$0xff] %v279_v3  ;;  %v283_v5 = vld [vmem:[%s3658_s26 + $0x678] sm:$0xff]  ;;  %v285_v6 = vld [vmem:[%s3658_s26 + $0x680] sm:$0xff] }
  0x37   : > { %282 = vst [vmem:[%s3663_s27 + $0x220] sm:$0xff] %v281_v4  ;;  %v287_v7 = vld [vmem:[%s3658_s26 + $0x688] sm:$0xff]  ;;  %284 = vst [vmem:[%s3663_s27 + $0x228] sm:$0xff] %v283_v5  ;;  %v289_v8 = vld [vmem:[%s3658_s26 + $0x6c0] sm:$0xff] }
  0x38   : > { %286 = vst [vmem:[%s3663_s27 + $0x230] sm:$0xff] %v285_v6  ;;  %288 = vst [vmem:[%s3663_s27 + $0x238] sm:$0xff] %v287_v7  ;;  %v291_v9 = vld [vmem:[%s3658_s26 + $0x6c8] sm:$0xff]  ;;  %v293_v10 = vld [vmem:[%s3658_s26 + $0x6d0] sm:$0xff] }
  0x39   : > { %290 = vst [vmem:[%s3663_s27 + $0x240] sm:$0xff] %v289_v8  ;;  %292 = vst [vmem:[%s3663_s27 + $0x248] sm:$0xff] %v291_v9  ;;  %v295_v11 = vld [vmem:[%s3658_s26 + $0x708] sm:$0xff]  ;;  %v297_v12 = vld [vmem:[%s3658_s26 + $0x710] sm:$0xff] }
  0x3a   : > { %294 = vst [vmem:[%s3663_s27 + $0x250] sm:$0xff] %v293_v10  ;;  %v299_v13 = vld [vmem:[%s3658_s26 + $0x718] sm:$0xff]  ;;  %296 = vst [vmem:[%s3663_s27 + $0x258] sm:$0xff] %v295_v11  ;;  %v301_v14 = vld [vmem:[%s3658_s26 + $0x750] sm:$0xff] }
  0x3b   : > { %298 = vst [vmem:[%s3663_s27 + $0x260] sm:$0xff] %v297_v12  ;;  %300 = vst [vmem:[%s3663_s27 + $0x268] sm:$0xff] %v299_v13  ;;  %v303_v15 = vld [vmem:[%s3658_s26 + $0x758] sm:$0xff]  ;;  %v305_v16 = vld [vmem:[%s3658_s26 + $0x760] sm:$0xff] }
  0x3c   : > { %302 = vst [vmem:[%s3663_s27 + $0x270] sm:$0xff] %v301_v14  ;;  %304 = vst [vmem:[%s3663_s27 + $0x278] sm:$0xff] %v303_v15  ;;  %v307_v17 = vld [vmem:[%s3658_s26 + $0x798] sm:$0xff]  ;;  %v309_v18 = vld [vmem:[%s3658_s26 + $0x7a0] sm:$0xff] }
  0x3d   : > { %306 = vst [vmem:[%s3663_s27 + $0x280] sm:$0xff] %v305_v16  ;;  %v311_v19 = vld [vmem:[%s3658_s26 + $0x7a8] sm:$0xff]  ;;  %308 = vst [vmem:[%s3663_s27 + $0x288] sm:$0xff] %v307_v17 }
  0x3e   : > { %310 = vst [vmem:[%s3663_s27 + $0x290] sm:$0xff] %v309_v18  ;;  %312 = vst [vmem:[%s3663_s27 + $0x298] sm:$0xff] %v311_v19 }
  0x3f PF: > { %318 = sbr.rel (!%p3636_p3) target bundleno = 71 (0x47), region = 43  ;;  %s320_s28 = sand.u32 (%p3636_p3), 1, %s3575_s10  }
  0x40   : > { %s3494_s29 = smul.u32 (%p3636_p3), 24, %s3583_s12 }
  0x41   : > { %s3497_s30 = smul.u32 (%p3636_p3), 48, %s320_s28 }
  0x42   : > { %s325_s5 = scalar_lea.vmem (%p3636_p3), %s6398_s1, %s3494_s29 }
  0x43   : > { %v338_v20 = vld [vmem:[%s325_s5] sm:$0xff] (%p3636_p3)  ;;  %v340_v21 = vld [vmem:[%s325_s5 + $0x8] sm:$0xff] (%p3636_p3)  ;;  %v342_v22 = vld [vmem:[%s325_s5 + $0x10] sm:$0xff] (%p3636_p3)  ;;  %s322_s6 = scalar_lea.vmem (%p3636_p3), [#allocation3], %s3497_s30 }
  0x44   : > { %339 = vst [vmem:[%s322_s6] sm:$0xff] %v338_v20  ;;  %341 = vst [vmem:[%s322_s6 + $0x8] sm:$0xff] %v340_v21  ;;  %v344_v23 = vld [vmem:[%s325_s5 + $0x48] sm:$0xff]  ;;  %v346_v24 = vld [vmem:[%s325_s5 + $0x50] sm:$0xff] }
  0x45   : > { %343 = vst [vmem:[%s322_s6 + $0x10] sm:$0xff] %v342_v22  ;;  %v348_v25 = vld [vmem:[%s325_s5 + $0x58] sm:$0xff]  ;;  %345 = vst [vmem:[%s322_s6 + $0x18] sm:$0xff] %v344_v23 }
  0x46   : > { %347 = vst [vmem:[%s322_s6 + $0x20] sm:$0xff] %v346_v24  ;;  %349 = vst [vmem:[%s322_s6 + $0x28] sm:$0xff] %v348_v25 }
  0x47 PF: > { %p3180_p8 = scmp.ge.s32.totalorder %s3587_s13, 1  ;;  %p354_p9 = scmp.lt.s32.totalorder %s3587_s13, 4 }
  0x49   : > { %p355_p10 = pnand %p3180_p8, %p354_p9 }
  0x4b   : > { %358 = sbr.rel (%p355_p10) target bundleno = 558 (0x22e), region = 66 }
  0x50   : > { %s361_s7 = sand.u32 1, %s3571_s9   ;;  %v414_v26 = vlaneseq  ;;  %vm546_vm0 = vcmask 1040384   ;;  %vm577_vm1 = vcmask 1046528   ;;  %vm593_vm2 = vcmask 1044480   ;;  %s3495_s18 = smul.u32 (%p3643_p6), 24, %s3579_s11 }
  0x51   : > { %s3840_s8 = smul.u32 672, %s361_s7 }
  0x52   : > { %s3499_s15 = smul.u32 48, %s361_s7  ;;  %v415_v27 = vshrl.u32 %v414_v26, 7  ;;  %s6218_s22 = scalar_lea.vmem (%p3643_p6), %s6399_s2, %s3495_s18 }
  0x53   : > { %s3854_s9 = scalar_lea.vmem [#allocation2], %s3840_s8  ;;  %s3978_s17 = scalar_lea.vmem [#allocation4], %s3840_s8 }
  0x54   : > { %v416_v28 = vsub.s32 3, %v415_v27  ;;  %s3842_s16 = scalar_lea.vmem [#allocation3], %s3499_s15  ;;  %v434_v32 = vsub.s32 6, %v415_v27  ;;  %v458_v33 = vsub.s32 4, %v415_v27  ;;  %v476_v34 = vsub.s32 7, %v415_v27  ;;  %v3857_v39 = vld [vmem:[%s3854_s9] sm:$0xff] }
  0x55   : > { %v395_v29 = vld [vmem:[%s3842_s16] sm:$0xff]  ;;  %v396_v30 = vld [vmem:[%s3842_s16 + $0x8] sm:$0xff]  ;;  %v397_v31 = vld [vmem:[%s3842_s16 + $0x10] sm:$0xff]  ;;  %v500_v38 = vsub.s32 5, %v415_v27  ;;  %v630_v63 = vsub.s32 0, %v415_v27  ;;  %v672_v3 = vsub.s32 1, %v415_v27 }
  0x56   : > { %v3847_v35 = vrot.slane %v395_v29, %v416_v28  ;;  %v3849_v36 = vrot.slane %v396_v30, %v416_v28  ;;  %v3851_v37 = vrot.slane %v397_v31, %v416_v28  ;;  %v3859_v40 = vrot.slane %v395_v29, %v434_v32  ;;  %v3868_v44 = vld [vmem:[%s3842_s16 + $0x18] ss:$0 sm:$0xff]  ;;  %v3871_v45 = vld [vmem:[%s3854_s9 + $0x30] sm:$0xff]  ;;  %v405_v28 = vld [vmem:[%s3854_s9 + $0x20] sm:$0x3f] }
  0x57   : > { %v3861_v41 = vrot.slane %v396_v30, %v434_v32  ;;  %v3863_v42 = vrot.slane %v397_v31, %v434_v32  ;;  %v3865_v43 = vrot.slane %v395_v29, %v458_v33  ;;  %v3875_v47 = vrot.slane %v396_v30, %v458_v33  ;;  %v3890_v54 = vld [vmem:[%s3854_s9 + $0x48] sm:$0x3f]  ;;  %v3901_v59 = vld [vmem:[%s3854_s9 + $0x18] sm:$0x3f]  ;;  %v3941_v21 = vld [vmem:[%s3842_s16 + $0x20] ss:$0 sm:$0xff] }
  0x58   : > { %v426_v46 = vmul.f32 %v3847_v35, %v3857_v39  ;;  %v3877_v48 = vrot.slane %v397_v31, %v458_v33  ;;  %v3879_v49 = vrot.slane %v395_v29, %v476_v34  ;;  %v444_v50 = vmul.f32 %v3871_v45, %v3859_v40  ;;  %v3927_v12 = vld [vmem:[%s3854_s9 + $0x8] sm:$0xff]  ;;  %v3935_v16 = vld [vmem:[%s3854_s9 + $0x38] sm:$0xff]  ;;  %v3185_v32 = vld [vmem:[%s3854_s9 + $0x50] sm:$0x3f] }
  0x59   : > { %v468_v51 = vmul.f32 %v3865_v43, %v3857_v39  ;;  %v3885_v52 = vrot.slane %v396_v30, %v476_v34  ;;  %v3887_v53 = vrot.slane %v397_v31, %v476_v34  ;;  %v3894_v56 = vrot.slane %v395_v29, %v500_v38 }
  0x5a   : > { %v486_v55 = vmul.f32 %v3871_v45, %v3879_v49  ;;  %v3896_v57 = vrot.slane %v396_v30, %v500_v38  ;;  %v3898_v58 = vrot.slane %v397_v31, %v500_v38  ;;  %v3903_v60 = vadd.f32 %v444_v50, %v426_v46  ;;  %v3967_v50 = vld [vmem:[%s3854_s9 + $0x10] sm:$0xff] }
  0x5b   : > { %v528_v61 = vmul.f32 %v3868_v44, %v3871_v45  ;;  %v531_v62 = vmul.f32 %v3868_v44, %v3890_v54  ;;  %v510_v1 = vmul.f32 %v3894_v56, %v3857_v39  ;;  %v513_v2 = vmul.f32 %v3894_v56, %v3901_v59 }
  0x5c   : > { %6487 = vst [vmem:[#allocation5_spill] sm:$0xff] %v3898_v58  ;;  %v492_v0 = vadd.f32 %v486_v55, %v468_v51  ;;  %v6401_v4 = vrot.slane %v3903_v60, 7  ;;  %v3914_v5 = vrot.slane %v395_v29, %v630_v63  ;;  %v3916_v6 = vrot.slane %v396_v30, %v630_v63  ;;  %v3970_v51 = vld [vmem:[%s3854_s9 + $0x40] sm:$0xff] }
  0x5d   : > { %v3918_v7 = vrot.slane %v397_v31, %v630_v63  ;;  %v534_v8 = vadd.f32 %v528_v61, %v510_v1  ;;  %v3920_v9 = vadd.f32 %v531_v62, %v513_v2  ;;  %v3922_v10 = vrot.slane %v395_v29, %v672_v3  ;;  %v3982_v2 = vld [vmem:[%s3842_s16 + $0x28] ss:$0 sm:$0xff] }
  0x5e   : > { %v3924_v11 = vrot.slane %v396_v30, %v672_v3  ;;  %v562_v13 = vsel %vm546_vm0, 0.0, %v6401_v4  ;;  %v3932_v14 = vrot.slane %v397_v31, %v672_v3  ;;  %v714_v15 = vsub.s32 2, %v415_v27  ;;  %6489 = vst [vmem:[#allocation7_spill] sm:$0xff] %v3982_v2  ;;  %v406_v3 = vld [vmem:[%s3854_s9 + $0x28] sm:$0x3f] }
  0x5f   : > { %v427_v17 = vmul.f32 %v3849_v36, %v3927_v12  ;;  %v565_v18 = vadd.f32 %v562_v13, %v492_v0  ;;  %v578_v19 = vrot.slane %v534_v8, 1  ;;  %v579_v20 = vrot.slane %v3920_v9, 1 }
  0x60   : > { %v445_v22 = vmul.f32 %v3935_v16, %v3861_v41  ;;  %v3945_v23 = vrot.slane %v395_v29, %v714_v15  ;;  %v3947_v24 = vrot.slane %v396_v30, %v714_v15  ;;  %v3949_v25 = vrot.slane %v397_v31, %v714_v15 }
  0x61   : > { %v469_v26 = vmul.f32 %v3875_v47, %v3927_v12  ;;  %v580_v27 = vsel %vm577_vm1, %v578_v19, %v579_v20  ;;  %v487_v34 = vmul.f32 %v3935_v16, %v3885_v52  ;;  %v511_v29 = vmul.f32 %v3896_v57, %v3927_v12 }
  0x62   : > { %6488 = vst [vmem:[#allocation6_spill] sm:$0xff] %v3949_v25  ;;  %v3956_v33 = vadd.f32 %v445_v22, %v427_v17  ;;  %v597_v30 = vadd.f32 %v580_v27, %v565_v18  ;;  %v514_v31 = vmul.f32 %v3896_v57, %v405_v28  ;;  %v529_v38 = vmul.f32 %v3941_v21, %v3935_v16  ;;  %v3186_v27 = vld [vmem:[%s3854_s9 + $0x58] sm:$0x3f] }
  0x63   : > { %v532_v46 = vmul.f32 %v3941_v21, %v3185_v32  ;;  %v493_v55 = vadd.f32 %v487_v34, %v469_v26  ;;  %v428_v62 = vmul.f32 %v3851_v37, %v3967_v50  ;;  %v446_v63 = vmul.f32 %v3970_v51, %v3863_v42 }
  0x64   : > { %v6400_v61 = vrot.slane %v3956_v33, 7  ;;  %603 = vst [vmem:[%s3978_s17] sm:$0xff] %v597_v30  ;;  %v535_v0 = vadd.f32 %v529_v38, %v511_v29  ;;  %v470_v8 = vmul.f32 %v3877_v48, %v3967_v50  ;;  %v488_v9 = vmul.f32 %v3970_v51, %v3887_v53 }
  0x65   : > { %v538_v1 = vadd.f32 %v532_v46, %v514_v31  ;;  %v3992_v15 = vadd.f32 %v446_v63, %v428_v62  ;;  %v512_v17 = vmul.f32 %v3898_v58, %v3967_v50  ;;  %v515_v18 = vmul.f32 %v3898_v58, %v406_v3 }
  0x66   : > { %v563_v13 = vsel %vm546_vm0, 0.0, %v6400_v61  ;;  %v581_v22 = vrot.slane %v535_v0, 1  ;;  %v494_v34 = vadd.f32 %v488_v9, %v470_v8  ;;  %v530_v29 = vmul.f32 %v3982_v2, %v3970_v51 }
  0x67   : > { %v566_v19 = vadd.f32 %v563_v13, %v493_v55  ;;  %v582_v26 = vrot.slane %v538_v1, 1  ;;  %v533_v30 = vmul.f32 %v3982_v2, %v3186_v27  ;;  %v549_v31 = vrot.slane %v3992_v15, 7 }
  0x68   : > { %v429_v38 = vmul.f32 %v3847_v35, %v3901_v59  ;;  %v447_v55 = vmul.f32 %v3890_v54, %v3859_v40  ;;  %v471_v62 = vmul.f32 %v3865_v43, %v3901_v59  ;;  %v489_v63 = vmul.f32 %v3890_v54, %v3879_v49 }
  0x69   : > { %v583_v46 = vsel %vm577_vm1, %v581_v22, %v582_v26  ;;  %v536_v1 = vadd.f32 %v530_v29, %v512_v17  ;;  %v539_v8 = vadd.f32 %v533_v30, %v515_v18  ;;  %v564_v9 = vsel %vm546_vm0, 0.0, %v549_v31 }
  0x6a   : > { %v598_v0 = vadd.f32 %v583_v46, %v566_v19  ;;  %v567_v13 = vadd.f32 %v564_v9, %v494_v34  ;;  %v453_v15 = vadd.f32 %v447_v55, %v429_v38  ;;  %v495_v61 = vadd.f32 %v489_v63, %v471_v62 }
  0x6b   : > { %v594_v4 = vsel %vm593_vm2, %v579_v20, 0.0  ;;  %v584_v22 = vrot.slane %v536_v1, 1  ;;  %v585_v2 = vrot.slane %v539_v8, 1  ;;  %v430_v58 = vmul.f32 %v3849_v36, %v405_v28 }
  0x6c   : > { %604 = vst [vmem:[%s3978_s17 + $0x8] sm:$0xff] %v598_v0  ;;  %v448_v59 = vmul.f32 %v3185_v32, %v3861_v41  ;;  %v550_v25 = vrot.slane %v453_v15, 7  ;;  %v472_v54 = vmul.f32 %v3875_v47, %v405_v28  ;;  %v490_v17 = vmul.f32 %v3185_v32, %v3885_v52 }
  0x6d   : > { %v595_v18 = vsel %vm593_vm2, %v582_v26, 0.0  ;;  %v586_v19 = vsel %vm577_vm1, %v584_v22, %v585_v2  ;;  %v431_v20 = vmul.f32 %v3851_v37, %v406_v3  ;;  %v449_v29 = vmul.f32 %v3186_v27, %v3863_v42 }
  0x6e   : > { %v454_v34 = vadd.f32 %v448_v59, %v430_v58  ;;  %v599_v30 = vadd.f32 %v586_v19, %v567_v13  ;;  %v6490_v38 = vrot.slane %v3903_v60, 7  ;;  %v496_v55 = vadd.f32 %v490_v17, %v472_v54  ;;  %v4028_v58 = vld [vmem:[%s3854_s9 + $0x60] sm:$0xff] }
  0x6f   : > { %v473_v28 = vmul.f32 %v3877_v48, %v406_v3  ;;  %v455_v63 = vadd.f32 %v449_v29, %v431_v20  ;;  %v491_v26 = vmul.f32 %v3186_v27, %v3887_v53  ;;  %v596_v0 = vsel %vm593_vm2, %v585_v2, 0.0  ;;  %v4042_v2 = vld [vmem:[%s3854_s9 + $0x18] sm:$0x3f]  ;;  %v4057_v20 = vld [vmem:[%s3854_s9 + $0x48] sm:$0x3f] }
  0x70   : > { %v551_v46 = vsel %vm546_vm0, %v6490_v38, %v550_v25  ;;  %v552_v32 = vrot.slane %v454_v34, 7  ;;  %605 = vst [vmem:[%s3978_s17 + $0x10] sm:$0xff] %v599_v30  ;;  %v640_v60 = vmul.f32 %v3914_v5, %v3857_v39  ;;  %v646_v25 = vmul.f32 %v3871_v45, %v3847_v35  ;;  %v4060_v29 = vld [vmem:[%s3854_s9 + $0x78] sm:$0x3f] }
  0x71   : > { %v568_v62 = vadd.f32 %v551_v46, %v495_v61  ;;  %v658_v3 = vmul.f32 %v4028_v58, %v3859_v40  ;;  %v6491_v1 = vrot.slane %v3956_v33, 7  ;;  %v497_v8 = vadd.f32 %v491_v26, %v473_v28 }
  0x72   : > { %v554_v9 = vrot.slane %v455_v63, 7  ;;  %v652_v15 = vadd.f32 %v646_v25, %v640_v60  ;;  %v682_v22 = vmul.f32 %v3922_v10, %v3857_v39  ;;  %v688_v59 = vmul.f32 %v3871_v45, %v3865_v43 }
  0x73   : > { %v600_v61 = vadd.f32 %v594_v4, %v568_v62  ;;  %v553_v27 = vsel %vm546_vm0, %v6491_v1, %v552_v32  ;;  %v700_v33 = vmul.f32 %v4028_v58, %v3879_v49  ;;  %v724_v54 = vmul.f32 %v3945_v23, %v3857_v39  ;;  %v4075_v32 = vld [vmem:[%s3854_s9 + $0x68] sm:$0xff] }
  0x74   : > { %v569_v13 = vadd.f32 %v553_v27, %v496_v55  ;;  %v555_v4 = vsel %vm546_vm0, %v549_v31, %v554_v9  ;;  %v727_v17 = vmul.f32 %v3945_v23, %v4042_v2  ;;  %v4062_v30 = vadd.f32 %v658_v3, %v652_v15  ;;  %v4096_v15 = vld [vmem:[%s3854_s9 + $0x20] sm:$0x3f] }
  0x75   : > { %606 = vst [vmem:[%s3978_s17 + $0x18] sm:$0x3f] %v600_v61  ;;  %v570_v34 = vadd.f32 %v555_v4, %v497_v8  ;;  %v694_v31 = vadd.f32 %v688_v59, %v682_v22  ;;  %v730_v38 = vmul.f32 %v3871_v45, %v3894_v56  ;;  %v733_v39 = vmul.f32 %v4057_v20, %v3894_v56  ;;  %v4099_v59 = vld [vmem:[%s3854_s9 + $0x50] sm:$0x3f] }
  0x76   : > { %v601_v19 = vadd.f32 %v595_v18, %v569_v13  ;;  %v742_v46 = vmul.f32 %v4028_v58, %v3868_v44  ;;  %v745_v18 = vmul.f32 %v4060_v29, %v3868_v44  ;;  %v6408_v62 = vrot.slane %v4062_v30, 7 }
  0x77   : > { %v602_v55 = vadd.f32 %v596_v0, %v570_v34  ;;  %v706_v28 = vadd.f32 %v700_v33, %v694_v31  ;;  %v641_v63 = vmul.f32 %v3916_v6, %v3927_v12  ;;  %v736_v26 = vadd.f32 %v730_v38, %v724_v54  ;;  %v4109_v31 = vld [vmem:[%s3854_s9 + $0x80] sm:$0x3f] }
  0x78   : > { %607 = vst [vmem:[%s3978_s17 + $0x20] sm:$0x3f] %v601_v19  ;;  %v739_v60 = vadd.f32 %v733_v39, %v727_v17  ;;  %v647_v25 = vmul.f32 %v3935_v16, %v3849_v36  ;;  %v659_v3 = vmul.f32 %v4075_v32, %v3861_v41  ;;  %v775_v0 = vsel %vm546_vm0, 0.0, %v6408_v62  ;;  %v6494_v62 = vld [vmem:[#allocation5_spill] sm:$0xff] }
  0x79   : > { %608 = vst [vmem:[%s3978_s17 + $0x28] sm:$0x3f] %v602_v55  ;;  %v683_v61 = vmul.f32 %v3924_v11, %v3927_v12  ;;  %v689_v1 = vmul.f32 %v3935_v16, %v3875_v47  ;;  %v701_v27 = vmul.f32 %v4075_v32, %v3885_v52  ;;  %v748_v8 = vadd.f32 %v742_v46, %v736_v26 }
  0x7a   : > { %v4093_v9 = vadd.f32 %v745_v18, %v739_v60  ;;  %v778_v13 = vadd.f32 %v775_v0, %v706_v28  ;;  %v653_v22 = vadd.f32 %v647_v25, %v641_v63  ;;  %v725_v33 = vmul.f32 %v3947_v24, %v3927_v12  ;;  %v4122_v60 = vld [vmem:[%s3854_s9 + $0x70] sm:$0xff] }
  0x7b   : > { %v695_v4 = vadd.f32 %v689_v1, %v683_v61  ;;  %v728_v54 = vmul.f32 %v3947_v24, %v4096_v15  ;;  %v731_v17 = vmul.f32 %v3935_v16, %v3896_v57  ;;  %v790_v19 = vrot.slane %v748_v8, 1  ;;  %6492 = vst [vmem:[#allocation8_spill] sm:$0xff] %v4122_v60 }
  0x7c   : > { %v791_v34 = vrot.slane %v4093_v9, 1  ;;  %v4111_v38 = vadd.f32 %v659_v3, %v653_v22  ;;  %v734_v39 = vmul.f32 %v4099_v59, %v3896_v57  ;;  %v743_v12 = vmul.f32 %v4075_v32, %v3941_v21 }
  0x7d   : > { %v707_v46 = vadd.f32 %v701_v27, %v695_v4  ;;  %v737_v18 = vadd.f32 %v731_v17, %v725_v33  ;;  %v746_v55 = vmul.f32 %v4109_v31, %v3941_v21  ;;  %v642_v25 = vmul.f32 %v3918_v7, %v3967_v50  ;;  %v614_v33 = vld [vmem:[%s3854_s9 + $0x28] sm:$0x3f] }
  0x7e   : > { %v792_v28 = vsel %vm577_vm1, %v790_v19, %v791_v34  ;;  %v740_v63 = vadd.f32 %v734_v39, %v728_v54  ;;  %v6407_v26 = vrot.slane %v4111_v38, 7  ;;  %v648_v61 = vmul.f32 %v3970_v51, %v3851_v37  ;;  %v3195_v39 = vld [vmem:[%s3854_s9 + $0x58] sm:$0x3f] }
  0x7f   : > { %v808_v3 = vadd.f32 %v792_v28, %v778_v13  ;;  %v749_v0 = vadd.f32 %v743_v12, %v737_v18  ;;  %v660_v1 = vmul.f32 %v4122_v60, %v3863_v42  ;;  %v684_v9 = vmul.f32 %v3932_v14, %v3967_v50  ;;  %v6493_v12 = vld [vmem:[#allocation6_spill] sm:$0xff] }
  0x80   : > { %v752_v27 = vadd.f32 %v746_v55, %v740_v63  ;;  %v776_v8 = vsel %vm546_vm0, 0.0, %v6407_v26  ;;  %v690_v22 = vmul.f32 %v3970_v51, %v3877_v48  ;;  %v654_v54 = vadd.f32 %v648_v61, %v642_v25  ;;  %v3201_v63 = vld [vmem:[%s3854_s9 + $0x88] sm:$0x3f] }
  0x81   : > { %3202 = vst [vmem:[%s3978_s17 + $0x30] sm:$0xff] %v808_v3  ;;  %v779_v13 = vadd.f32 %v776_v8, %v707_v46  ;;  %v793_v4 = vrot.slane %v749_v0, 1  ;;  %v702_v17 = vmul.f32 %v4122_v60, %v3887_v53  ;;  %v726_v55 = vmul.f32 %v6493_v12, %v3967_v50  ;;  %v6495_v3 = vld [vmem:[#allocation7_spill] sm:$0xff] }
  0x82   : > { %v794_v19 = vrot.slane %v752_v27, 1  ;;  %v696_v18 = vadd.f32 %v690_v22, %v684_v9  ;;  %v729_v28 = vmul.f32 %v6493_v12, %v614_v33  ;;  %v4146_v26 = vadd.f32 %v660_v1, %v654_v54 }
  0x83   : > { %v732_v46 = vmul.f32 %v3970_v51, %v6494_v62  ;;  %v735_v25 = vmul.f32 %v3195_v39, %v6494_v62  ;;  %v744_v0 = vmul.f32 %v4122_v60, %v6495_v3  ;;  %v747_v8 = vmul.f32 %v3201_v63, %v6495_v3 }
  0x84   : > { %v795_v61 = vsel %vm577_vm1, %v793_v4, %v794_v19  ;;  %v708_v27 = vadd.f32 %v702_v17, %v696_v18  ;;  %v643_v50 = vmul.f32 %v3914_v5, %v4042_v2  ;;  %v762_v54 = vrot.slane %v4146_v26, 7 }
  0x85   : > { %v809_v9 = vadd.f32 %v795_v61, %v779_v13  ;;  %v738_v1 = vadd.f32 %v732_v46, %v726_v55  ;;  %v741_v22 = vadd.f32 %v735_v25, %v729_v28  ;;  %v649_v12 = vmul.f32 %v4057_v20, %v3847_v35 }
  0x86   : > { %v661_v62 = vmul.f32 %v4060_v29, %v3859_v40  ;;  %v685_v4 = vmul.f32 %v3922_v10, %v4042_v2  ;;  %v691_v17 = vmul.f32 %v4057_v20, %v3865_v43  ;;  %v777_v13 = vsel %vm546_vm0, 0.0, %v762_v54 }
  0x87   : > { %3203 = vst [vmem:[%s3978_s17 + $0x38] sm:$0xff] %v809_v9  ;;  %v750_v18 = vadd.f32 %v744_v0, %v738_v1  ;;  %v753_v3 = vadd.f32 %v747_v8, %v741_v22  ;;  %v703_v55 = vmul.f32 %v4060_v29, %v3879_v49  ;;  %v780_v28 = vadd.f32 %v777_v13, %v708_v27 }
  0x88   : > { %v655_v46 = vadd.f32 %v649_v12, %v643_v50  ;;  %v697_v25 = vadd.f32 %v691_v17, %v685_v4  ;;  %v805_v61 = vsel %vm593_vm2, %v791_v34, 0.0  ;;  %v644_v20 = vmul.f32 %v3916_v6, %v4096_v15 }
  0x89   : > { %v796_v60 = vrot.slane %v750_v18, 1  ;;  %v797_v2 = vrot.slane %v753_v3, 1  ;;  %v650_v0 = vmul.f32 %v4099_v59, %v3849_v36  ;;  %v662_v1 = vmul.f32 %v4109_v31, %v3861_v41 }
  0x8a   : > { %v667_v8 = vadd.f32 %v661_v62, %v655_v46  ;;  %v709_v9 = vadd.f32 %v703_v55, %v697_v25  ;;  %v686_v29 = vmul.f32 %v3924_v11, %v4096_v15  ;;  %v692_v3 = vmul.f32 %v4099_v59, %v3875_v47 }
  0x8b   : > { %v798_v12 = vsel %vm577_vm1, %v796_v60, %v797_v2  ;;  %v656_v34 = vadd.f32 %v650_v0, %v644_v20  ;;  %v704_v27 = vmul.f32 %v4109_v31, %v3885_v52  ;;  %v806_v62 = vsel %vm593_vm2, %v794_v19, 0.0 }
  0x8c   : > { %v810_v50 = vadd.f32 %v798_v12, %v780_v28  ;;  %v763_v22 = vrot.slane %v667_v8, 7  ;;  %v645_v4 = vmul.f32 %v3918_v7, %v614_v33  ;;  %v698_v18 = vadd.f32 %v692_v3, %v686_v29 }
  0x8d   : > { %v668_v17 = vadd.f32 %v662_v1, %v656_v34  ;;  %v651_v15 = vmul.f32 %v3195_v39, %v3851_v37  ;;  %v663_v60 = vmul.f32 %v3201_v63, %v3863_v42  ;;  %v6496_v13 = vrot.slane %v4062_v30, 7  ;;  %v4199_v1 = vld [vmem:[%s3854_s9 + $0x90] sm:$0xff] }
  0x8e   : > { %3204 = vst [vmem:[%s3978_s17 + $0x40] sm:$0xff] %v810_v50  ;;  %v687_v31 = vmul.f32 %v3932_v14, %v614_v33  ;;  %v693_v55 = vmul.f32 %v3195_v39, %v3877_v48  ;;  %v705_v19 = vmul.f32 %v3201_v63, %v3887_v53  ;;  %v710_v46 = vadd.f32 %v704_v27, %v698_v18  ;;  %v4223_v18 = vld [vmem:[%s3854_s9 + $0x78] sm:$0x3f] }
  0x8f   : > { %v764_v59 = vsel %vm546_vm0, %v6496_v13, %v763_v22  ;;  %v765_v25 = vrot.slane %v668_v17, 7  ;;  %v657_v20 = vadd.f32 %v651_v15, %v645_v4  ;;  %v807_v8 = vsel %vm593_vm2, %v797_v2, 0.0  ;;  %v4214_v22 = vld [vmem:[%s3854_s9 + $0x48] sm:$0x3f] }
  0x90   : > { %v781_v28 = vadd.f32 %v764_v59, %v709_v9  ;;  %v699_v0 = vadd.f32 %v693_v55, %v687_v31  ;;  %v840_v30 = vmul.f32 %v3871_v45, %v3914_v5  ;;  %v846_v33 = vmul.f32 %v4028_v58, %v3847_v35  ;;  %v4235_v31 = vld [vmem:[%s3854_s9 + $0xa8] sm:$0x3f] }
  0x91   : > { %v6497_v63 = vrot.slane %v4111_v38, 7  ;;  %v669_v29 = vadd.f32 %v663_v60, %v657_v20  ;;  %v858_v12 = vmul.f32 %v4199_v1, %v3859_v40  ;;  %v870_v27 = vmul.f32 %v3871_v45, %v3922_v10  ;;  %v4246_v20 = vld [vmem:[%s3854_s9 + $0x98] sm:$0xff] }
  0x92   : > { %v811_v39 = vadd.f32 %v805_v61, %v781_v28  ;;  %v711_v2 = vadd.f32 %v705_v19, %v699_v0  ;;  %v852_v3 = vadd.f32 %v846_v33, %v840_v30  ;;  %v876_v38 = vmul.f32 %v4028_v58, %v3865_v43 }
  0x93   : > { %v766_v9 = vsel %vm546_vm0, %v6497_v63, %v765_v25  ;;  %v767_v50 = vrot.slane %v669_v29, 7  ;;  %v888_v61 = vmul.f32 %v4199_v1, %v3879_v49  ;;  %v900_v4 = vmul.f32 %v3871_v45, %v3945_v23 }
  0x94   : > { %v782_v34 = vadd.f32 %v766_v9, %v710_v46  ;;  %3205 = vst [vmem:[%s3978_s17 + $0x48] sm:$0x3f] %v811_v39  ;;  %v4225_v15 = vadd.f32 %v858_v12, %v852_v3  ;;  %v903_v60 = vmul.f32 %v4214_v22, %v3945_v23  ;;  %v906_v13 = vmul.f32 %v4028_v58, %v3894_v56 }
  0x95   : > { %v768_v59 = vsel %vm546_vm0, %v762_v54, %v767_v50  ;;  %v882_v55 = vadd.f32 %v876_v38, %v870_v27  ;;  %v909_v45 = vmul.f32 %v4223_v18, %v3894_v56  ;;  %v921_v46 = vmul.f32 %v4235_v31, %v3868_v44  ;;  %v4263_v27 = vld [vmem:[%s3854_s9 + $0x50] sm:$0x3f] }
  0x96   : > { %v812_v17 = vadd.f32 %v806_v62, %v782_v34  ;;  %v918_v62 = vmul.f32 %v4199_v1, %v3868_v44  ;;  %v783_v19 = vadd.f32 %v768_v59, %v711_v2  ;;  %v912_v28 = vadd.f32 %v906_v13, %v900_v4  ;;  %v4273_v4 = vld [vmem:[%s3854_s9 + $0x80] sm:$0x3f] }
  0x97   : > { %v6415_v26 = vrot.slane %v4225_v15, 7  ;;  %v894_v54 = vadd.f32 %v888_v61, %v882_v55  ;;  %v915_v25 = vadd.f32 %v909_v45, %v903_v60  ;;  %v841_v0 = vmul.f32 %v3935_v16, %v3916_v6 }
  0x98   : > { %3206 = vst [vmem:[%s3978_s17 + $0x50] sm:$0x3f] %v812_v17  ;;  %v847_v30 = vmul.f32 %v4075_v32, %v3849_v36  ;;  %v813_v33 = vadd.f32 %v807_v8, %v783_v19  ;;  %v924_v39 = vadd.f32 %v918_v62, %v912_v28  ;;  %v859_v9 = vmul.f32 %v4246_v20, %v3861_v41  ;;  %v4276_v17 = vld [vmem:[%s3854_s9 + $0xb0] sm:$0x3f] }
  0x99   : > { %v951_v63 = vsel %vm546_vm0, 0.0, %v6415_v26  ;;  %v4257_v29 = vadd.f32 %v921_v46, %v915_v25  ;;  %v871_v2 = vmul.f32 %v3935_v16, %v3924_v11  ;;  %v877_v8 = vmul.f32 %v4075_v32, %v3875_v47 }
  0x9a   : > { %v954_v12 = vadd.f32 %v951_v63, %v894_v54  ;;  %v853_v34 = vadd.f32 %v847_v30, %v841_v0  ;;  %3207 = vst [vmem:[%s3978_s17 + $0x58] sm:$0x3f] %v813_v33  ;;  %v966_v3 = vrot.slane %v924_v39, 1  ;;  %v889_v50 = vmul.f32 %v4246_v20, %v3885_v52  ;;  %v4295_v33 = vld [vmem:[%s3854_s9 + $0xa0] sm:$0xff]  ;;  %v6499_v39 = vld [vmem:[#allocation8_spill] sm:$0xff] }
  0x9b   : > { %v901_v38 = vmul.f32 %v3935_v16, %v3947_v24  ;;  %v967_v61 = vrot.slane %v4257_v29, 1  ;;  %v904_v13 = vmul.f32 %v4263_v27, %v3947_v24  ;;  %v907_v59 = vmul.f32 %v4075_v32, %v3896_v57  ;;  %6498 = vst [vmem:[#allocation9_spill] sm:$0xff] %v4295_v33 }
  0x9c   : > { %v4278_v60 = vadd.f32 %v859_v9, %v853_v34  ;;  %v883_v55 = vadd.f32 %v877_v8, %v871_v2  ;;  %v910_v45 = vmul.f32 %v4273_v4, %v3896_v57  ;;  %v919_v16 = vmul.f32 %v4246_v20, %v3941_v21  ;;  %v3213_v8 = vld [vmem:[%s3854_s9 + $0x58] sm:$0x3f] }
  0x9d   : > { %v922_v62 = vmul.f32 %v4276_v17, %v3941_v21  ;;  %v968_v19 = vsel %vm577_vm1, %v966_v3, %v967_v61  ;;  %v913_v28 = vadd.f32 %v907_v59, %v901_v38  ;;  %v842_v54 = vmul.f32 %v3970_v51, %v3918_v7 }
  0x9e   : > { %v6414_v46 = vrot.slane %v4278_v60, 7  ;;  %v984_v25 = vadd.f32 %v968_v19, %v954_v12  ;;  %v895_v0 = vadd.f32 %v889_v50, %v883_v55  ;;  %v916_v30 = vadd.f32 %v910_v45, %v904_v13  ;;  %v6500_v55 = vld [vmem:[#allocation6_spill] sm:$0xff] }
  0x9f   : > { %v848_v63 = vmul.f32 %v6499_v39, %v3851_v37  ;;  %v925_v9 = vadd.f32 %v919_v16, %v913_v28  ;;  %v860_v34 = vmul.f32 %v4295_v33, %v3863_v42  ;;  %v872_v12 = vmul.f32 %v3970_v51, %v3932_v14  ;;  %v3219_v28 = vld [vmem:[%s3854_s9 + $0x88] sm:$0x3f] }
  0xa0   : > { %v952_v29 = vsel %vm546_vm0, 0.0, %v6414_v46  ;;  %3226 = vst [vmem:[%s3978_s17 + $0x60] sm:$0xff] %v984_v25  ;;  %v928_v2 = vadd.f32 %v922_v62, %v916_v30  ;;  %v878_v38 = vmul.f32 %v6499_v39, %v3877_v48  ;;  %v890_v59 = vmul.f32 %v4295_v33, %v3887_v53  ;;  %v3225_v46 = vld [vmem:[%s3854_s9 + $0xb8] sm:$0x3f] }
  0xa1   : > { %v955_v3 = vadd.f32 %v952_v29, %v895_v0  ;;  %v854_v50 = vadd.f32 %v848_v63, %v842_v54  ;;  %v969_v13 = vrot.slane %v925_v9, 1  ;;  %v902_v45 = vmul.f32 %v3970_v51, %v6500_v55  ;;  %v6501_v0 = vld [vmem:[#allocation5_spill] sm:$0xff]  ;;  %v6502_v63 = vld [vmem:[#allocation7_spill] sm:$0xff] }
  0xa2   : > { %v905_v16 = vmul.f32 %v3213_v8, %v6500_v55  ;;  %v970_v19 = vrot.slane %v928_v2, 1  ;;  %v884_v62 = vadd.f32 %v878_v38, %v872_v12  ;;  %v908_v54 = vmul.f32 %v6499_v39, %v6501_v0 }
  0xa3   : > { %v4317_v25 = vadd.f32 %v860_v34, %v854_v50  ;;  %v911_v30 = vmul.f32 %v3219_v28, %v6501_v0  ;;  %v920_v9 = vmul.f32 %v4295_v33, %v6502_v63  ;;  %v923_v29 = vmul.f32 %v3225_v46, %v6502_v63 }
  0xa4   : > { %v843_v51 = vmul.f32 %v4214_v22, %v3914_v5  ;;  %v971_v2 = vsel %vm577_vm1, %v969_v13, %v970_v19  ;;  %v896_v26 = vadd.f32 %v890_v59, %v884_v62  ;;  %v914_v34 = vadd.f32 %v908_v54, %v902_v45 }
  0xa5   : > { %v6421_v12 = vrot.slane %v4317_v25, 7  ;;  %v985_v50 = vadd.f32 %v971_v2, %v955_v3  ;;  %v917_v38 = vadd.f32 %v911_v30, %v905_v16  ;;  %v849_v0 = vmul.f32 %v4223_v18, %v3847_v35 }
  0xa6   : > { %v861_v55 = vmul.f32 %v4235_v31, %v3859_v40  ;;  %v926_v33 = vadd.f32 %v920_v9, %v914_v34  ;;  %v873_v13 = vmul.f32 %v4214_v22, %v3922_v10  ;;  %v879_v59 = vmul.f32 %v4223_v18, %v3865_v43 }
  0xa7   : > { %v953_v63 = vsel %vm546_vm0, 0.0, %v6421_v12  ;;  %3227 = vst [vmem:[%s3978_s17 + $0x68] sm:$0xff] %v985_v50  ;;  %v929_v3 = vadd.f32 %v923_v29, %v917_v38  ;;  %v855_v16 = vadd.f32 %v849_v0, %v843_v51  ;;  %v891_v62 = vmul.f32 %v4235_v31, %v3879_v49 }
  0xa8   : > { %v956_v45 = vadd.f32 %v953_v63, %v896_v26  ;;  %v972_v54 = vrot.slane %v926_v33, 1  ;;  %v885_v30 = vadd.f32 %v879_v59, %v873_v13  ;;  %v981_v9 = vsel %vm593_vm2, %v967_v61, 0.0 }
  0xa9   : > { %v844_v2 = vmul.f32 %v4263_v27, %v3916_v6  ;;  %v973_v34 = vrot.slane %v929_v3, 1  ;;  %v867_v12 = vadd.f32 %v861_v55, %v855_v16  ;;  %v850_v22 = vmul.f32 %v4273_v4, %v3849_v36 }
  0xaa   : > { %v862_v18 = vmul.f32 %v4276_v17, %v3861_v41  ;;  %v897_v26 = vadd.f32 %v891_v62, %v885_v30  ;;  %v874_v31 = vmul.f32 %v4263_v27, %v3924_v11  ;;  %v880_v33 = vmul.f32 %v4273_v4, %v3875_v47 }
  0xab   : > { %v892_v61 = vmul.f32 %v4276_v17, %v3885_v52  ;;  %v974_v0 = vsel %vm577_vm1, %v972_v54, %v973_v34  ;;  %v939_v55 = vrot.slane %v867_v12, 7  ;;  %v856_v63 = vadd.f32 %v850_v22, %v844_v2 }
  0xac   : > { %v982_v29 = vsel %vm593_vm2, %v970_v19, 0.0  ;;  %v986_v51 = vadd.f32 %v974_v0, %v956_v45  ;;  %v886_v50 = vadd.f32 %v880_v33, %v874_v31  ;;  %v845_v38 = vmul.f32 %v3213_v8, %v3918_v7 }
  0xad   : > { %v851_v13 = vmul.f32 %v3219_v28, %v3851_v37  ;;  %v6503_v27 = vrot.slane %v4225_v15, 7  ;;  %v868_v4 = vadd.f32 %v862_v18, %v856_v63  ;;  %v863_v17 = vmul.f32 %v3225_v46, %v3863_v42 }
  0xae   : > { %v875_v3 = vmul.f32 %v3213_v8, %v3932_v14  ;;  %3228 = vst [vmem:[%s3978_s17 + $0x70] sm:$0xff] %v986_v51  ;;  %v898_v16 = vadd.f32 %v892_v61, %v886_v50  ;;  %v881_v45 = vmul.f32 %v3219_v28, %v3877_v48  ;;  %v893_v54 = vmul.f32 %v3225_v46, %v3887_v53  ;;  %v4372_v8 = vld [vmem:[%s3854_s9 + $0xc0] sm:$0xff] }
  0xaf   : > { %v940_v59 = vsel %vm546_vm0, %v6503_v27, %v939_v55  ;;  %v857_v19 = vadd.f32 %v851_v13, %v845_v38  ;;  %v941_v62 = vrot.slane %v868_v4, 7  ;;  %v983_v15 = vsel %vm593_vm2, %v973_v34, 0.0  ;;  %v4387_v55 = vld [vmem:[%s3854_s9 + $0x78] sm:$0x3f]  ;;  %v4399_v4 = vld [vmem:[%s3854_s9 + $0xa8] sm:$0x3f] }
  0xb0   : > { %v957_v12 = vadd.f32 %v940_v59, %v897_v26  ;;  %v1016_v30 = vmul.f32 %v4028_v58, %v3914_v5  ;;  %v887_v18 = vadd.f32 %v881_v45, %v875_v3  ;;  %v1022_v26 = vmul.f32 %v4199_v1, %v3847_v35 }
  0xb1   : > { %v869_v22 = vadd.f32 %v863_v17, %v857_v19  ;;  %v6504_v31 = vrot.slane %v4278_v60, 7  ;;  %v1034_v46 = vmul.f32 %v4372_v8, %v3859_v40  ;;  %v1046_v34 = vmul.f32 %v4028_v58, %v3922_v10 }
  0xb2   : > { %v987_v2 = vadd.f32 %v981_v9, %v957_v12  ;;  %v1052_v9 = vmul.f32 %v4199_v1, %v3865_v43  ;;  %v899_v61 = vadd.f32 %v893_v54, %v887_v18  ;;  %v1028_v60 = vadd.f32 %v1022_v26, %v1016_v30  ;;  %v4417_v54 = vld [vmem:[%s3854_s9 + $0xc8] sm:$0xff] }
  0xb3   : > { %v942_v28 = vsel %vm546_vm0, %v6504_v31, %v941_v62  ;;  %v943_v0 = vrot.slane %v869_v22, 7  ;;  %v1064_v51 = vmul.f32 %v4372_v8, %v3879_v49  ;;  %v1076_v50 = vmul.f32 %v4028_v58, %v3945_v23 }
  0xb4   : > { %3229 = vst [vmem:[%s3978_s17 + $0x78] sm:$0x3f] %v987_v2  ;;  %v958_v33 = vadd.f32 %v942_v28, %v898_v16  ;;  %v1058_v63 = vadd.f32 %v1052_v9, %v1046_v34  ;;  %v1079_v38 = vmul.f32 %v4387_v55, %v3945_v23  ;;  %v6505_v27 = vrot.slane %v4317_v25, 7  ;;  %v4406_v16 = vld [vmem:[%s3854_s9 + $0xd8] sm:$0x3f] }
  0xb5   : > { %v4401_v17 = vadd.f32 %v1034_v46, %v1028_v60  ;;  %v1082_v3 = vmul.f32 %v4199_v1, %v3894_v56  ;;  %v1085_v19 = vmul.f32 %v4399_v4, %v3894_v56  ;;  %v1094_v25 = vmul.f32 %v4372_v8, %v3868_v44  ;;  %v4436_v9 = vld [vmem:[%s3854_s9 + $0x80] sm:$0x3f]  ;;  %v4441_v60 = vld [vmem:[%s3854_s9 + $0xb0] sm:$0x3f] }
  0xb6   : > { %v988_v13 = vadd.f32 %v982_v29, %v958_v33  ;;  %v944_v59 = vsel %vm546_vm0, %v6505_v27, %v943_v0  ;;  %v1070_v58 = vadd.f32 %v1064_v51, %v1058_v63  ;;  %v1097_v45 = vmul.f32 %v4406_v16, %v3868_v44 }
  0xb7   : > { %v959_v12 = vadd.f32 %v944_v59, %v899_v61  ;;  %v1088_v29 = vadd.f32 %v1082_v3, %v1076_v50  ;;  %v6423_v62 = vrot.slane %v4401_v17, 7  ;;  %v1017_v30 = vmul.f32 %v4075_v32, %v3916_v6 }
  0xb8   : > { %3230 = vst [vmem:[%s3978_s17 + $0x80] sm:$0x3f] %v988_v13  ;;  %v1091_v22 = vadd.f32 %v1085_v19, %v1079_v38  ;;  %v1023_v18 = vmul.f32 %v4246_v20, %v3849_v36  ;;  %v1035_v26 = vmul.f32 %v4417_v54, %v3861_v41  ;;  %v1047_v28 = vmul.f32 %v4075_v32, %v3924_v11  ;;  %v4449_v13 = vld [vmem:[%s3854_s9 + $0xe0] sm:$0x3f] }
  0xb9   : > { %v989_v2 = vadd.f32 %v983_v15, %v959_v12  ;;  %v1100_v31 = vadd.f32 %v1094_v25, %v1088_v29  ;;  %v1127_v44 = vsel %vm546_vm0, 0.0, %v6423_v62  ;;  %v1053_v46 = vmul.f32 %v4246_v20, %v3875_v47 }
  0xba   : > { %v4433_v15 = vadd.f32 %v1097_v45, %v1091_v22  ;;  %v1130_v34 = vadd.f32 %v1127_v44, %v1070_v58  ;;  %v1029_v33 = vadd.f32 %v1023_v18, %v1017_v30  ;;  %v1065_v61 = vmul.f32 %v4417_v54, %v3885_v52  ;;  %v6506_v18 = vld [vmem:[#allocation9_spill] sm:$0xff] }
  0xbb   : > { %3231 = vst [vmem:[%s3978_s17 + $0x88] sm:$0x3f] %v989_v2  ;;  %v1142_v0 = vrot.slane %v1100_v31, 1  ;;  %v1059_v63 = vadd.f32 %v1053_v46, %v1047_v28  ;;  %v1077_v51 = vmul.f32 %v4075_v32, %v3947_v24  ;;  %v1080_v50 = vmul.f32 %v4436_v9, %v3947_v24  ;;  %v4466_v2 = vld [vmem:[%s3854_s9 + $0xd0] sm:$0xff] }
  0xbc   : > { %v1143_v38 = vrot.slane %v4433_v15, 1  ;;  %v4451_v27 = vadd.f32 %v1035_v26, %v1029_v33  ;;  %v1083_v59 = vmul.f32 %v4246_v20, %v3896_v57  ;;  %v1086_v3 = vmul.f32 %v4441_v60, %v3896_v57  ;;  %v3237_v33 = vld [vmem:[%s3854_s9 + $0x88] sm:$0x3f] }
  0xbd   : > { %v1071_v12 = vadd.f32 %v1065_v61, %v1059_v63  ;;  %v1095_v58 = vmul.f32 %v4417_v54, %v3941_v21  ;;  %v1098_v32 = vmul.f32 %v4449_v13, %v3941_v21  ;;  %v1018_v19 = vmul.f32 %v6499_v39, %v3918_v7  ;;  %v6507_v63 = vld [vmem:[#allocation6_spill] sm:$0xff] }
  0xbe   : > { %v1144_v25 = vsel %vm577_vm1, %v1142_v0, %v1143_v38  ;;  %v1089_v29 = vadd.f32 %v1083_v59, %v1077_v51  ;;  %v1092_v45 = vadd.f32 %v1086_v3, %v1080_v50  ;;  %v6422_v30 = vrot.slane %v4451_v27, 7  ;;  %v3243_v3 = vld [vmem:[%s3854_s9 + $0xb8] sm:$0x3f] }
  0xbf   : > { %v1160_v22 = vadd.f32 %v1144_v25, %v1130_v34  ;;  %v1024_v26 = vmul.f32 %v6506_v18, %v3851_v37  ;;  %v1036_v21 = vmul.f32 %v4466_v2, %v3863_v42  ;;  %v1048_v31 = vmul.f32 %v6499_v39, %v3932_v14  ;;  %v3249_v25 = vld [vmem:[%s3854_s9 + $0xe8] sm:$0x3f] }
  0xc0   : > { %v1101_v44 = vadd.f32 %v1095_v58, %v1089_v29  ;;  %v1104_v28 = vadd.f32 %v1098_v32, %v1092_v45  ;;  %v1128_v46 = vsel %vm546_vm0, 0.0, %v6422_v30  ;;  %v1054_v15 = vmul.f32 %v6506_v18, %v3877_v48  ;;  %v6508_v45 = vld [vmem:[#allocation5_spill] sm:$0xff] }
  0xc1   : > { %3250 = vst [vmem:[%s3978_s17 + $0x90] sm:$0xff] %v1160_v22  ;;  %v1131_v34 = vadd.f32 %v1128_v46, %v1071_v12  ;;  %v1030_v61 = vadd.f32 %v1024_v26, %v1018_v19  ;;  %v1066_v0 = vmul.f32 %v4466_v2, %v3887_v53  ;;  %v1078_v51 = vmul.f32 %v6499_v39, %v6507_v63  ;;  %v6509_v22 = vld [vmem:[#allocation7_spill] sm:$0xff] }
  0xc2   : > { %v1145_v50 = vrot.slane %v1101_v44, 1  ;;  %v1146_v59 = vrot.slane %v1104_v28, 1  ;;  %v1060_v58 = vadd.f32 %v1054_v15, %v1048_v31  ;;  %v1081_v32 = vmul.f32 %v3237_v33, %v6507_v63 }
  0xc3   : > { %v4488_v29 = vadd.f32 %v1036_v21, %v1030_v61  ;;  %v1084_v12 = vmul.f32 %v6506_v18, %v6508_v45  ;;  %v1087_v19 = vmul.f32 %v3243_v3, %v6508_v45  ;;  %v1096_v26 = vmul.f32 %v4466_v2, %v6509_v22 }
  0xc4   : > { %v1147_v39 = vsel %vm577_vm1, %v1145_v50, %v1146_v59  ;;  %v1072_v44 = vadd.f32 %v1066_v0, %v1060_v58  ;;  %v1099_v28 = vmul.f32 %v3249_v25, %v6509_v22  ;;  %v1019_v31 = vmul.f32 %v4387_v55, %v3914_v5 }
  0xc5   : > { %v1161_v46 = vadd.f32 %v1147_v39, %v1131_v34  ;;  %v1090_v21 = vadd.f32 %v1084_v12, %v1078_v51  ;;  %v1093_v15 = vadd.f32 %v1087_v19, %v1081_v32  ;;  %v1114_v61 = vrot.slane %v4488_v29, 7 }
  0xc6   : > { %v1025_v30 = vmul.f32 %v4399_v4, %v3847_v35  ;;  %v1037_v62 = vmul.f32 %v4406_v16, %v3859_v40  ;;  %v1049_v50 = vmul.f32 %v4387_v55, %v3922_v10  ;;  %v1055_v0 = vmul.f32 %v4399_v4, %v3865_v43 }
  0xc7   : > { %3251 = vst [vmem:[%s3978_s17 + $0x98] sm:$0xff] %v1161_v46  ;;  %v1102_v58 = vadd.f32 %v1096_v26, %v1090_v21  ;;  %v1105_v22 = vadd.f32 %v1099_v28, %v1093_v15  ;;  %v1129_v34 = vsel %vm546_vm0, 0.0, %v1114_v61  ;;  %v1067_v51 = vmul.f32 %v4406_v16, %v3879_v49 }
  0xc8   : > { %v1132_v32 = vadd.f32 %v1129_v34, %v1072_v44  ;;  %v1031_v12 = vadd.f32 %v1025_v30, %v1019_v31  ;;  %v1061_v19 = vadd.f32 %v1055_v0, %v1049_v50  ;;  %v1157_v39 = vsel %vm593_vm2, %v1143_v38, 0.0 }
  0xc9   : > { %v1148_v45 = vrot.slane %v1102_v58, 1  ;;  %v1149_v55 = vrot.slane %v1105_v22, 1  ;;  %v1020_v4 = vmul.f32 %v4436_v9, %v3916_v6  ;;  %v1026_v26 = vmul.f32 %v4441_v60, %v3849_v36 }
  0xca   : > { %v1043_v28 = vadd.f32 %v1037_v62, %v1031_v12  ;;  %v1073_v46 = vadd.f32 %v1067_v51, %v1061_v19  ;;  %v1038_v21 = vmul.f32 %v4449_v13, %v3861_v41  ;;  %v1050_v16 = vmul.f32 %v4436_v9, %v3924_v11 }
  0xcb   : > { %v1150_v30 = vsel %vm577_vm1, %v1148_v45, %v1149_v55  ;;  %v1032_v38 = vadd.f32 %v1026_v26, %v1020_v4  ;;  %v1056_v44 = vmul.f32 %v4441_v60, %v3875_v47  ;;  %v1068_v31 = vmul.f32 %v4449_v13, %v3885_v52 }
  0xcc   : > { %v1162_v15 = vadd.f32 %v1150_v30, %v1132_v32  ;;  %v1115_v50 = vrot.slane %v1043_v28, 7  ;;  %v1158_v62 = vsel %vm593_vm2, %v1146_v59, 0.0  ;;  %v1021_v0 = vmul.f32 %v3237_v33, %v3918_v7 }
  0xcd   : > { %v1044_v58 = vadd.f32 %v1038_v21, %v1032_v38  ;;  %v1062_v22 = vadd.f32 %v1056_v44, %v1050_v16  ;;  %v1027_v9 = vmul.f32 %v3243_v3, %v3851_v37  ;;  %v1039_v45 = vmul.f32 %v3249_v25, %v3863_v42  ;;  %v4541_v21 = vld [vmem:[%s3854_s9 + $0xf0] sm:$0xff] }
  0xce   : > { %3252 = vst [vmem:[%s3978_s17 + $0xa0] sm:$0xff] %v1162_v15  ;;  %v6510_v34 = vrot.slane %v4401_v17, 7  ;;  %v1051_v13 = vmul.f32 %v3237_v33, %v3932_v14  ;;  %v1057_v51 = vmul.f32 %v3243_v3, %v3877_v48  ;;  %v1069_v59 = vmul.f32 %v3249_v25, %v3887_v53 }
  0xcf   : > { %v1074_v12 = vadd.f32 %v1068_v31, %v1062_v22  ;;  %v1117_v19 = vrot.slane %v1044_v58, 7  ;;  %v1033_v4 = vadd.f32 %v1027_v9, %v1021_v0  ;;  %v1159_v28 = vsel %vm593_vm2, %v1149_v55, 0.0  ;;  %v4565_v22 = vld [vmem:[%s3854_s9 + $0xd8] sm:$0x3f] }
  0xd0   : > { %v1116_v60 = vsel %vm546_vm0, %v6510_v34, %v1115_v50  ;;  %v1063_v26 = vadd.f32 %v1057_v51, %v1051_v13  ;;  %v1192_v17 = vmul.f32 %v4199_v1, %v3914_v5  ;;  %v1198_v33 = vmul.f32 %v4372_v8, %v3847_v35  ;;  %v4577_v13 = vld [vmem:[%s3854_s9 + $0x108] sm:$0x3f] }
  0xd1   : > { %v1133_v32 = vadd.f32 %v1116_v60, %v1073_v46  ;;  %v6511_v25 = vrot.slane %v4451_v27, 7  ;;  %v1045_v16 = vadd.f32 %v1039_v45, %v1033_v4  ;;  %v1210_v30 = vmul.f32 %v4541_v21, %v3859_v40 }
  0xd2   : > { %v1075_v55 = vadd.f32 %v1069_v59, %v1063_v26  ;;  %v1204_v44 = vadd.f32 %v1198_v33, %v1192_v17  ;;  %v1222_v31 = vmul.f32 %v4199_v1, %v3922_v10  ;;  %v1228_v27 = vmul.f32 %v4372_v8, %v3865_v43  ;;  %v4591_v26 = vld [vmem:[%s3854_s9 + $0xf8] sm:$0xff] }
  0xd3   : > { %v1163_v3 = vadd.f32 %v1157_v39, %v1133_v32  ;;  %v1118_v46 = vsel %vm546_vm0, %v6511_v25, %v1117_v19  ;;  %v1119_v15 = vrot.slane %v1045_v16, 7  ;;  %v4556_v39 = vld [vmem:[%s3854_s9 + $0xa8] sm:$0x3f]  ;;  %v1240_v50 = vmul.f32 %v4541_v21, %v3879_v49 }
  0xd4   : > { %v1134_v38 = vadd.f32 %v1118_v46, %v1074_v12  ;;  %v1252_v0 = vmul.f32 %v4199_v1, %v3945_v23  ;;  %v4567_v9 = vadd.f32 %v1210_v30, %v1204_v44  ;;  %v1255_v45 = vmul.f32 %v4556_v39, %v3945_v23 }
  0xd5   : > { %3253 = vst [vmem:[%s3978_s17 + $0xa8] sm:$0x3f] %v1163_v3  ;;  %v1258_v34 = vmul.f32 %v4372_v8, %v3894_v56  ;;  %v1120_v60 = vsel %vm546_vm0, %v1114_v61, %v1119_v15  ;;  %v1234_v51 = vadd.f32 %v1228_v27, %v1222_v31  ;;  %v1261_v1 = vmul.f32 %v4565_v22, %v3894_v56 }
  0xd6   : > { %v1164_v58 = vadd.f32 %v1158_v62, %v1134_v38  ;;  %v4582_v62 = vld [vmem:[%s3842_s16 + $0x18] ss:$0 sm:$0xff]  ;;  %v1135_v32 = vadd.f32 %v1120_v60, %v1075_v55  ;;  %v6426_v61 = vrot.slane %v4567_v9, 7  ;;  %v1193_v17 = vmul.f32 %v4246_v20, %v3916_v6 }
  0xd7   : > { %v1270_v59 = vmul.f32 %v4582_v62, %v4541_v21  ;;  %v1264_v12 = vadd.f32 %v1258_v34, %v1252_v0  ;;  %v1273_v29 = vmul.f32 %v4582_v62, %v4577_v13  ;;  %v1246_v19 = vadd.f32 %v1240_v50, %v1234_v51 }
  0xd8   : > { %3254 = vst [vmem:[%s3978_s17 + $0xb0] sm:$0x3f] %v1164_v58  ;;  %v1267_v4 = vadd.f32 %v1261_v1, %v1255_v45  ;;  %v1199_v33 = vmul.f32 %v4417_v54, %v3849_v36  ;;  %v1165_v3 = vadd.f32 %v1159_v28, %v1135_v32  ;;  %v1303_v46 = vsel %vm546_vm0, 0.0, %v6426_v61  ;;  %v4608_v28 = vld [vmem:[%s3854_s9 + $0xb0] sm:$0x3f] }
  0xd9   : > { %v1276_v25 = vadd.f32 %v1270_v59, %v1264_v12  ;;  %v1211_v16 = vmul.f32 %v4591_v26, %v3861_v41  ;;  %v1306_v38 = vadd.f32 %v1303_v46, %v1246_v19  ;;  %v1223_v44 = vmul.f32 %v4246_v20, %v3924_v11  ;;  %v4618_v58 = vld [vmem:[%s3854_s9 + $0xe0] sm:$0x3f]  ;;  %v4621_v45 = vld [vmem:[%s3854_s9 + $0x110] sm:$0x3f] }
  0xda   : > { %v4602_v30 = vadd.f32 %v1273_v29, %v1267_v4  ;;  %v1205_v55 = vadd.f32 %v1199_v33, %v1193_v17  ;;  %3255 = vst [vmem:[%s3978_s17 + $0xb8] sm:$0x3f] %v1165_v3  ;;  %v1229_v15 = vmul.f32 %v4417_v54, %v3875_v47  ;;  %v1241_v27 = vmul.f32 %v4591_v26, %v3885_v52  ;;  %v4645_v46 = vld [vmem:[%s3854_s9 + $0x100] sm:$0xff] }
  0xdb   : > { %v1318_v31 = vrot.slane %v1276_v25, 1  ;;  %v1253_v50 = vmul.f32 %v4246_v20, %v3947_v24  ;;  %v1256_v60 = vmul.f32 %v4608_v28, %v3947_v24  ;;  %v1259_v51 = vmul.f32 %v4417_v54, %v3896_v57  ;;  %v4632_v20 = vld [vmem:[%s3842_s16 + $0x20] ss:$0 sm:$0xff]  ;;  %6512 = vst [vmem:[#allocation8_spill] sm:$0xff] %v4645_v46 }
  0xdc   : > { %v6427_v0 = vrot.slane %v4602_v30, 1  ;;  %v4623_v34 = vadd.f32 %v1211_v16, %v1205_v55  ;;  %v1235_v1 = vadd.f32 %v1229_v15, %v1223_v44  ;;  %v1262_v59 = vmul.f32 %v4618_v58, %v3896_v57 }
  0xdd   : > { %v1271_v32 = vmul.f32 %v4632_v20, %v4591_v26  ;;  %v1274_v12 = vmul.f32 %v4632_v20, %v4621_v45  ;;  %v1265_v19 = vadd.f32 %v1259_v51, %v1253_v50  ;;  %v1194_v17 = vmul.f32 %v6506_v18, %v3918_v7  ;;  %v3261_v50 = vld [vmem:[%s3854_s9 + $0xb8] sm:$0x3f] }
  0xde   : > { %v1320_v29 = vsel %vm577_vm1, %v1318_v31, %v6427_v0  ;;  %v6425_v4 = vrot.slane %v4623_v34, 7  ;;  %v1247_v3 = vadd.f32 %v1241_v27, %v1235_v1  ;;  %v1268_v25 = vadd.f32 %v1262_v59, %v1256_v60 }
  0xdf   : > { %v1336_v33 = vadd.f32 %v1320_v29, %v1306_v38  ;;  %v1200_v16 = vmul.f32 %v4466_v2, %v3851_v37  ;;  %v1277_v55 = vadd.f32 %v1271_v32, %v1265_v19  ;;  %v1212_v31 = vmul.f32 %v4645_v46, %v3863_v42 }
  0xe0   : > { %v1304_v44 = vsel %vm546_vm0, 0.0, %v6425_v4  ;;  %v1224_v38 = vmul.f32 %v6506_v18, %v3932_v14  ;;  %v1280_v15 = vadd.f32 %v1274_v12, %v1268_v25  ;;  %v1230_v51 = vmul.f32 %v4466_v2, %v3877_v48  ;;  %v3267_v4 = vld [vmem:[%s3854_s9 + $0xe8] sm:$0x3f]  ;;  %v6513_v25 = vld [vmem:[#allocation5_spill] sm:$0xff] }
  0xe1   : > { %3274 = vst [vmem:[%s3978_s17 + $0xc0] sm:$0xff] %v1336_v33  ;;  %v1307_v27 = vadd.f32 %v1304_v44, %v1247_v3  ;;  %v1206_v60 = vadd.f32 %v1200_v16, %v1194_v17  ;;  %v1321_v1 = vrot.slane %v1277_v55, 1  ;;  %v1242_v59 = vmul.f32 %v4645_v46, %v3887_v53  ;;  %v3273_v33 = vld [vmem:[%s3854_s9 + $0x118] sm:$0x3f] }
  0xe2   : > { %v1254_v32 = vmul.f32 %v6506_v18, %v6507_v63  ;;  %v1257_v29 = vmul.f32 %v3261_v50, %v6507_v63  ;;  %v1322_v19 = vrot.slane %v1280_v15, 1  ;;  %v1236_v3 = vadd.f32 %v1230_v51, %v1224_v38  ;;  %v4673_v55 = vld [vmem:[%s3842_s16 + $0x28] ss:$0 sm:$0xff] }
  0xe3   : > { %v4667_v12 = vadd.f32 %v1212_v31, %v1206_v60  ;;  %v1260_v17 = vmul.f32 %v4466_v2, %v6513_v25  ;;  %v1263_v16 = vmul.f32 %v3267_v4, %v6513_v25  ;;  %6514 = vst [vmem:[#allocation9_spill] sm:$0xff] %v4673_v55  ;;  %v1272_v44 = vmul.f32 %v4673_v55, %v4645_v46 }
  0xe4   : > { %v1275_v18 = vmul.f32 %v4673_v55, %v3273_v33  ;;  %v1195_v15 = vmul.f32 %v4556_v39, %v3914_v5  ;;  %v1323_v31 = vsel %vm577_vm1, %v1321_v1, %v1322_v19  ;;  %v1248_v60 = vadd.f32 %v1242_v59, %v1236_v3 }
  0xe5   : > { %v1266_v38 = vadd.f32 %v1260_v17, %v1254_v32  ;;  %v6434_v51 = vrot.slane %v4667_v12, 7  ;;  %v1337_v61 = vadd.f32 %v1323_v31, %v1307_v27  ;;  %v1269_v0 = vadd.f32 %v1263_v16, %v1257_v29 }
  0xe6   : > { %v1201_v25 = vmul.f32 %v4565_v22, %v3847_v35  ;;  %v1213_v63 = vmul.f32 %v4577_v13, %v3859_v40  ;;  %v1225_v1 = vmul.f32 %v4556_v39, %v3922_v10  ;;  %v1231_v59 = vmul.f32 %v4565_v22, %v3865_v43 }
  0xe7   : > { %v1278_v46 = vadd.f32 %v1272_v44, %v1266_v38  ;;  %v1305_v55 = vsel %vm546_vm0, 0.0, %v6434_v51  ;;  %3275 = vst [vmem:[%s3978_s17 + $0xc8] sm:$0xff] %v1337_v61  ;;  %v1281_v27 = vadd.f32 %v1275_v18, %v1269_v0  ;;  %v1243_v3 = vmul.f32 %v4577_v13, %v3879_v49 }
  0xe8   : > { %v1308_v32 = vadd.f32 %v1305_v55, %v1248_v60  ;;  %v1207_v29 = vadd.f32 %v1201_v25, %v1195_v15  ;;  %v1237_v16 = vadd.f32 %v1231_v59, %v1225_v1  ;;  %v6515_v44 = vrot.slane %v4602_v30, 1 }
  0xe9   : > { %v1324_v17 = vrot.slane %v1278_v46, 1  ;;  %v1196_v38 = vmul.f32 %v4608_v28, %v3916_v6  ;;  %v1325_v39 = vrot.slane %v1281_v27, 1  ;;  %v1202_v22 = vmul.f32 %v4618_v58, %v3849_v36 }
  0xea   : > { %v1333_v31 = vsel %vm593_vm2, %v6515_v44, 0.0  ;;  %v1219_v51 = vadd.f32 %v1213_v63, %v1207_v29  ;;  %v1214_v61 = vmul.f32 %v4621_v45, %v3861_v41  ;;  %v1249_v0 = vadd.f32 %v1243_v3, %v1237_v16 }
  0xeb   : > { %v1226_v13 = vmul.f32 %v4608_v28, %v3924_v11  ;;  %v1232_v30 = vmul.f32 %v4618_v58, %v3875_v47  ;;  %v1244_v46 = vmul.f32 %v4621_v45, %v3885_v52  ;;  %v1326_v25 = vsel %vm577_vm1, %v1324_v17, %v1325_v39 }
  0xec   : > { %v1291_v63 = vrot.slane %v1219_v51, 7  ;;  %v1208_v55 = vadd.f32 %v1202_v22, %v1196_v38  ;;  %v1334_v18 = vsel %vm593_vm2, %v1322_v19, 0.0  ;;  %v1338_v15 = vadd.f32 %v1326_v25, %v1308_v32 }
  0xed   : > { %v1238_v60 = vadd.f32 %v1232_v30, %v1226_v13  ;;  %v1197_v1 = vmul.f32 %v3261_v50, %v3918_v7  ;;  %v1203_v59 = vmul.f32 %v3267_v4, %v3851_v37  ;;  %v6516_v28 = vrot.slane %v4567_v9, 7 }
  0xee   : > { %v1220_v58 = vadd.f32 %v1214_v61, %v1208_v55  ;;  %v1215_v45 = vmul.f32 %v3273_v33, %v3863_v42  ;;  %v1227_v29 = vmul.f32 %v3261_v50, %v3932_v14  ;;  %3276 = vst [vmem:[%s3978_s17 + $0xd0] sm:$0xff] %v1338_v15  ;;  %v1233_v32 = vmul.f32 %v3267_v4, %v3877_v48  ;;  %v4727_v50 = vld [vmem:[%s3854_s9 + $0x120] sm:$0xff] }
  0xef   : > { %v1292_v27 = vsel %vm546_vm0, %v6516_v28, %v1291_v63  ;;  %v1250_v3 = vadd.f32 %v1244_v46, %v1238_v60  ;;  %v1209_v19 = vadd.f32 %v1203_v59, %v1197_v1  ;;  %v1245_v16 = vmul.f32 %v3273_v33, %v3887_v53  ;;  %v4742_v63 = vld [vmem:[%s3854_s9 + $0xd8] sm:$0x3f] }
  0xf0   : > { %v1309_v51 = vadd.f32 %v1292_v27, %v1249_v0  ;;  %v1293_v17 = vrot.slane %v1220_v58, 7  ;;  %v1335_v9 = vsel %vm593_vm2, %v1325_v39, 0.0  ;;  %v1368_v44 = vmul.f32 %v4372_v8, %v3914_v5  ;;  %v4754_v58 = vld [vmem:[%s3854_s9 + $0x108] sm:$0x3f] }
  0xf1   : > { %v1221_v22 = vadd.f32 %v1215_v45, %v1209_v19  ;;  %v1239_v61 = vadd.f32 %v1233_v32, %v1227_v29  ;;  %v1374_v0 = vmul.f32 %v4541_v21, %v3847_v35  ;;  %v6517_v13 = vrot.slane %v4623_v34, 7 }
  0xf2   : > { %v1339_v38 = vadd.f32 %v1333_v31, %v1309_v51  ;;  %v1386_v33 = vmul.f32 %v4727_v50, %v3859_v40  ;;  %v1398_v39 = vmul.f32 %v4372_v8, %v3922_v10  ;;  %v1404_v31 = vmul.f32 %v4541_v21, %v3865_v43 }
  0xf3   : > { %v1294_v4 = vsel %vm546_vm0, %v6517_v13, %v1293_v17  ;;  %v1251_v46 = vadd.f32 %v1245_v16, %v1239_v61  ;;  %v1295_v25 = vrot.slane %v1221_v22, 7  ;;  %v1380_v34 = vadd.f32 %v1374_v0, %v1368_v44  ;;  %v4772_v16 = vld [vmem:[%s3854_s9 + $0x128] sm:$0xff] }
  0xf4   : > { %3277 = vst [vmem:[%s3978_s17 + $0xd8] sm:$0x3f] %v1339_v38  ;;  %v1310_v30 = vadd.f32 %v1294_v4, %v1250_v3  ;;  %v1410_v55 = vadd.f32 %v1404_v31, %v1398_v39  ;;  %v1416_v15 = vmul.f32 %v4727_v50, %v3879_v49  ;;  %v1428_v60 = vmul.f32 %v4372_v8, %v3945_v23  ;;  %v4761_v3 = vld [vmem:[%s3854_s9 + $0x138] sm:$0x3f] }
  0xf5   : > { %v1431_v1 = vmul.f32 %v4742_v63, %v3945_v23  ;;  %v6518_v28 = vrot.slane %v4667_v12, 7  ;;  %v4756_v45 = vadd.f32 %v1386_v33, %v1380_v34  ;;  %v1434_v29 = vmul.f32 %v4541_v21, %v3894_v56 }
  0xf6   : > { %v1340_v59 = vadd.f32 %v1334_v18, %v1310_v30  ;;  %v1422_v8 = vadd.f32 %v1416_v15, %v1410_v55  ;;  %v1437_v19 = vmul.f32 %v4754_v58, %v3894_v56  ;;  %v1446_v12 = vmul.f32 %v4582_v62, %v4727_v50  ;;  %v4791_v30 = vld [vmem:[%s3854_s9 + $0xe0] sm:$0x3f]  ;;  %v4796_v55 = vld [vmem:[%s3854_s9 + $0x110] sm:$0x3f] }
  0xf7   : > { %v1296_v27 = vsel %vm546_vm0, %v6518_v28, %v1295_v25  ;;  %v1440_v18 = vadd.f32 %v1434_v29, %v1428_v60  ;;  %v1449_v32 = vmul.f32 %v4582_v62, %v4761_v3  ;;  %v6436_v17 = vrot.slane %v4756_v45, 7  ;;  %v4804_v28 = vld [vmem:[%s3854_s9 + $0x140] sm:$0x3f] }
  0xf8   : > { %v1311_v51 = vadd.f32 %v1296_v27, %v1251_v46  ;;  %3278 = vst [vmem:[%s3978_s17 + $0xe0] sm:$0x3f] %v1340_v59  ;;  %v1369_v44 = vmul.f32 %v4417_v54, %v3916_v6  ;;  %v1443_v22 = vadd.f32 %v1437_v19, %v1431_v1  ;;  %v1375_v61 = vmul.f32 %v4591_v26, %v3849_v36 }
  0xf9   : > { %v1387_v0 = vmul.f32 %v4772_v16, %v3861_v41  ;;  %v1452_v13 = vadd.f32 %v1446_v12, %v1440_v18  ;;  %v1479_v4 = vsel %vm546_vm0, 0.0, %v6436_v17  ;;  %v1399_v33 = vmul.f32 %v4417_v54, %v3924_v11  ;;  %v6522_v17 = vld [vmem:[#allocation5_spill] sm:$0xff] }
  0xfa   : > { %v1341_v38 = vadd.f32 %v1335_v9, %v1311_v51  ;;  %v1405_v39 = vmul.f32 %v4591_v26, %v3875_v47  ;;  %v4788_v9 = vadd.f32 %v1449_v32, %v1443_v22  ;;  %v1482_v31 = vadd.f32 %v1479_v4, %v1422_v8  ;;  %v4821_v22 = vld [vmem:[%s3854_s9 + $0x130] sm:$0xff] }
  0xfb   : > { %v1381_v46 = vadd.f32 %v1375_v61, %v1369_v44  ;;  %v1417_v25 = vmul.f32 %v4772_v16, %v3885_v52  ;;  %v1494_v34 = vrot.slane %v1452_v13, 1  ;;  %v1429_v60 = vmul.f32 %v4417_v54, %v3947_v24  ;;  %6519 = vst [vmem:[#allocation7_spill] sm:$0xff] %v4821_v22 }
  0xfc   : > { %3279 = vst [vmem:[%s3978_s17 + $0xe8] sm:$0x3f] %v1341_v38  ;;  %v1411_v15 = vadd.f32 %v1405_v39, %v1399_v33  ;;  %v1432_v1 = vmul.f32 %v4791_v30, %v3947_v24  ;;  %v1495_v59 = vrot.slane %v4788_v9, 1  ;;  %v1435_v29 = vmul.f32 %v4591_v26, %v3896_v57 }
  0xfd   : > { %v4806_v27 = vadd.f32 %v1387_v0, %v1381_v46  ;;  %v1438_v51 = vmul.f32 %v4796_v55, %v3896_v57  ;;  %v1447_v19 = vmul.f32 %v4632_v20, %v4772_v16  ;;  %v1450_v54 = vmul.f32 %v4632_v20, %v4804_v28  ;;  %v6520_v0 = vld [vmem:[#allocation8_spill] sm:$0xff] }
  0xfe   : > { %v1423_v8 = vadd.f32 %v1417_v25, %v1411_v15  ;;  %v1370_v12 = vmul.f32 %v4466_v2, %v3918_v7  ;;  %v1496_v18 = vsel %vm577_vm1, %v1494_v34, %v1495_v59  ;;  %v1441_v32 = vadd.f32 %v1435_v29, %v1429_v60  ;;  %v3285_v34 = vld [vmem:[%s3854_s9 + $0xe8] sm:$0x3f] }
  0xff   : > { %v1444_v44 = vadd.f32 %v1438_v51, %v1432_v1  ;;  %v6435_v38 = vrot.slane %v4806_v27, 7  ;;  %v1512_v61 = vadd.f32 %v1496_v18, %v1482_v31  ;;  %v1376_v13 = vmul.f32 %v6520_v0, %v3851_v37  ;;  %v6521_v1 = vld [vmem:[#allocation6_spill] sm:$0xff] }
 0x100   : > { %v1388_v4 = vmul.f32 %v4821_v22, %v3863_v42  ;;  %v1400_v33 = vmul.f32 %v4466_v2, %v3932_v14  ;;  %v1453_v39 = vadd.f32 %v1447_v19, %v1441_v32  ;;  %v1406_v31 = vmul.f32 %v6520_v0, %v3877_v48 }
 0x101   : > { %v1456_v9 = vadd.f32 %v1450_v54, %v1444_v44  ;;  %v1480_v46 = vsel %vm546_vm0, 0.0, %v6435_v38  ;;  %3298 = vst [vmem:[%s3978_s17 + $0xf0] sm:$0xff] %v1512_v61  ;;  %v1382_v15 = vadd.f32 %v1376_v13, %v1370_v12  ;;  %v1418_v60 = vmul.f32 %v4821_v22, %v3887_v53  ;;  %v3291_v54 = vld [vmem:[%s3854_s9 + $0x118] sm:$0x3f]  ;;  %v3297_v44 = vld [vmem:[%s3854_s9 + $0x148] sm:$0x3f] }
 0x102   : > { %v1483_v25 = vadd.f32 %v1480_v46, %v1423_v8  ;;  %v1430_v29 = vmul.f32 %v4466_v2, %v6521_v1  ;;  %v1497_v51 = vrot.slane %v1453_v39, 1  ;;  %v1412_v18 = vadd.f32 %v1406_v31, %v1400_v33  ;;  %v6523_v61 = vld [vmem:[#allocation9_spill] sm:$0xff] }
 0x103   : > { %v1498_v19 = vrot.slane %v1456_v9, 1  ;;  %v1433_v32 = vmul.f32 %v3285_v34, %v6521_v1  ;;  %v4843_v38 = vadd.f32 %v1388_v4, %v1382_v15  ;;  %v1436_v8 = vmul.f32 %v6520_v0, %v6522_v17 }
 0x104   : > { %v1439_v12 = vmul.f32 %v3291_v54, %v6522_v17  ;;  %v1448_v13 = vmul.f32 %v6523_v61, %v4821_v22  ;;  %v1424_v39 = vadd.f32 %v1418_v60, %v1412_v18  ;;  %v1451_v9 = vmul.f32 %v6523_v61, %v3297_v44 }
 0x105   : > { %v1499_v2 = vsel %vm577_vm1, %v1497_v51, %v1498_v19  ;;  %v1371_v33 = vmul.f32 %v4742_v63, %v3914_v5  ;;  %v1442_v4 = vadd.f32 %v1436_v8, %v1430_v29  ;;  %v1466_v15 = vrot.slane %v4843_v38, 7 }
 0x106   : > { %v1513_v46 = vadd.f32 %v1499_v2, %v1483_v25  ;;  %v1445_v31 = vadd.f32 %v1439_v12, %v1433_v32  ;;  %v1377_v1 = vmul.f32 %v4754_v58, %v3847_v35  ;;  %v1389_v17 = vmul.f32 %v4761_v3, %v3859_v40 }
 0x107   : > { %v1401_v51 = vmul.f32 %v4742_v63, %v3922_v10  ;;  %v1407_v60 = vmul.f32 %v4754_v58, %v3865_v43  ;;  %v1454_v18 = vadd.f32 %v1448_v13, %v1442_v4  ;;  %v1481_v25 = vsel %vm546_vm0, 0.0, %v1466_v15 }
 0x108   : > { %3299 = vst [vmem:[%s3978_s17 + $0xf8] sm:$0xff] %v1513_v46  ;;  %v1457_v61 = vadd.f32 %v1451_v9, %v1445_v31  ;;  %v1419_v29 = vmul.f32 %v4761_v3, %v3879_v49  ;;  %v1484_v32 = vadd.f32 %v1481_v25, %v1424_v39  ;;  %v1383_v8 = vadd.f32 %v1377_v1, %v1371_v33 }
 0x109   : > { %v1413_v12 = vadd.f32 %v1407_v60, %v1401_v51  ;;  %v1509_v2 = vsel %vm593_vm2, %v1495_v59, 0.0  ;;  %v1500_v22 = vrot.slane %v1454_v18, 1  ;;  %v1372_v58 = vmul.f32 %v4791_v30, %v3916_v6 }
 0x10a   : > { %v1501_v63 = vrot.slane %v1457_v61, 1  ;;  %v1378_v13 = vmul.f32 %v4796_v55, %v3849_v36  ;;  %v1395_v9 = vadd.f32 %v1389_v17, %v1383_v8  ;;  %v1390_v4 = vmul.f32 %v4804_v28, %v3861_v41 }
 0x10b   : > { %v1425_v46 = vadd.f32 %v1419_v29, %v1413_v12  ;;  %v1402_v3 = vmul.f32 %v4791_v30, %v3924_v11  ;;  %v1408_v61 = vmul.f32 %v4796_v55, %v3875_v47  ;;  %v1420_v39 = vmul.f32 %v4804_v28, %v3885_v52 }
 0x10c   : > { %v1502_v1 = vsel %vm577_vm1, %v1500_v22, %v1501_v63  ;;  %v1384_v59 = vadd.f32 %v1378_v13, %v1372_v58  ;;  %v1467_v31 = vrot.slane %v1395_v9, 7  ;;  %v1510_v17 = vsel %vm593_vm2, %v1498_v19, 0.0 }
 0x10d   : > { %v1514_v33 = vadd.f32 %v1502_v1, %v1484_v32  ;;  %v1373_v51 = vmul.f32 %v3285_v34, %v3918_v7  ;;  %v1414_v18 = vadd.f32 %v1408_v61, %v1402_v3  ;;  %v1379_v30 = vmul.f32 %v3291_v54, %v3851_v37 }
 0x10e   : > { %v1396_v60 = vadd.f32 %v1390_v4, %v1384_v59  ;;  %v1391_v22 = vmul.f32 %v3297_v44, %v3863_v42  ;;  %v6524_v25 = vrot.slane %v4756_v45, 7  ;;  %v1403_v28 = vmul.f32 %v3285_v34, %v3932_v14  ;;  %v4896_v4 = vld [vmem:[%s3854_s9 + $0x150] sm:$0xff] }
 0x10f   : > { %3300 = vst [vmem:[%s3978_s17 + $0x100] sm:$0xff] %v1514_v33  ;;  %v1409_v29 = vmul.f32 %v3291_v54, %v3877_v48  ;;  %v1421_v19 = vmul.f32 %v3297_v44, %v3887_v53  ;;  %v1426_v8 = vadd.f32 %v1420_v39, %v1414_v18  ;;  %v1385_v58 = vadd.f32 %v1379_v30, %v1373_v51  ;;  %v4920_v18 = vld [vmem:[%s3854_s9 + $0x138] sm:$0x3f] }
 0x110   : > { %v1468_v55 = vsel %vm546_vm0, %v6524_v25, %v1467_v31  ;;  %v1469_v12 = vrot.slane %v1396_v60, 7  ;;  %v1511_v9 = vsel %vm593_vm2, %v1501_v63, 0.0  ;;  %v1544_v45 = vmul.f32 %v4541_v21, %v3914_v5  ;;  %v4911_v31 = vld [vmem:[%s3854_s9 + $0x108] sm:$0x3f] }
 0x111   : > { %v1485_v32 = vadd.f32 %v1468_v55, %v1425_v46  ;;  %v1415_v13 = vadd.f32 %v1409_v29, %v1403_v28  ;;  %v1550_v34 = vmul.f32 %v4727_v50, %v3847_v35  ;;  %v6525_v44 = vrot.slane %v4806_v27, 7  ;;  %v4932_v28 = vld [vmem:[%s3854_s9 + $0x168] sm:$0x3f] }
 0x112   : > { %v1397_v3 = vadd.f32 %v1391_v22, %v1385_v58  ;;  %v1562_v1 = vmul.f32 %v4896_v4, %v3859_v40  ;;  %v1574_v39 = vmul.f32 %v4541_v21, %v3922_v10  ;;  %v1580_v27 = vmul.f32 %v4727_v50, %v3865_v43  ;;  %v4943_v58 = vld [vmem:[%s3854_s9 + $0x158] sm:$0xff] }
 0x113   : > { %v1515_v54 = vadd.f32 %v1509_v2, %v1485_v32  ;;  %v1470_v46 = vsel %vm546_vm0, %v6525_v44, %v1469_v12  ;;  %v1427_v63 = vadd.f32 %v1421_v19, %v1415_v13  ;;  %v1556_v61 = vadd.f32 %v1550_v34, %v1544_v45 }
 0x114   : > { %v1486_v59 = vadd.f32 %v1470_v46, %v1426_v8  ;;  %v1471_v33 = vrot.slane %v1397_v3, 7  ;;  %v1592_v2 = vmul.f32 %v4896_v4, %v3879_v49  ;;  %v1604_v51 = vmul.f32 %v4541_v21, %v3945_v23 }
 0x115   : > { %3301 = vst [vmem:[%s3978_s17 + $0x108] sm:$0x3f] %v1515_v54  ;;  %v4922_v30 = vadd.f32 %v1562_v1, %v1556_v61  ;;  %v1607_v22 = vmul.f32 %v4911_v31, %v3945_v23  ;;  %v1610_v25 = vmul.f32 %v4727_v50, %v3894_v56  ;;  %v1586_v29 = vadd.f32 %v1580_v27, %v1574_v39  ;;  %v4960_v39 = vld [vmem:[%s3854_s9 + $0x110] sm:$0x3f] }
 0x116   : > { %v1516_v60 = vadd.f32 %v1510_v17, %v1486_v59  ;;  %v1472_v55 = vsel %vm546_vm0, %v1466_v15, %v1471_v33  ;;  %v1613_v21 = vmul.f32 %v4920_v18, %v3894_v56  ;;  %v1622_v17 = vmul.f32 %v4582_v62, %v4896_v4 }
 0x117   : > { %v1487_v19 = vadd.f32 %v1472_v55, %v1427_v63  ;;  %v1616_v32 = vadd.f32 %v1610_v25, %v1604_v51  ;;  %v1625_v8 = vmul.f32 %v4582_v62, %v4932_v28  ;;  %v6443_v38 = vrot.slane %v4922_v30, 7  ;;  %v4970_v51 = vld [vmem:[%s3854_s9 + $0x140] sm:$0x3f] }
 0x118   : > { %3302 = vst [vmem:[%s3978_s17 + $0x110] sm:$0x3f] %v1516_v60  ;;  %v1598_v15 = vadd.f32 %v1592_v2, %v1586_v29  ;;  %v1619_v12 = vadd.f32 %v1613_v21, %v1607_v22  ;;  %v1545_v13 = vmul.f32 %v4591_v26, %v3916_v6  ;;  %v1551_v45 = vmul.f32 %v4772_v16, %v3849_v36  ;;  %v4973_v60 = vld [vmem:[%s3854_s9 + $0x170] sm:$0x3f] }
 0x119   : > { %v1517_v34 = vadd.f32 %v1511_v9, %v1487_v19  ;;  %v1628_v54 = vadd.f32 %v1622_v17, %v1616_v32  ;;  %v1655_v44 = vsel %vm546_vm0, 0.0, %v6443_v38  ;;  %v1563_v46 = vmul.f32 %v4943_v58, %v3861_v41 }
 0x11a   : > { %v4954_v3 = vadd.f32 %v1625_v8, %v1619_v12  ;;  %v1658_v1 = vadd.f32 %v1655_v44, %v1598_v15  ;;  %v1557_v59 = vadd.f32 %v1551_v45, %v1545_v13  ;;  %v1575_v63 = vmul.f32 %v4591_v26, %v3924_v11 }
 0x11b   : > { %3303 = vst [vmem:[%s3978_s17 + $0x118] sm:$0x3f] %v1517_v34  ;;  %v1670_v61 = vrot.slane %v1628_v54, 1  ;;  %v1581_v9 = vmul.f32 %v4772_v16, %v3875_v47  ;;  %v1593_v33 = vmul.f32 %v4943_v58, %v3885_v52  ;;  %v1605_v27 = vmul.f32 %v4591_v26, %v3947_v24  ;;  %v4992_v34 = vld [vmem:[%s3854_s9 + $0x160] sm:$0xff]  ;;  %v6527_v54 = vld [vmem:[#allocation7_spill] sm:$0xff] }
 0x11c   : > { %v1671_v2 = vrot.slane %v4954_v3, 1  ;;  %v4975_v22 = vadd.f32 %v1563_v46, %v1557_v59  ;;  %v1608_v25 = vmul.f32 %v4960_v39, %v3947_v24  ;;  %v1611_v55 = vmul.f32 %v4772_v16, %v3896_v57  ;;  %6526 = vst [vmem:[#allocation8_spill] sm:$0xff] %v4992_v34 }
 0x11d   : > { %v1587_v29 = vadd.f32 %v1581_v9, %v1575_v63  ;;  %v1614_v21 = vmul.f32 %v4970_v51, %v3896_v57  ;;  %v1623_v26 = vmul.f32 %v4632_v20, %v4943_v58  ;;  %v1626_v17 = vmul.f32 %v4632_v20, %v4973_v60  ;;  %v3309_v9 = vld [vmem:[%s3854_s9 + $0x118] sm:$0x3f] }
 0x11e   : > { %v1672_v19 = vsel %vm577_vm1, %v1670_v61, %v1671_v2  ;;  %v1617_v32 = vadd.f32 %v1611_v55, %v1605_v27  ;;  %v6442_v8 = vrot.slane %v4975_v22, 7  ;;  %v1546_v15 = vmul.f32 %v6520_v0, %v3918_v7 }
 0x11f   : > { %v1688_v12 = vadd.f32 %v1672_v19, %v1658_v1  ;;  %v1599_v13 = vadd.f32 %v1593_v33, %v1587_v29  ;;  %v1620_v45 = vadd.f32 %v1614_v21, %v1608_v25  ;;  %v1552_v44 = vmul.f32 %v6527_v54, %v3851_v37  ;;  %v6528_v29 = vld [vmem:[#allocation6_spill] sm:$0xff] }
 0x120   : > { %v1629_v46 = vadd.f32 %v1623_v26, %v1617_v32  ;;  %v1656_v3 = vsel %vm546_vm0, 0.0, %v6442_v8  ;;  %v1564_v59 = vmul.f32 %v4992_v34, %v3863_v42  ;;  %v1576_v1 = vmul.f32 %v6520_v0, %v3932_v14  ;;  %v3315_v32 = vld [vmem:[%s3854_s9 + $0x148] sm:$0x3f]  ;;  %v3321_v8 = vld [vmem:[%s3854_s9 + $0x178] sm:$0x3f] }
 0x121   : > { %3322 = vst [vmem:[%s3978_s17 + $0x120] sm:$0xff] %v1688_v12  ;;  %v1632_v63 = vadd.f32 %v1626_v17, %v1620_v45  ;;  %v1659_v61 = vadd.f32 %v1656_v3, %v1599_v13  ;;  %v1558_v33 = vadd.f32 %v1552_v44, %v1546_v15  ;;  %v1582_v27 = vmul.f32 %v6527_v54, %v3877_v48  ;;  %v6529_v13 = vld [vmem:[#allocation5_spill] sm:$0xff] }
 0x122   : > { %v1673_v25 = vrot.slane %v1629_v46, 1  ;;  %v1594_v55 = vmul.f32 %v4992_v34, %v3887_v53  ;;  %v1606_v21 = vmul.f32 %v6520_v0, %v6528_v29  ;;  %v1609_v26 = vmul.f32 %v3309_v9, %v6528_v29  ;;  %v6530_v44 = vld [vmem:[#allocation9_spill] sm:$0xff] }
 0x123   : > { %v1674_v19 = vrot.slane %v1632_v63, 1  ;;  %v5014_v12 = vadd.f32 %v1564_v59, %v1558_v33  ;;  %v1588_v17 = vadd.f32 %v1582_v27, %v1576_v1  ;;  %v1612_v15 = vmul.f32 %v6527_v54, %v6529_v13 }
 0x124   : > { %v1615_v45 = vmul.f32 %v3315_v32, %v6529_v13  ;;  %v1624_v46 = vmul.f32 %v6530_v44, %v4992_v34  ;;  %v1627_v3 = vmul.f32 %v6530_v44, %v3321_v8  ;;  %v1547_v0 = vmul.f32 %v4911_v31, %v3914_v5 }
 0x125   : > { %v1675_v63 = vsel %vm577_vm1, %v1673_v25, %v1674_v19  ;;  %v1600_v38 = vadd.f32 %v1594_v55, %v1588_v17  ;;  %v1618_v59 = vadd.f32 %v1612_v15, %v1606_v21  ;;  %v6449_v1 = vrot.slane %v5014_v12, 7 }
 0x126   : > { %v1689_v33 = vadd.f32 %v1675_v63, %v1659_v61  ;;  %v1621_v27 = vadd.f32 %v1615_v45, %v1609_v26  ;;  %v1553_v13 = vmul.f32 %v4920_v18, %v3847_v35  ;;  %v1565_v29 = vmul.f32 %v4932_v28, %v3859_v40 }
 0x127   : > { %v1630_v34 = vadd.f32 %v1624_v46, %v1618_v59  ;;  %v1657_v44 = vsel %vm546_vm0, 0.0, %v6449_v1  ;;  %v1577_v25 = vmul.f32 %v4911_v31, %v3922_v10  ;;  %v1583_v55 = vmul.f32 %v4920_v18, %v3865_v43 }
 0x128   : > { %3323 = vst [vmem:[%s3978_s17 + $0x128] sm:$0xff] %v1689_v33  ;;  %v1633_v61 = vadd.f32 %v1627_v3, %v1621_v27  ;;  %v1660_v21 = vadd.f32 %v1657_v44, %v1600_v38  ;;  %v1559_v26 = vadd.f32 %v1553_v13, %v1547_v0  ;;  %v1595_v17 = vmul.f32 %v4932_v28, %v3879_v49 }
 0x129   : > { %v1676_v15 = vrot.slane %v1630_v34, 1  ;;  %v1589_v45 = vadd.f32 %v1583_v55, %v1577_v25  ;;  %v1685_v46 = vsel %vm593_vm2, %v1671_v2, 0.0  ;;  %v1548_v63 = vmul.f32 %v4960_v39, %v3916_v6 }
 0x12a   : > { %v1677_v59 = vrot.slane %v1633_v61, 1  ;;  %v1571_v1 = vadd.f32 %v1565_v29, %v1559_v26  ;;  %v1554_v31 = vmul.f32 %v4970_v51, %v3849_v36  ;;  %v1566_v18 = vmul.f32 %v4973_v60, %v3861_v41 }
 0x12b   : > { %v1601_v38 = vadd.f32 %v1595_v17, %v1589_v45  ;;  %v1578_v28 = vmul.f32 %v4960_v39, %v3924_v11  ;;  %v1584_v34 = vmul.f32 %v4970_v51, %v3875_v47  ;;  %v1596_v2 = vmul.f32 %v4973_v60, %v3885_v52 }
 0x12c   : > { %v1678_v13 = vsel %vm577_vm1, %v1676_v15, %v1677_v59  ;;  %v1643_v29 = vrot.slane %v1571_v1, 7  ;;  %v1560_v44 = vadd.f32 %v1554_v31, %v1548_v63  ;;  %v1686_v3 = vsel %vm593_vm2, %v1674_v19, 0.0 }
 0x12d   : > { %v1690_v0 = vadd.f32 %v1678_v13, %v1660_v21  ;;  %v1590_v33 = vadd.f32 %v1584_v34, %v1578_v28  ;;  %v1549_v27 = vmul.f32 %v3309_v9, %v3918_v7  ;;  %v1555_v25 = vmul.f32 %v3315_v32, %v3851_v37 }
 0x12e   : > { %v6531_v39 = vrot.slane %v4922_v30, 7  ;;  %v1572_v51 = vadd.f32 %v1566_v18, %v1560_v44  ;;  %v1567_v60 = vmul.f32 %v3321_v8, %v3863_v42  ;;  %v1579_v61 = vmul.f32 %v3309_v9, %v3932_v14  ;;  %v5069_v9 = vld [vmem:[%s3854_s9 + $0x180] sm:$0xff] }
 0x12f   : > { %3324 = vst [vmem:[%s3978_s17 + $0x130] sm:$0xff] %v1690_v0  ;;  %v1602_v26 = vadd.f32 %v1596_v2, %v1590_v33  ;;  %v1561_v19 = vadd.f32 %v1555_v25, %v1549_v27  ;;  %v1585_v21 = vmul.f32 %v3315_v32, %v3877_v48  ;;  %v1597_v15 = vmul.f32 %v3321_v8, %v3887_v53 }
 0x130   : > { %v1644_v55 = vsel %vm546_vm0, %v6531_v39, %v1643_v29  ;;  %v1645_v17 = vrot.slane %v1572_v51, 7  ;;  %v1687_v30 = vsel %vm593_vm2, %v1677_v59, 0.0  ;;  %v1720_v45 = vmul.f32 %v4727_v50, %v3914_v5  ;;  %v5084_v29 = vld [vmem:[%s3854_s9 + $0x138] sm:$0x3f]  ;;  %v5096_v51 = vld [vmem:[%s3854_s9 + $0x168] sm:$0x3f] }
 0x131   : > { %v1661_v1 = vadd.f32 %v1644_v55, %v1601_v38  ;;  %v1573_v31 = vadd.f32 %v1567_v60, %v1561_v19  ;;  %v1591_v18 = vadd.f32 %v1585_v21, %v1579_v61  ;;  %v1726_v38 = vmul.f32 %v4896_v4, %v3847_v35 }
 0x132   : > { %v6532_v28 = vrot.slane %v4975_v22, 7  ;;  %v1738_v8 = vmul.f32 %v5069_v9, %v3859_v40  ;;  %v1750_v59 = vmul.f32 %v4727_v50, %v3922_v10  ;;  %v1768_v0 = vmul.f32 %v5069_v9, %v3879_v49 }
 0x133   : > { %v1691_v63 = vadd.f32 %v1685_v46, %v1661_v1  ;;  %v1756_v46 = vmul.f32 %v4896_v4, %v3865_v43  ;;  %v1603_v2 = vadd.f32 %v1597_v15, %v1591_v18  ;;  %v1647_v13 = vrot.slane %v1573_v31, 7  ;;  %v5114_v15 = vld [vmem:[%s3854_s9 + $0x188] sm:$0xff] }
 0x134   : > { %v1646_v32 = vsel %vm546_vm0, %v6532_v28, %v1645_v17  ;;  %v1732_v22 = vadd.f32 %v1726_v38, %v1720_v45  ;;  %v1780_v33 = vmul.f32 %v4727_v50, %v3945_v23  ;;  %v1783_v27 = vmul.f32 %v5084_v29, %v3945_v23 }
 0x135   : > { %3325 = vst [vmem:[%s3978_s17 + $0x138] sm:$0x3f] %v1691_v63  ;;  %v1662_v34 = vadd.f32 %v1646_v32, %v1602_v26  ;;  %v1762_v44 = vadd.f32 %v1756_v46, %v1750_v59  ;;  %v6533_v39 = vrot.slane %v5014_v12, 7  ;;  %v1786_v61 = vmul.f32 %v4896_v4, %v3894_v56  ;;  %v5103_v26 = vld [vmem:[%s3854_s9 + $0x198] sm:$0x3f] }
 0x136   : > { %v5098_v60 = vadd.f32 %v1738_v8, %v1732_v22  ;;  %v1789_v19 = vmul.f32 %v5096_v51, %v3894_v56  ;;  %v1798_v12 = vmul.f32 %v4582_v62, %v5069_v9  ;;  %v1801_v21 = vmul.f32 %v4582_v62, %v5103_v26  ;;  %v5133_v46 = vld [vmem:[%s3854_s9 + $0x140] sm:$0x3f]  ;;  %v5138_v22 = vld [vmem:[%s3854_s9 + $0x170] sm:$0x3f] }
 0x137   : > { %v1692_v25 = vadd.f32 %v1686_v3, %v1662_v34  ;;  %v1648_v55 = vsel %vm546_vm0, %v6533_v39, %v1647_v13  ;;  %v1774_v50 = vadd.f32 %v1768_v0, %v1762_v44  ;;  %v1792_v3 = vadd.f32 %v1786_v61, %v1780_v33 }
 0x138   : > { %v1663_v1 = vadd.f32 %v1648_v55, %v1603_v2  ;;  %v6451_v17 = vrot.slane %v5098_v60, 7  ;;  %v1721_v45 = vmul.f32 %v4772_v16, %v3916_v6  ;;  %v1795_v31 = vadd.f32 %v1789_v19, %v1783_v27 }
 0x139   : > { %3326 = vst [vmem:[%s3978_s17 + $0x140] sm:$0x3f] %v1692_v25  ;;  %v1727_v18 = vmul.f32 %v4943_v58, %v3849_v36  ;;  %v1739_v38 = vmul.f32 %v5114_v15, %v3861_v41  ;;  %v1804_v28 = vadd.f32 %v1798_v12, %v1792_v3  ;;  %v1751_v32 = vmul.f32 %v4772_v16, %v3924_v11  ;;  %v5146_v25 = vld [vmem:[%s3854_s9 + $0x1a0] sm:$0x3f] }
 0x13a   : > { %v1693_v63 = vadd.f32 %v1687_v30, %v1663_v1  ;;  %v1831_v62 = vsel %vm546_vm0, 0.0, %v6451_v17  ;;  %v1757_v8 = vmul.f32 %v4943_v58, %v3875_v47  ;;  %v5130_v30 = vadd.f32 %v1801_v21, %v1795_v31 }
 0x13b   : > { %v1834_v59 = vadd.f32 %v1831_v62, %v1774_v50  ;;  %v1733_v34 = vadd.f32 %v1727_v18, %v1721_v45  ;;  %v1769_v2 = vmul.f32 %v5114_v15, %v3885_v52  ;;  %v1846_v13 = vrot.slane %v1804_v28, 1  ;;  %v6534_v18 = vld [vmem:[#allocation8_spill] sm:$0xff] }
 0x13c   : > { %3327 = vst [vmem:[%s3978_s17 + $0x148] sm:$0x3f] %v1693_v63  ;;  %v1763_v44 = vadd.f32 %v1757_v8, %v1751_v32  ;;  %v1781_v0 = vmul.f32 %v4772_v16, %v3947_v24  ;;  %v1784_v33 = vmul.f32 %v5133_v46, %v3947_v24  ;;  %v1847_v27 = vrot.slane %v5130_v30, 1  ;;  %v5163_v63 = vld [vmem:[%s3854_s9 + $0x190] sm:$0xff] }
 0x13d   : > { %v5148_v39 = vadd.f32 %v1739_v38, %v1733_v34  ;;  %v1787_v55 = vmul.f32 %v4943_v58, %v3896_v57  ;;  %v1790_v61 = vmul.f32 %v5138_v22, %v3896_v57  ;;  %v1799_v50 = vmul.f32 %v4632_v20, %v5114_v15  ;;  %v3333_v34 = vld [vmem:[%s3854_s9 + $0x148] sm:$0x3f] }
 0x13e   : > { %v1775_v1 = vadd.f32 %v1769_v2, %v1763_v44  ;;  %v1802_v16 = vmul.f32 %v4632_v20, %v5146_v25  ;;  %v1722_v19 = vmul.f32 %v6527_v54, %v3918_v7  ;;  %v1848_v12 = vsel %vm577_vm1, %v1846_v13, %v1847_v27  ;;  %v6535_v44 = vld [vmem:[#allocation6_spill] sm:$0xff] }
 0x13f   : > { %v1793_v3 = vadd.f32 %v1787_v55, %v1781_v0  ;;  %v1796_v21 = vadd.f32 %v1790_v61, %v1784_v33  ;;  %v6450_v45 = vrot.slane %v5148_v39, 7  ;;  %v1864_v31 = vadd.f32 %v1848_v12, %v1834_v59  ;;  %v3339_v61 = vld [vmem:[%s3854_s9 + $0x178] sm:$0x3f]  ;;  %v3345_v12 = vld [vmem:[%s3854_s9 + $0x1a8] sm:$0x3f] }
 0x140   : > { %v1728_v38 = vmul.f32 %v6534_v18, %v3851_v37  ;;  %v1740_v20 = vmul.f32 %v5163_v63, %v3863_v42  ;;  %v1752_v28 = vmul.f32 %v6527_v54, %v3932_v14  ;;  %v1758_v30 = vmul.f32 %v6534_v18, %v3877_v48 }
 0x141   : > { %v1805_v62 = vadd.f32 %v1799_v50, %v1793_v3  ;;  %v1808_v32 = vadd.f32 %v1802_v16, %v1796_v21  ;;  %v1832_v8 = vsel %vm546_vm0, 0.0, %v6450_v45  ;;  %3346 = vst [vmem:[%s3978_s17 + $0x150] sm:$0xff] %v1864_v31  ;;  %v1770_v13 = vmul.f32 %v5163_v63, %v3887_v53  ;;  %v6536_v21 = vld [vmem:[#allocation5_spill] sm:$0xff] }
 0x142   : > { %v1835_v59 = vadd.f32 %v1832_v8, %v1775_v1  ;;  %v1734_v2 = vadd.f32 %v1728_v38, %v1722_v19  ;;  %v1782_v0 = vmul.f32 %v6527_v54, %v6535_v44  ;;  %v1764_v50 = vadd.f32 %v1758_v30, %v1752_v28  ;;  %v6537_v31 = vld [vmem:[#allocation9_spill] sm:$0xff] }
 0x143   : > { %v1849_v33 = vrot.slane %v1805_v62, 1  ;;  %v1850_v55 = vrot.slane %v1808_v32, 1  ;;  %v1785_v16 = vmul.f32 %v3333_v34, %v6535_v44  ;;  %v1788_v1 = vmul.f32 %v6534_v18, %v6536_v21 }
 0x144   : > { %v5185_v3 = vadd.f32 %v1740_v20, %v1734_v2  ;;  %v1791_v19 = vmul.f32 %v3339_v61, %v6536_v21  ;;  %v1800_v38 = vmul.f32 %v6537_v31, %v5163_v63  ;;  %v1776_v62 = vadd.f32 %v1770_v13, %v1764_v50 }
 0x145   : > { %v1851_v54 = vsel %vm577_vm1, %v1849_v33, %v1850_v55  ;;  %v1803_v32 = vmul.f32 %v6537_v31, %v3345_v12  ;;  %v1723_v28 = vmul.f32 %v5084_v29, %v3914_v5  ;;  %v1794_v20 = vadd.f32 %v1788_v1, %v1782_v0 }
 0x146   : > { %v1865_v8 = vadd.f32 %v1851_v54, %v1835_v59  ;;  %v1797_v30 = vadd.f32 %v1791_v19, %v1785_v16  ;;  %v1818_v2 = vrot.slane %v5185_v3, 7  ;;  %v1729_v45 = vmul.f32 %v5096_v51, %v3847_v35 }
 0x147   : > { %v1741_v17 = vmul.f32 %v5103_v26, %v3859_v40  ;;  %v1753_v33 = vmul.f32 %v5084_v29, %v3922_v10  ;;  %v1759_v13 = vmul.f32 %v5096_v51, %v3865_v43  ;;  %v1806_v50 = vadd.f32 %v1800_v38, %v1794_v20 }
 0x148   : > { %3347 = vst [vmem:[%s3978_s17 + $0x158] sm:$0xff] %v1865_v8  ;;  %v1809_v31 = vadd.f32 %v1803_v32, %v1797_v30  ;;  %v1833_v59 = vsel %vm546_vm0, 0.0, %v1818_v2  ;;  %v1771_v0 = vmul.f32 %v5103_v26, %v3879_v49  ;;  %v1735_v1 = vadd.f32 %v1729_v45, %v1723_v28 }
 0x149   : > { %v1836_v16 = vadd.f32 %v1833_v59, %v1776_v62  ;;  %v1765_v19 = vadd.f32 %v1759_v13, %v1753_v33  ;;  %v1861_v54 = vsel %vm593_vm2, %v1847_v27, 0.0  ;;  %v1852_v21 = vrot.slane %v1806_v50, 1 }
 0x14a   : > { %v1853_v29 = vrot.slane %v1809_v31, 1  ;;  %v1724_v51 = vmul.f32 %v5133_v46, %v3916_v6  ;;  %v1730_v38 = vmul.f32 %v5138_v22, %v3849_v36  ;;  %v1747_v32 = vadd.f32 %v1741_v17, %v1735_v1 }
 0x14b   : > { %v1777_v8 = vadd.f32 %v1771_v0, %v1765_v19  ;;  %v1742_v20 = vmul.f32 %v5146_v25, %v3861_v41  ;;  %v1754_v26 = vmul.f32 %v5133_v46, %v3924_v11  ;;  %v1760_v62 = vmul.f32 %v5138_v22, %v3875_v47 }
 0x14c   : > { %v1854_v45 = vsel %vm577_vm1, %v1852_v21, %v1853_v29  ;;  %v1736_v27 = vadd.f32 %v1730_v38, %v1724_v51  ;;  %v1772_v28 = vmul.f32 %v5146_v25, %v3885_v52  ;;  %v1819_v33 = vrot.slane %v1747_v32, 7 }
 0x14d   : > { %v1866_v30 = vadd.f32 %v1854_v45, %v1836_v16  ;;  %v1862_v17 = vsel %vm593_vm2, %v1850_v55, 0.0  ;;  %v1725_v13 = vmul.f32 %v3333_v34, %v3918_v7  ;;  %v1766_v31 = vadd.f32 %v1760_v62, %v1754_v26 }
 0x14e   : > { %v1748_v50 = vadd.f32 %v1742_v20, %v1736_v27  ;;  %v1731_v46 = vmul.f32 %v3339_v61, %v3851_v37  ;;  %v1743_v21 = vmul.f32 %v3345_v12, %v3863_v42  ;;  %v6538_v59 = vrot.slane %v5098_v60, 7  ;;  %v5238_v20 = vld [vmem:[%s3854_s9 + $0x1b0] sm:$0xff] }
 0x14f   : > { %3348 = vst [vmem:[%s3978_s17 + $0x160] sm:$0xff] %v1866_v30  ;;  %v1755_v25 = vmul.f32 %v3333_v34, %v3932_v14  ;;  %v1761_v0 = vmul.f32 %v3339_v61, %v3877_v48  ;;  %v1773_v55 = vmul.f32 %v3345_v12, %v3887_v53  ;;  %v1778_v1 = vadd.f32 %v1772_v28, %v1766_v31  ;;  %v5262_v31 = vld [vmem:[%s3854_s9 + $0x198] sm:$0x3f] }
 0x150   : > { %v1820_v22 = vsel %vm546_vm0, %v6538_v59, %v1819_v33  ;;  %v1821_v19 = vrot.slane %v1748_v50, 7  ;;  %v1737_v51 = vadd.f32 %v1731_v46, %v1725_v13  ;;  %v1863_v32 = vsel %vm593_vm2, %v1853_v29, 0.0 }
 0x151   : > { %v1837_v16 = vadd.f32 %v1820_v22, %v1777_v8  ;;  %v1767_v38 = vadd.f32 %v1761_v0, %v1755_v25  ;;  %v1896_v60 = vmul.f32 %v4896_v4, %v3914_v5  ;;  %v1902_v34 = vmul.f32 %v5069_v9, %v3847_v35  ;;  %v5274_v25 = vld [vmem:[%s3854_s9 + $0x1c8] sm:$0x3f] }
 0x152   : > { %v6539_v12 = vrot.slane %v5148_v39, 7  ;;  %v1749_v26 = vadd.f32 %v1743_v21, %v1737_v51  ;;  %v1914_v45 = vmul.f32 %v5238_v20, %v3859_v40  ;;  %v1926_v28 = vmul.f32 %v4896_v4, %v3922_v10 }
 0x153   : > { %v1867_v61 = vadd.f32 %v1861_v54, %v1837_v16  ;;  %v1779_v29 = vadd.f32 %v1773_v55, %v1767_v38  ;;  %v1908_v62 = vadd.f32 %v1902_v34, %v1896_v60  ;;  %v5253_v54 = vld [vmem:[%s3854_s9 + $0x168] sm:$0x3f]  ;;  %v1932_v39 = vmul.f32 %v5069_v9, %v3865_v43  ;;  %v5288_v38 = vld [vmem:[%s3854_s9 + $0x1b8] sm:$0xff] }
 0x154   : > { %v1822_v8 = vsel %vm546_vm0, %v6539_v12, %v1821_v19  ;;  %v1823_v30 = vrot.slane %v1749_v26, 7  ;;  %v1944_v33 = vmul.f32 %v5238_v20, %v3879_v49  ;;  %v1956_v13 = vmul.f32 %v4896_v4, %v3945_v23 }
 0x155   : > { %v1838_v27 = vadd.f32 %v1822_v8, %v1778_v1  ;;  %3349 = vst [vmem:[%s3978_s17 + $0x168] sm:$0x3f] %v1867_v61  ;;  %v5264_v46 = vadd.f32 %v1914_v45, %v1908_v62  ;;  %v1959_v21 = vmul.f32 %v5253_v54, %v3945_v23  ;;  %v1962_v59 = vmul.f32 %v5069_v9, %v3894_v56 }
 0x156   : > { %v1824_v22 = vsel %vm546_vm0, %v1818_v2, %v1823_v30  ;;  %v1938_v0 = vadd.f32 %v1932_v39, %v1926_v28  ;;  %v1965_v4 = vmul.f32 %v5262_v31, %v3894_v56  ;;  %v1897_v60 = vmul.f32 %v4943_v58, %v3916_v6 }
 0x157   : > { %v1868_v50 = vadd.f32 %v1862_v17, %v1838_v27  ;;  %v5279_v17 = vld [vmem:[%s3842_s16 + $0x18] ss:$0 sm:$0xff]  ;;  %v1839_v16 = vadd.f32 %v1824_v22, %v1779_v29  ;;  %v1968_v1 = vadd.f32 %v1962_v59, %v1956_v13  ;;  %v6454_v2 = vrot.slane %v5264_v46, 7 }
 0x158   : > { %v1974_v55 = vmul.f32 %v5279_v17, %v5238_v20  ;;  %v1977_v3 = vmul.f32 %v5279_v17, %v5274_v25  ;;  %v1950_v19 = vadd.f32 %v1944_v33, %v1938_v0  ;;  %v1971_v51 = vadd.f32 %v1965_v4, %v1959_v21  ;;  %v5318_v21 = vld [vmem:[%s3854_s9 + $0x1d0] sm:$0x3f] }
 0x159   : > { %3350 = vst [vmem:[%s3978_s17 + $0x170] sm:$0x3f] %v1868_v50  ;;  %v1903_v34 = vmul.f32 %v5114_v15, %v3849_v36  ;;  %v1869_v61 = vadd.f32 %v1863_v32, %v1839_v16  ;;  %v2007_v8 = vsel %vm546_vm0, 0.0, %v6454_v2  ;;  %v1915_v26 = vmul.f32 %v5288_v38, %v3861_v41  ;;  %v5305_v32 = vld [vmem:[%s3854_s9 + $0x170] sm:$0x3f] }
 0x15a   : > { %v1980_v12 = vadd.f32 %v1974_v55, %v1968_v1  ;;  %v5299_v45 = vadd.f32 %v1977_v3, %v1971_v51  ;;  %v2010_v27 = vadd.f32 %v2007_v8, %v1950_v19  ;;  %v1927_v62 = vmul.f32 %v4943_v58, %v3924_v11  ;;  %v5315_v50 = vld [vmem:[%s3854_s9 + $0x1a0] sm:$0x3f] }
 0x15b   : > { %v1909_v29 = vadd.f32 %v1903_v34, %v1897_v60  ;;  %3351 = vst [vmem:[%s3978_s17 + $0x178] sm:$0x3f] %v1869_v61  ;;  %v1933_v30 = vmul.f32 %v5114_v15, %v3875_v47  ;;  %v1945_v39 = vmul.f32 %v5288_v38, %v3885_v52  ;;  %v1957_v33 = vmul.f32 %v4943_v58, %v3947_v24  ;;  %v5329_v58 = vld [vmem:[%s3842_s16 + $0x20] ss:$0 sm:$0xff] }
 0x15c   : > { %v2022_v28 = vrot.slane %v1980_v12, 1  ;;  %v6455_v13 = vrot.slane %v5299_v45, 1  ;;  %v1960_v22 = vmul.f32 %v5305_v32, %v3947_v24  ;;  %v1963_v0 = vmul.f32 %v5114_v15, %v3896_v57  ;;  %v5342_v8 = vld [vmem:[%s3854_s9 + $0x1c0] sm:$0xff] }
 0x15d   : > { %v5320_v59 = vadd.f32 %v1915_v26, %v1909_v29  ;;  %v1939_v4 = vadd.f32 %v1933_v30, %v1927_v62  ;;  %v1966_v55 = vmul.f32 %v5315_v50, %v3896_v57  ;;  %v1975_v16 = vmul.f32 %v5329_v58, %v5288_v38  ;;  %6540 = vst [vmem:[#allocation7_spill] sm:$0xff] %v5342_v8 }
 0x15e   : > { %v1978_v1 = vmul.f32 %v5329_v58, %v5318_v21  ;;  %v2024_v3 = vsel %vm577_vm1, %v2022_v28, %v6455_v13  ;;  %v1969_v19 = vadd.f32 %v1963_v0, %v1957_v33  ;;  %v1898_v60 = vmul.f32 %v6534_v18, %v3918_v7  ;;  %v3357_v33 = vld [vmem:[%s3854_s9 + $0x178] sm:$0x3f] }
 0x15f   : > { %v6453_v51 = vrot.slane %v5320_v59, 7  ;;  %v2040_v34 = vadd.f32 %v2024_v3, %v2010_v27  ;;  %v1951_v61 = vadd.f32 %v1945_v39, %v1939_v4  ;;  %v1972_v12 = vadd.f32 %v1966_v55, %v1960_v22 }
 0x160   : > { %v1904_v26 = vmul.f32 %v5163_v63, %v3851_v37  ;;  %v1981_v29 = vadd.f32 %v1975_v16, %v1969_v19  ;;  %v1916_v28 = vmul.f32 %v5342_v8, %v3863_v42  ;;  %v1928_v27 = vmul.f32 %v6534_v18, %v3932_v14 }
 0x161   : > { %v2008_v62 = vsel %vm546_vm0, 0.0, %v6453_v51  ;;  %3370 = vst [vmem:[%s3978_s17 + $0x180] sm:$0xff] %v2040_v34  ;;  %v1984_v30 = vadd.f32 %v1978_v1, %v1972_v12  ;;  %v1934_v0 = vmul.f32 %v5163_v63, %v3877_v48  ;;  %v1946_v55 = vmul.f32 %v5342_v8, %v3887_v53  ;;  %v3363_v51 = vld [vmem:[%s3854_s9 + $0x1a8] sm:$0x3f]  ;;  %v3369_v34 = vld [vmem:[%s3854_s9 + $0x1d8] sm:$0x3f] }
 0x162   : > { %v2011_v39 = vadd.f32 %v2008_v62, %v1951_v61  ;;  %v1910_v22 = vadd.f32 %v1904_v26, %v1898_v60  ;;  %v2025_v4 = vrot.slane %v1981_v29, 1  ;;  %v1958_v16 = vmul.f32 %v6534_v18, %v6535_v44  ;;  %v6541_v12 = vld [vmem:[#allocation5_spill] sm:$0xff]  ;;  %v5370_v29 = vld [vmem:[%s3842_s16 + $0x28] ss:$0 sm:$0xff] }
 0x163   : > { %v1961_v3 = vmul.f32 %v3357_v33, %v6535_v44  ;;  %v2026_v19 = vrot.slane %v1984_v30, 1  ;;  %v1940_v61 = vadd.f32 %v1934_v0, %v1928_v27  ;;  %v1964_v60 = vmul.f32 %v5163_v63, %v6541_v12  ;;  %6542 = vst [vmem:[#allocation8_spill] sm:$0xff] %v5370_v29 }
 0x164   : > { %v5364_v1 = vadd.f32 %v1916_v28, %v1910_v22  ;;  %v1967_v26 = vmul.f32 %v3363_v51, %v6541_v12  ;;  %v1976_v62 = vmul.f32 %v5370_v29, %v5342_v8  ;;  %v1979_v18 = vmul.f32 %v5370_v29, %v3369_v34 }
 0x165   : > { %v1899_v30 = vmul.f32 %v5253_v54, %v3914_v5  ;;  %v2027_v28 = vsel %vm577_vm1, %v2025_v4, %v2026_v19  ;;  %v1952_v22 = vadd.f32 %v1946_v55, %v1940_v61  ;;  %v1970_v27 = vadd.f32 %v1964_v60, %v1958_v16 }
 0x166   : > { %v6462_v0 = vrot.slane %v5364_v1, 7  ;;  %v2041_v2 = vadd.f32 %v2027_v28, %v2011_v39  ;;  %v1973_v13 = vadd.f32 %v1967_v26, %v1961_v3  ;;  %v1905_v12 = vmul.f32 %v5262_v31, %v3847_v35 }
 0x167   : > { %v1917_v44 = vmul.f32 %v5274_v25, %v3859_v40  ;;  %v1982_v8 = vadd.f32 %v1976_v62, %v1970_v27  ;;  %v1929_v4 = vmul.f32 %v5253_v54, %v3922_v10  ;;  %v1935_v55 = vmul.f32 %v5262_v31, %v3865_v43 }
 0x168   : > { %v2009_v29 = vsel %vm546_vm0, 0.0, %v6462_v0  ;;  %3371 = vst [vmem:[%s3978_s17 + $0x188] sm:$0xff] %v2041_v2  ;;  %v1985_v39 = vadd.f32 %v1979_v18, %v1973_v13  ;;  %v1911_v3 = vadd.f32 %v1905_v12, %v1899_v30  ;;  %v1947_v61 = vmul.f32 %v5274_v25, %v3879_v49 }
 0x169   : > { %v2012_v16 = vadd.f32 %v2009_v29, %v1952_v22  ;;  %v2028_v60 = vrot.slane %v1982_v8, 1  ;;  %v1941_v26 = vadd.f32 %v1935_v55, %v1929_v4  ;;  %v6543_v62 = vrot.slane %v5299_v45, 1 }
 0x16a   : > { %v1900_v27 = vmul.f32 %v5305_v32, %v3916_v6  ;;  %v2029_v54 = vrot.slane %v1985_v39, 1  ;;  %v1923_v0 = vadd.f32 %v1917_v44, %v1911_v3  ;;  %v1906_v31 = vmul.f32 %v5315_v50, %v3849_v36 }
 0x16b   : > { %v2037_v28 = vsel %vm593_vm2, %v6543_v62, 0.0  ;;  %v1918_v2 = vmul.f32 %v5318_v21, %v3861_v41  ;;  %v1953_v13 = vadd.f32 %v1947_v61, %v1941_v26  ;;  %v1930_v25 = vmul.f32 %v5305_v32, %v3924_v11 }
 0x16c   : > { %v1936_v45 = vmul.f32 %v5315_v50, %v3875_v47  ;;  %v1948_v8 = vmul.f32 %v5318_v21, %v3885_v52  ;;  %v2030_v12 = vsel %vm577_vm1, %v2028_v60, %v2029_v54  ;;  %v1995_v44 = vrot.slane %v1923_v0, 7 }
 0x16d   : > { %v1912_v29 = vadd.f32 %v1906_v31, %v1900_v27  ;;  %v2038_v18 = vsel %vm593_vm2, %v2026_v19, 0.0  ;;  %v2042_v30 = vadd.f32 %v2030_v12, %v2012_v16  ;;  %v1901_v4 = vmul.f32 %v3357_v33, %v3918_v7 }
 0x16e   : > { %v1942_v22 = vadd.f32 %v1936_v45, %v1930_v25  ;;  %v1907_v55 = vmul.f32 %v3363_v51, %v3851_v37  ;;  %v6544_v32 = vrot.slane %v5264_v46, 7  ;;  %v1919_v21 = vmul.f32 %v3369_v34, %v3863_v42 }
 0x16f   : > { %v1924_v50 = vadd.f32 %v1918_v2, %v1912_v29  ;;  %v1931_v3 = vmul.f32 %v3357_v33, %v3932_v14  ;;  %3372 = vst [vmem:[%s3978_s17 + $0x190] sm:$0xff] %v2042_v30  ;;  %v1937_v16 = vmul.f32 %v3363_v51, %v3877_v48  ;;  %v1949_v26 = vmul.f32 %v3369_v34, %v3887_v53  ;;  %v5424_v33 = vld [vmem:[%s3854_s9 + $0x1e0] sm:$0xff] }
 0x170   : > { %v1996_v39 = vsel %vm546_vm0, %v6544_v32, %v1995_v44  ;;  %v1954_v61 = vadd.f32 %v1948_v8, %v1942_v22  ;;  %v1913_v19 = vadd.f32 %v1907_v55, %v1901_v4  ;;  %v2039_v46 = vsel %vm593_vm2, %v2029_v54, 0.0  ;;  %v5439_v44 = vld [vmem:[%s3854_s9 + $0x198] sm:$0x3f] }
 0x171   : > { %v2013_v0 = vadd.f32 %v1996_v39, %v1953_v13  ;;  %v1997_v60 = vrot.slane %v1924_v50, 7  ;;  %v2072_v62 = vmul.f32 %v5069_v9, %v3914_v5  ;;  %v1943_v2 = vadd.f32 %v1937_v16, %v1931_v3  ;;  %v5451_v50 = vld [vmem:[%s3854_s9 + $0x1c8] sm:$0x3f] }
 0x172   : > { %v1925_v31 = vadd.f32 %v1919_v21, %v1913_v19  ;;  %v2078_v13 = vmul.f32 %v5238_v20, %v3847_v35  ;;  %v6545_v25 = vrot.slane %v5320_v59, 7  ;;  %v2090_v34 = vmul.f32 %v5424_v33, %v3859_v40 }
 0x173   : > { %v2043_v27 = vadd.f32 %v2037_v28, %v2013_v0  ;;  %v2102_v54 = vmul.f32 %v5069_v9, %v3922_v10  ;;  %v2108_v28 = vmul.f32 %v5238_v20, %v3865_v43  ;;  %v1955_v8 = vadd.f32 %v1949_v26, %v1943_v2  ;;  %v5469_v26 = vld [vmem:[%s3854_s9 + $0x1e8] sm:$0xff] }
 0x174   : > { %v1998_v51 = vsel %vm546_vm0, %v6545_v25, %v1997_v60  ;;  %v1999_v12 = vrot.slane %v1925_v31, 7  ;;  %v2084_v59 = vadd.f32 %v2078_v13, %v2072_v62  ;;  %v2120_v30 = vmul.f32 %v5424_v33, %v3879_v49 }
 0x175   : > { %3373 = vst [vmem:[%s3978_s17 + $0x198] sm:$0x3f] %v2043_v27  ;;  %v2014_v45 = vadd.f32 %v1998_v51, %v1954_v61  ;;  %v2114_v29 = vadd.f32 %v2108_v28, %v2102_v54  ;;  %v2132_v22 = vmul.f32 %v5069_v9, %v3945_v23  ;;  %v2135_v4 = vmul.f32 %v5439_v44, %v3945_v23  ;;  %v5458_v61 = vld [vmem:[%s3854_s9 + $0x1f8] sm:$0x3f] }
 0x176   : > { %v6546_v32 = vrot.slane %v5364_v1, 7  ;;  %v5453_v21 = vadd.f32 %v2090_v34, %v2084_v59  ;;  %v2138_v3 = vmul.f32 %v5238_v20, %v3894_v56  ;;  %v2141_v19 = vmul.f32 %v5451_v50, %v3894_v56 }
 0x177   : > { %v2044_v55 = vadd.f32 %v2038_v18, %v2014_v45  ;;  %v2126_v9 = vadd.f32 %v2120_v30, %v2114_v29  ;;  %v2150_v1 = vmul.f32 %v5279_v17, %v5424_v33  ;;  %v2153_v16 = vmul.f32 %v5279_v17, %v5458_v61  ;;  %v5488_v45 = vld [vmem:[%s3854_s9 + $0x1a0] sm:$0x3f]  ;;  %v5493_v29 = vld [vmem:[%s3854_s9 + $0x1d0] sm:$0x3f] }
 0x178   : > { %v2000_v39 = vsel %vm546_vm0, %v6546_v32, %v1999_v12  ;;  %v2144_v18 = vadd.f32 %v2138_v3, %v2132_v22  ;;  %v6464_v60 = vrot.slane %v5453_v21, 7  ;;  %v2073_v62 = vmul.f32 %v5114_v15, %v3916_v6  ;;  %v5501_v32 = vld [vmem:[%s3854_s9 + $0x200] sm:$0x3f] }
 0x179   : > { %v2015_v0 = vadd.f32 %v2000_v39, %v1955_v8  ;;  %3374 = vst [vmem:[%s3978_s17 + $0x1a0] sm:$0x3f] %v2044_v55  ;;  %v2147_v31 = vadd.f32 %v2141_v19, %v2135_v4  ;;  %v2079_v2 = vmul.f32 %v5288_v38, %v3849_v36  ;;  %v2091_v13 = vmul.f32 %v5469_v26, %v3861_v41 }
 0x17a   : > { %v2156_v25 = vadd.f32 %v2150_v1, %v2144_v18  ;;  %v2183_v51 = vsel %vm546_vm0, 0.0, %v6464_v60  ;;  %v2103_v34 = vmul.f32 %v5114_v15, %v3924_v11  ;;  %v2109_v54 = vmul.f32 %v5288_v38, %v3875_v47  ;;  %v6550_v60 = vld [vmem:[#allocation5_spill] sm:$0xff] }
 0x17b   : > { %v2045_v27 = vadd.f32 %v2039_v46, %v2015_v0  ;;  %v5485_v46 = vadd.f32 %v2153_v16, %v2147_v31  ;;  %v2186_v28 = vadd.f32 %v2183_v51, %v2126_v9  ;;  %v2085_v8 = vadd.f32 %v2079_v2, %v2073_v62  ;;  %v5518_v31 = vld [vmem:[%s3854_s9 + $0x1f0] sm:$0xff] }
 0x17c   : > { %v2121_v12 = vmul.f32 %v5469_v26, %v3885_v52  ;;  %v2198_v59 = vrot.slane %v2156_v25, 1  ;;  %v2115_v30 = vadd.f32 %v2109_v54, %v2103_v34  ;;  %v2133_v22 = vmul.f32 %v5114_v15, %v3947_v24  ;;  %6547 = vst [vmem:[#allocation9_spill] sm:$0xff] %v5518_v31 }
 0x17d   : > { %3375 = vst [vmem:[%s3978_s17 + $0x1a8] sm:$0x3f] %v2045_v27  ;;  %v2136_v4 = vmul.f32 %v5488_v45, %v3947_v24  ;;  %v2199_v55 = vrot.slane %v5485_v46, 1  ;;  %v5503_v39 = vadd.f32 %v2091_v13, %v2085_v8  ;;  %v2139_v3 = vmul.f32 %v5288_v38, %v3896_v57  ;;  %v6548_v13 = vld [vmem:[#allocation7_spill] sm:$0xff] }
 0x17e   : > { %v2142_v0 = vmul.f32 %v5493_v29, %v3896_v57  ;;  %v2127_v9 = vadd.f32 %v2121_v12, %v2115_v30  ;;  %v2151_v19 = vmul.f32 %v5329_v58, %v5469_v26  ;;  %v2154_v15 = vmul.f32 %v5329_v58, %v5501_v32 }
 0x17f   : > { %v2074_v1 = vmul.f32 %v5163_v63, %v3918_v7  ;;  %v2200_v18 = vsel %vm577_vm1, %v2198_v59, %v2199_v55  ;;  %v2145_v16 = vadd.f32 %v2139_v3, %v2133_v22  ;;  %v6463_v27 = vrot.slane %v5503_v39, 7  ;;  %v3381_v59 = vld [vmem:[%s3854_s9 + $0x1a8] sm:$0x3f] }
 0x180   : > { %v2148_v62 = vadd.f32 %v2142_v0, %v2136_v4  ;;  %v2216_v2 = vadd.f32 %v2200_v18, %v2186_v28  ;;  %v2080_v25 = vmul.f32 %v6548_v13, %v3851_v37  ;;  %v2092_v51 = vmul.f32 %v5518_v31, %v3863_v42  ;;  %v6549_v4 = vld [vmem:[#allocation6_spill] sm:$0xff] }
 0x181   : > { %v2104_v34 = vmul.f32 %v5163_v63, %v3932_v14  ;;  %v2157_v54 = vadd.f32 %v2151_v19, %v2145_v16  ;;  %v2184_v8 = vsel %vm546_vm0, 0.0, %v6463_v27  ;;  %v2110_v28 = vmul.f32 %v6548_v13, %v3877_v48 }
 0x182   : > { %v2160_v46 = vadd.f32 %v2154_v15, %v2148_v62  ;;  %3394 = vst [vmem:[%s3978_s17 + $0x1b0] sm:$0xff] %v2216_v2  ;;  %v2187_v12 = vadd.f32 %v2184_v8, %v2127_v9  ;;  %v2086_v30 = vadd.f32 %v2080_v25, %v2074_v1  ;;  %v2122_v22 = vmul.f32 %v5518_v31, %v3887_v53  ;;  %v3387_v15 = vld [vmem:[%s3854_s9 + $0x1d8] sm:$0x3f]  ;;  %v3393_v62 = vld [vmem:[%s3854_s9 + $0x208] sm:$0x3f] }
 0x183   : > { %v2134_v3 = vmul.f32 %v5163_v63, %v6549_v4  ;;  %v2201_v0 = vrot.slane %v2157_v54, 1  ;;  %v2116_v18 = vadd.f32 %v2110_v28, %v2104_v34  ;;  %v2137_v16 = vmul.f32 %v3381_v59, %v6549_v4  ;;  %v6551_v2 = vld [vmem:[#allocation8_spill] sm:$0xff] }
 0x184   : > { %v2202_v19 = vrot.slane %v2160_v46, 1  ;;  %v5540_v27 = vadd.f32 %v2092_v51, %v2086_v30  ;;  %v2140_v9 = vmul.f32 %v6548_v13, %v6550_v60  ;;  %v2143_v1 = vmul.f32 %v3387_v15, %v6550_v60 }
 0x185   : > { %v2152_v25 = vmul.f32 %v6551_v2, %v5518_v31  ;;  %v2128_v54 = vadd.f32 %v2122_v22, %v2116_v18  ;;  %v2155_v46 = vmul.f32 %v6551_v2, %v3393_v62  ;;  %v2075_v34 = vmul.f32 %v5439_v44, %v3914_v5 }
 0x186   : > { %v2203_v63 = vsel %vm577_vm1, %v2201_v0, %v2202_v19  ;;  %v2146_v51 = vadd.f32 %v2140_v9, %v2134_v3  ;;  %v2149_v28 = vadd.f32 %v2143_v1, %v2137_v16  ;;  %v2170_v30 = vrot.slane %v5540_v27, 7 }
 0x187   : > { %v2217_v8 = vadd.f32 %v2203_v63, %v2187_v12  ;;  %v2081_v4 = vmul.f32 %v5451_v50, %v3847_v35  ;;  %v2093_v60 = vmul.f32 %v5458_v61, %v3859_v40  ;;  %v2105_v0 = vmul.f32 %v5439_v44, %v3922_v10 }
 0x188   : > { %v2111_v22 = vmul.f32 %v5451_v50, %v3865_v43  ;;  %v2158_v18 = vadd.f32 %v2152_v25, %v2146_v51  ;;  %v2161_v2 = vadd.f32 %v2155_v46, %v2149_v28  ;;  %v2185_v12 = vsel %vm546_vm0, 0.0, %v2170_v30 }
 0x189   : > { %3395 = vst [vmem:[%s3978_s17 + $0x1b8] sm:$0xff] %v2217_v8  ;;  %v2123_v3 = vmul.f32 %v5458_v61, %v3879_v49  ;;  %v2188_v16 = vadd.f32 %v2185_v12, %v2128_v54  ;;  %v2087_v9 = vadd.f32 %v2081_v4, %v2075_v34  ;;  %v2213_v63 = vsel %vm593_vm2, %v2199_v55, 0.0 }
 0x18a   : > { %v2117_v1 = vadd.f32 %v2111_v22, %v2105_v0  ;;  %v2204_v31 = vrot.slane %v2158_v18, 1  ;;  %v2205_v44 = vrot.slane %v2161_v2, 1  ;;  %v2076_v50 = vmul.f32 %v5488_v45, %v3916_v6 }
 0x18b   : > { %v2082_v25 = vmul.f32 %v5493_v29, %v3849_v36  ;;  %v2099_v46 = vadd.f32 %v2093_v60, %v2087_v9  ;;  %v2094_v51 = vmul.f32 %v5501_v32, %v3861_v41  ;;  %v2106_v61 = vmul.f32 %v5488_v45, %v3924_v11 }
 0x18c   : > { %v2129_v8 = vadd.f32 %v2123_v3, %v2117_v1  ;;  %v2206_v4 = vsel %vm577_vm1, %v2204_v31, %v2205_v44  ;;  %v2112_v2 = vmul.f32 %v5493_v29, %v3875_v47  ;;  %v2124_v54 = vmul.f32 %v5501_v32, %v3885_v52 }
 0x18d   : > { %v2088_v55 = vadd.f32 %v2082_v25, %v2076_v50  ;;  %v2218_v34 = vadd.f32 %v2206_v4, %v2188_v16  ;;  %v2171_v28 = vrot.slane %v2099_v46, 7  ;;  %v2214_v60 = vsel %vm593_vm2, %v2202_v19, 0.0 }
 0x18e   : > { %v2077_v0 = vmul.f32 %v3381_v59, %v3918_v7  ;;  %v2118_v18 = vadd.f32 %v2112_v2, %v2106_v61  ;;  %v2083_v45 = vmul.f32 %v3387_v15, %v3851_v37  ;;  %v2095_v31 = vmul.f32 %v3393_v62, %v3863_v42 }
 0x18f   : > { %v2100_v22 = vadd.f32 %v2094_v51, %v2088_v55  ;;  %3396 = vst [vmem:[%s3978_s17 + $0x1c0] sm:$0xff] %v2218_v34  ;;  %v6552_v12 = vrot.slane %v5453_v21, 7  ;;  %v2107_v32 = vmul.f32 %v3381_v59, %v3932_v14  ;;  %v2113_v3 = vmul.f32 %v3387_v15, %v3877_v48  ;;  %v5593_v51 = vld [vmem:[%s3854_s9 + $0x210] sm:$0xff] }
 0x190   : > { %v2125_v19 = vmul.f32 %v3393_v62, %v3887_v53  ;;  %v2130_v9 = vadd.f32 %v2124_v54, %v2118_v18  ;;  %v2089_v50 = vadd.f32 %v2083_v45, %v2077_v0  ;;  %v2215_v46 = vsel %vm593_vm2, %v2205_v44, 0.0  ;;  %v5617_v18 = vld [vmem:[%s3854_s9 + $0x1f8] sm:$0x3f] }
 0x191   : > { %v2172_v29 = vsel %vm546_vm0, %v6552_v12, %v2171_v28  ;;  %v2173_v1 = vrot.slane %v2100_v22, 7  ;;  %v2119_v25 = vadd.f32 %v2113_v3, %v2107_v32  ;;  %v2248_v21 = vmul.f32 %v5238_v20, %v3914_v5  ;;  %v5608_v28 = vld [vmem:[%s3854_s9 + $0x1c8] sm:$0x3f] }
 0x192   : > { %v2189_v16 = vadd.f32 %v2172_v29, %v2129_v8  ;;  %v2254_v59 = vmul.f32 %v5424_v33, %v3847_v35  ;;  %v6553_v62 = vrot.slane %v5503_v39, 7  ;;  %v2101_v61 = vadd.f32 %v2095_v31, %v2089_v50  ;;  %v5629_v32 = vld [vmem:[%s3854_s9 + $0x228] sm:$0x3f]  ;;  %v5640_v50 = vld [vmem:[%s3854_s9 + $0x218] sm:$0xff] }
 0x193   : > { %v2266_v4 = vmul.f32 %v5593_v51, %v3859_v40  ;;  %v2131_v44 = vadd.f32 %v2125_v19, %v2119_v25  ;;  %v2278_v54 = vmul.f32 %v5238_v20, %v3922_v10  ;;  %v2284_v39 = vmul.f32 %v5424_v33, %v3865_v43 }
 0x194   : > { %v2219_v15 = vadd.f32 %v2213_v63, %v2189_v16  ;;  %v2174_v8 = vsel %vm546_vm0, %v6553_v62, %v2173_v1  ;;  %v2260_v2 = vadd.f32 %v2254_v59, %v2248_v21  ;;  %v2175_v34 = vrot.slane %v2101_v61, 7 }
 0x195   : > { %v2190_v55 = vadd.f32 %v2174_v8, %v2130_v9  ;;  %v2296_v63 = vmul.f32 %v5593_v51, %v3879_v49  ;;  %v2308_v0 = vmul.f32 %v5238_v20, %v3945_v23  ;;  %v2311_v31 = vmul.f32 %v5608_v28, %v3945_v23 }
 0x196   : > { %3397 = vst [vmem:[%s3978_s17 + $0x1c8] sm:$0x3f] %v2219_v15  ;;  %v5619_v45 = vadd.f32 %v2266_v4, %v2260_v2  ;;  %v2314_v12 = vmul.f32 %v5424_v33, %v3894_v56  ;;  %v2176_v29 = vsel %vm546_vm0, %v2170_v30, %v2175_v34  ;;  %v2290_v3 = vadd.f32 %v2284_v39, %v2278_v54  ;;  %v5657_v54 = vld [vmem:[%s3854_s9 + $0x1d0] sm:$0x3f] }
 0x197   : > { %v2220_v22 = vadd.f32 %v2214_v60, %v2190_v55  ;;  %v2317_v20 = vmul.f32 %v5617_v18, %v3894_v56  ;;  %v2326_v60 = vmul.f32 %v5279_v17, %v5593_v51  ;;  %v2191_v19 = vadd.f32 %v2176_v29, %v2131_v44 }
 0x198   : > { %v2320_v16 = vadd.f32 %v2314_v12, %v2308_v0  ;;  %v2329_v9 = vmul.f32 %v5279_v17, %v5629_v32  ;;  %v6471_v27 = vrot.slane %v5619_v45, 7  ;;  %v2302_v30 = vadd.f32 %v2296_v63, %v2290_v3  ;;  %v5667_v0 = vld [vmem:[%s3854_s9 + $0x200] sm:$0x3f] }
 0x199   : > { %3398 = vst [vmem:[%s3978_s17 + $0x1d0] sm:$0x3f] %v2220_v22  ;;  %v2323_v1 = vadd.f32 %v2317_v20, %v2311_v31  ;;  %v2249_v25 = vmul.f32 %v5288_v38, %v3916_v6  ;;  %v2255_v21 = vmul.f32 %v5469_v26, %v3849_v36  ;;  %v2221_v59 = vadd.f32 %v2215_v46, %v2191_v19  ;;  %v5670_v22 = vld [vmem:[%s3854_s9 + $0x230] sm:$0x3f] }
 0x19a   : > { %v2332_v15 = vadd.f32 %v2326_v60, %v2320_v16  ;;  %v2359_v62 = vsel %vm546_vm0, 0.0, %v6471_v27  ;;  %v2267_v8 = vmul.f32 %v5640_v50, %v3861_v41  ;;  %v2279_v44 = vmul.f32 %v5288_v38, %v3924_v11 }
 0x19b   : > { %v5651_v61 = vadd.f32 %v2329_v9, %v2323_v1  ;;  %v2362_v4 = vadd.f32 %v2359_v62, %v2302_v30  ;;  %v2261_v55 = vadd.f32 %v2255_v21, %v2249_v25  ;;  %3399 = vst [vmem:[%s3978_s17 + $0x1d8] sm:$0x3f] %v2221_v59  ;;  %v2285_v46 = vmul.f32 %v5469_v26, %v3875_v47  ;;  %v5689_v59 = vld [vmem:[%s3854_s9 + $0x220] sm:$0xff] }
 0x19c   : > { %v2374_v2 = vrot.slane %v2332_v15, 1  ;;  %v2297_v34 = vmul.f32 %v5640_v50, %v3885_v52  ;;  %v2309_v39 = vmul.f32 %v5288_v38, %v3947_v24  ;;  %v2312_v12 = vmul.f32 %v5657_v54, %v3947_v24  ;;  %6554 = vst [vmem:[#allocation7_spill] sm:$0xff] %v5689_v59  ;;  %v6555_v15 = vld [vmem:[#allocation9_spill] sm:$0xff] }
 0x19d   : > { %v2375_v63 = vrot.slane %v5651_v61, 1  ;;  %v5672_v31 = vadd.f32 %v2267_v8, %v2261_v55  ;;  %v2315_v29 = vmul.f32 %v5469_v26, %v3896_v57  ;;  %v2291_v3 = vadd.f32 %v2285_v46, %v2279_v44  ;;  %v3405_v46 = vld [vmem:[%s3854_s9 + $0x1d8] sm:$0x3f] }
 0x19e   : > { %v2318_v20 = vmul.f32 %v5667_v0, %v3896_v57  ;;  %v2327_v38 = vmul.f32 %v5329_v58, %v5640_v50  ;;  %v2330_v60 = vmul.f32 %v5329_v58, %v5670_v22  ;;  %v2250_v30 = vmul.f32 %v6548_v13, %v3918_v7 }
 0x19f   : > { %v2376_v19 = vsel %vm577_vm1, %v2374_v2, %v2375_v63  ;;  %v2321_v16 = vadd.f32 %v2315_v29, %v2309_v39  ;;  %v6470_v9 = vrot.slane %v5672_v31, 7  ;;  %v2303_v25 = vadd.f32 %v2297_v34, %v2291_v3  ;;  %v6556_v3 = vld [vmem:[#allocation6_spill] sm:$0xff] }
 0x1a0   : > { %v2392_v1 = vadd.f32 %v2376_v19, %v2362_v4  ;;  %v2324_v21 = vadd.f32 %v2318_v20, %v2312_v12  ;;  %v2256_v62 = vmul.f32 %v6555_v15, %v3851_v37  ;;  %v2268_v55 = vmul.f32 %v5689_v59, %v3863_v42 }
 0x1a1   : > { %v2333_v8 = vadd.f32 %v2327_v38, %v2321_v16  ;;  %v2360_v61 = vsel %vm546_vm0, 0.0, %v6470_v9  ;;  %v2280_v4 = vmul.f32 %v6548_v13, %v3932_v14  ;;  %v2286_v39 = vmul.f32 %v6555_v15, %v3877_v48  ;;  %v3411_v16 = vld [vmem:[%s3854_s9 + $0x208] sm:$0x3f]  ;;  %v3417_v9 = vld [vmem:[%s3854_s9 + $0x238] sm:$0x3f] }
 0x1a2   : > { %3418 = vst [vmem:[%s3978_s17 + $0x1e0] sm:$0xff] %v2392_v1  ;;  %v2336_v44 = vadd.f32 %v2330_v60, %v2324_v21  ;;  %v2363_v2 = vadd.f32 %v2360_v61, %v2303_v25  ;;  %v2262_v34 = vadd.f32 %v2256_v62, %v2250_v30  ;;  %v2298_v29 = vmul.f32 %v5689_v59, %v3887_v53  ;;  %v6557_v25 = vld [vmem:[#allocation5_spill] sm:$0xff]  ;;  %v6558_v62 = vld [vmem:[#allocation8_spill] sm:$0xff] }
 0x1a3   : > { %v2377_v12 = vrot.slane %v2333_v8, 1  ;;  %v2310_v20 = vmul.f32 %v6548_v13, %v6556_v3  ;;  %v2313_v38 = vmul.f32 %v3405_v46, %v6556_v3  ;;  %v2292_v60 = vadd.f32 %v2286_v39, %v2280_v4 }
 0x1a4   : > { %v2378_v19 = vrot.slane %v2336_v44, 1  ;;  %v5711_v1 = vadd.f32 %v2268_v55, %v2262_v34  ;;  %v2316_v30 = vmul.f32 %v6555_v15, %v6557_v25  ;;  %v2319_v21 = vmul.f32 %v3411_v16, %v6557_v25 }
 0x1a5   : > { %v2328_v8 = vmul.f32 %v6558_v62, %v5689_v59  ;;  %v2331_v61 = vmul.f32 %v6558_v62, %v3417_v9  ;;  %v2251_v13 = vmul.f32 %v5608_v28, %v3914_v5  ;;  %v2304_v27 = vadd.f32 %v2298_v29, %v2292_v60 }
 0x1a6   : > { %v2379_v44 = vsel %vm577_vm1, %v2377_v12, %v2378_v19  ;;  %v2322_v55 = vadd.f32 %v2316_v30, %v2310_v20  ;;  %v6477_v4 = vrot.slane %v5711_v1, 7  ;;  %v2325_v39 = vadd.f32 %v2319_v21, %v2313_v38 }
 0x1a7   : > { %v2393_v34 = vadd.f32 %v2379_v44, %v2363_v2  ;;  %v2257_v25 = vmul.f32 %v5617_v18, %v3847_v35  ;;  %v2269_v3 = vmul.f32 %v5629_v32, %v3859_v40  ;;  %v2281_v12 = vmul.f32 %v5608_v28, %v3922_v10 }
 0x1a8   : > { %v2334_v59 = vadd.f32 %v2328_v8, %v2322_v55  ;;  %v2361_v62 = vsel %vm546_vm0, 0.0, %v6477_v4  ;;  %v2287_v29 = vmul.f32 %v5617_v18, %v3865_v43  ;;  %v2337_v2 = vadd.f32 %v2331_v61, %v2325_v39 }
 0x1a9   : > { %3419 = vst [vmem:[%s3978_s17 + $0x1e8] sm:$0xff] %v2393_v34  ;;  %v2364_v20 = vadd.f32 %v2361_v62, %v2304_v27  ;;  %v2263_v38 = vadd.f32 %v2257_v25, %v2251_v13  ;;  %v2299_v60 = vmul.f32 %v5629_v32, %v3879_v49  ;;  %v2389_v8 = vsel %vm593_vm2, %v2375_v63, 0.0 }
 0x1aa   : > { %v2380_v30 = vrot.slane %v2334_v59, 1  ;;  %v2293_v21 = vadd.f32 %v2287_v29, %v2281_v12  ;;  %v2252_v44 = vmul.f32 %v5657_v54, %v3916_v6  ;;  %v2381_v55 = vrot.slane %v2337_v2, 1 }
 0x1ab   : > { %v2275_v4 = vadd.f32 %v2269_v3, %v2263_v38  ;;  %v2258_v28 = vmul.f32 %v5667_v0, %v3849_v36  ;;  %v2270_v18 = vmul.f32 %v5670_v22, %v3861_v41  ;;  %v2282_v32 = vmul.f32 %v5657_v54, %v3924_v11 }
 0x1ac   : > { %v2305_v27 = vadd.f32 %v2299_v60, %v2293_v21  ;;  %v2288_v59 = vmul.f32 %v5667_v0, %v3875_v47  ;;  %v2300_v63 = vmul.f32 %v5670_v22, %v3885_v52  ;;  %v2382_v25 = vsel %vm577_vm1, %v2380_v30, %v2381_v55 }
 0x1ad   : > { %v2347_v3 = vrot.slane %v2275_v4, 7  ;;  %v2264_v62 = vadd.f32 %v2258_v28, %v2252_v44  ;;  %v2390_v61 = vsel %vm593_vm2, %v2378_v19, 0.0  ;;  %v2394_v13 = vadd.f32 %v2382_v25, %v2364_v20 }
 0x1ae   : > { %v2294_v34 = vadd.f32 %v2288_v59, %v2282_v32  ;;  %v2253_v39 = vmul.f32 %v3405_v46, %v3918_v7  ;;  %v2259_v12 = vmul.f32 %v3411_v16, %v3851_v37  ;;  %v6559_v54 = vrot.slane %v5619_v45, 7 }
 0x1af   : > { %v2276_v0 = vadd.f32 %v2270_v18, %v2264_v62  ;;  %v2271_v22 = vmul.f32 %v3417_v9, %v3863_v42  ;;  %v2283_v2 = vmul.f32 %v3405_v46, %v3932_v14  ;;  %3420 = vst [vmem:[%s3978_s17 + $0x1f0] sm:$0xff] %v2394_v13  ;;  %v2289_v20 = vmul.f32 %v3411_v16, %v3877_v48  ;;  %v5766_v46 = vld [vmem:[%s3854_s9 + $0x240] sm:$0xff] }
 0x1b0   : > { %v2348_v29 = vsel %vm546_vm0, %v6559_v54, %v2347_v3  ;;  %v2306_v38 = vadd.f32 %v2300_v63, %v2294_v34  ;;  %v2265_v19 = vadd.f32 %v2259_v12, %v2253_v39  ;;  %v2301_v30 = vmul.f32 %v3417_v9, %v3887_v53  ;;  %v5781_v3 = vld [vmem:[%s3854_s9 + $0x1f8] sm:$0x3f] }
 0x1b1   : > { %v2365_v4 = vadd.f32 %v2348_v29, %v2305_v27  ;;  %v2349_v60 = vrot.slane %v2276_v0, 7  ;;  %v2391_v45 = vsel %vm593_vm2, %v2381_v55, 0.0  ;;  %v2424_v21 = vmul.f32 %v5424_v33, %v3914_v5  ;;  %v5793_v0 = vld [vmem:[%s3854_s9 + $0x228] sm:$0x3f] }
 0x1b2   : > { %v2277_v28 = vadd.f32 %v2271_v22, %v2265_v19  ;;  %v2295_v18 = vadd.f32 %v2289_v20, %v2283_v2  ;;  %v2430_v27 = vmul.f32 %v5593_v51, %v3847_v35  ;;  %v6560_v32 = vrot.slane %v5672_v31, 7 }
 0x1b3   : > { %v2395_v44 = vadd.f32 %v2389_v8, %v2365_v4  ;;  %v2442_v9 = vmul.f32 %v5766_v46, %v3859_v40  ;;  %v2454_v55 = vmul.f32 %v5424_v33, %v3922_v10  ;;  %v2460_v8 = vmul.f32 %v5593_v51, %v3865_v43 }
 0x1b4   : > { %v2350_v16 = vsel %vm546_vm0, %v6560_v32, %v2349_v60  ;;  %v2307_v63 = vadd.f32 %v2301_v30, %v2295_v18  ;;  %v2351_v25 = vrot.slane %v2277_v28, 7  ;;  %v2436_v31 = vadd.f32 %v2430_v27, %v2424_v21  ;;  %v5811_v30 = vld [vmem:[%s3854_s9 + $0x248] sm:$0xff] }
 0x1b5   : > { %3421 = vst [vmem:[%s3978_s17 + $0x1f8] sm:$0x3f] %v2395_v44  ;;  %v2366_v59 = vadd.f32 %v2350_v16, %v2306_v38  ;;  %v2466_v62 = vadd.f32 %v2460_v8, %v2454_v55  ;;  %v2472_v13 = vmul.f32 %v5766_v46, %v3879_v49  ;;  %v2484_v34 = vmul.f32 %v5424_v33, %v3945_v23  ;;  %v5800_v38 = vld [vmem:[%s3854_s9 + $0x258] sm:$0x3f]  ;;  %v5830_v8 = vld [vmem:[%s3854_s9 + $0x200] sm:$0x3f] }
 0x1b6   : > { %v2487_v39 = vmul.f32 %v5781_v3, %v3945_v23  ;;  %v6561_v54 = vrot.slane %v5711_v1, 7  ;;  %v5795_v22 = vadd.f32 %v2442_v9, %v2436_v31  ;;  %v2490_v2 = vmul.f32 %v5593_v51, %v3894_v56  ;;  %v5835_v31 = vld [vmem:[%s3854_s9 + $0x230] sm:$0x3f] }
 0x1b7   : > { %v2396_v12 = vadd.f32 %v2390_v61, %v2366_v59  ;;  %v2478_v33 = vadd.f32 %v2472_v13, %v2466_v62  ;;  %v2493_v19 = vmul.f32 %v5793_v0, %v3894_v56  ;;  %v2502_v1 = vmul.f32 %v5279_v17, %v5766_v46 }
 0x1b8   : > { %v2352_v29 = vsel %vm546_vm0, %v6561_v54, %v2351_v25  ;;  %v2496_v61 = vadd.f32 %v2490_v2, %v2484_v34  ;;  %v2505_v20 = vmul.f32 %v5279_v17, %v5800_v38  ;;  %v6479_v60 = vrot.slane %v5795_v22, 7 }
 0x1b9   : > { %v2367_v4 = vadd.f32 %v2352_v29, %v2307_v63  ;;  %3422 = vst [vmem:[%s3978_s17 + $0x200] sm:$0x3f] %v2396_v12  ;;  %v2425_v21 = vmul.f32 %v5469_v26, %v3916_v6  ;;  %v2499_v28 = vadd.f32 %v2493_v19, %v2487_v39  ;;  %v2431_v18 = vmul.f32 %v5640_v50, %v3849_v36  ;;  %v5843_v12 = vld [vmem:[%s3854_s9 + $0x260] sm:$0x3f] }
 0x1ba   : > { %v2443_v27 = vmul.f32 %v5811_v30, %v3861_v41  ;;  %v2508_v32 = vadd.f32 %v2502_v1, %v2496_v61  ;;  %v2535_v17 = vsel %vm546_vm0, 0.0, %v6479_v60  ;;  %v2455_v16 = vmul.f32 %v5469_v26, %v3924_v11 }
 0x1bb   : > { %v2397_v44 = vadd.f32 %v2391_v45, %v2367_v4  ;;  %v2461_v9 = vmul.f32 %v5640_v50, %v3875_v47  ;;  %v5827_v45 = vadd.f32 %v2505_v20, %v2499_v28  ;;  %v2538_v55 = vadd.f32 %v2535_v17, %v2478_v33 }
 0x1bc   : > { %v2437_v59 = vadd.f32 %v2431_v18, %v2425_v21  ;;  %v2473_v63 = vmul.f32 %v5811_v30, %v3885_v52  ;;  %v2550_v25 = vrot.slane %v2508_v32, 1  ;;  %v2485_v13 = vmul.f32 %v5469_v26, %v3947_v24  ;;  %v6562_v18 = vld [vmem:[#allocation7_spill] sm:$0xff] }
 0x1bd   : > { %3423 = vst [vmem:[%s3978_s17 + $0x208] sm:$0x3f] %v2397_v44  ;;  %v2467_v62 = vadd.f32 %v2461_v9, %v2455_v16  ;;  %v2488_v34 = vmul.f32 %v5830_v8, %v3947_v24  ;;  %v2551_v39 = vrot.slane %v5827_v45, 1  ;;  %v2491_v29 = vmul.f32 %v5640_v50, %v3896_v57  ;;  %v5860_v44 = vld [vmem:[%s3854_s9 + $0x250] sm:$0xff] }
 0x1be   : > { %v5845_v54 = vadd.f32 %v2443_v27, %v2437_v59  ;;  %v2494_v2 = vmul.f32 %v5835_v31, %v3896_v57  ;;  %v2503_v33 = vmul.f32 %v5329_v58, %v5811_v30  ;;  %v2506_v26 = vmul.f32 %v5329_v58, %v5843_v12  ;;  %v3429_v59 = vld [vmem:[%s3854_s9 + $0x208] sm:$0x3f] }
 0x1bf   : > { %v2479_v4 = vadd.f32 %v2473_v63, %v2467_v62  ;;  %v2426_v19 = vmul.f32 %v6555_v15, %v3918_v7  ;;  %v2552_v1 = vsel %vm577_vm1, %v2550_v25, %v2551_v39  ;;  %v2497_v61 = vadd.f32 %v2491_v29, %v2485_v13  ;;  %v6563_v62 = vld [vmem:[#allocation6_spill] sm:$0xff] }
 0x1c0   : > { %v2500_v20 = vadd.f32 %v2494_v2, %v2488_v34  ;;  %v6478_v21 = vrot.slane %v5845_v54, 7  ;;  %v2568_v28 = vadd.f32 %v2552_v1, %v2538_v55  ;;  %v2432_v27 = vmul.f32 %v6562_v18, %v3851_v37  ;;  %v3435_v2 = vld [vmem:[%s3854_s9 + $0x238] sm:$0x3f]  ;;  %v3441_v1 = vld [vmem:[%s3854_s9 + $0x268] sm:$0x3f] }
 0x1c1   : > { %v2444_v58 = vmul.f32 %v5860_v44, %v3863_v42  ;;  %v2456_v32 = vmul.f32 %v6555_v15, %v3932_v14  ;;  %v2509_v17 = vadd.f32 %v2503_v33, %v2497_v61  ;;  %v2462_v45 = vmul.f32 %v6562_v18, %v3877_v48 }
 0x1c2   : > { %v2512_v16 = vadd.f32 %v2506_v26, %v2500_v20  ;;  %v2536_v9 = vsel %vm546_vm0, 0.0, %v6478_v21  ;;  %3442 = vst [vmem:[%s3978_s17 + $0x210] sm:$0xff] %v2568_v28  ;;  %v2438_v63 = vadd.f32 %v2432_v27, %v2426_v19  ;;  %v2474_v25 = vmul.f32 %v5860_v44, %v3887_v53  ;;  %v6564_v20 = vld [vmem:[#allocation5_spill] sm:$0xff]  ;;  %v6565_v28 = vld [vmem:[#allocation8_spill] sm:$0xff] }
 0x1c3   : > { %v2539_v55 = vadd.f32 %v2536_v9, %v2479_v4  ;;  %v2486_v13 = vmul.f32 %v6555_v15, %v6563_v62  ;;  %v2553_v34 = vrot.slane %v2509_v17, 1  ;;  %v2468_v33 = vadd.f32 %v2462_v45, %v2456_v32 }
 0x1c4   : > { %v2554_v29 = vrot.slane %v2512_v16, 1  ;;  %v2489_v26 = vmul.f32 %v3429_v59, %v6563_v62  ;;  %v5882_v61 = vadd.f32 %v2444_v58, %v2438_v63  ;;  %v2492_v4 = vmul.f32 %v6562_v18, %v6564_v20 }
 0x1c5   : > { %v2495_v19 = vmul.f32 %v3435_v2, %v6564_v20  ;;  %v2504_v27 = vmul.f32 %v6565_v28, %v5860_v44  ;;  %v2480_v17 = vadd.f32 %v2474_v25, %v2468_v33  ;;  %v2507_v16 = vmul.f32 %v6565_v28, %v3441_v1 }
 0x1c6   : > { %v2555_v15 = vsel %vm577_vm1, %v2553_v34, %v2554_v29  ;;  %v2427_v32 = vmul.f32 %v5781_v3, %v3914_v5  ;;  %v2498_v58 = vadd.f32 %v2492_v4, %v2486_v13  ;;  %v2522_v63 = vrot.slane %v5882_v61, 7 }
 0x1c7   : > { %v2569_v9 = vadd.f32 %v2555_v15, %v2539_v55  ;;  %v2501_v45 = vadd.f32 %v2495_v19, %v2489_v26  ;;  %v2433_v21 = vmul.f32 %v5793_v0, %v3847_v35  ;;  %v2445_v60 = vmul.f32 %v5800_v38, %v3859_v40 }
 0x1c8   : > { %v2457_v34 = vmul.f32 %v5781_v3, %v3922_v10  ;;  %v2463_v25 = vmul.f32 %v5793_v0, %v3865_v43  ;;  %v2510_v33 = vadd.f32 %v2504_v27, %v2498_v58  ;;  %v2537_v55 = vsel %vm546_vm0, 0.0, %v2522_v63 }
 0x1c9   : > { %3443 = vst [vmem:[%s3978_s17 + $0x218] sm:$0xff] %v2569_v9  ;;  %v2513_v28 = vadd.f32 %v2507_v16, %v2501_v45  ;;  %v2475_v13 = vmul.f32 %v5800_v38, %v3879_v49  ;;  %v2540_v26 = vadd.f32 %v2537_v55, %v2480_v17  ;;  %v2439_v4 = vadd.f32 %v2433_v21, %v2427_v32 }
 0x1ca   : > { %v2469_v19 = vadd.f32 %v2463_v25, %v2457_v34  ;;  %v2565_v15 = vsel %vm593_vm2, %v2551_v39, 0.0  ;;  %v2556_v20 = vrot.slane %v2510_v33, 1  ;;  %v2428_v0 = vmul.f32 %v5830_v8, %v3916_v6 }
 0x1cb   : > { %v2557_v3 = vrot.slane %v2513_v28, 1  ;;  %v2434_v27 = vmul.f32 %v5835_v31, %v3849_v36  ;;  %v2451_v16 = vadd.f32 %v2445_v60, %v2439_v4  ;;  %v2446_v58 = vmul.f32 %v5843_v12, %v3861_v41 }
 0x1cc   : > { %v2481_v9 = vadd.f32 %v2475_v13, %v2469_v19  ;;  %v2458_v38 = vmul.f32 %v5830_v8, %v3924_v11  ;;  %v2464_v17 = vmul.f32 %v5835_v31, %v3875_v47  ;;  %v2476_v32 = vmul.f32 %v5843_v12, %v3885_v52 }
 0x1cd   : > { %v2558_v21 = vsel %vm577_vm1, %v2556_v20, %v2557_v3  ;;  %v2440_v39 = vadd.f32 %v2434_v27, %v2428_v0  ;;  %v2523_v60 = vrot.slane %v2451_v16, 7  ;;  %v2566_v34 = vsel %vm593_vm2, %v2554_v29, 0.0  ;;  %v5934_v29 = vld [vmem:[%s3854_s9 + $0x270] sm:$0xff] }
 0x1ce   : > { %v2570_v45 = vadd.f32 %v2558_v21, %v2540_v26  ;;  %v2429_v25 = vmul.f32 %v3429_v59, %v3918_v7  ;;  %v2470_v28 = vadd.f32 %v2464_v17, %v2458_v38  ;;  %v2435_v8 = vmul.f32 %v3435_v2, %v3851_v37 }
 0x1cf   : > { %v2452_v33 = vadd.f32 %v2446_v58, %v2440_v39  ;;  %v2447_v20 = vmul.f32 %v3441_v1, %v3863_v42  ;;  %v6566_v55 = vrot.slane %v5795_v22, 7  ;;  %v2459_v13 = vmul.f32 %v3429_v59, %v3932_v14 }
 0x1d0   : > { %3444 = vst [vmem:[%s3978_s17 + $0x220] sm:$0xff] %v2570_v45  ;;  %v2465_v12 = vmul.f32 %v3435_v2, %v3877_v48  ;;  %v2477_v26 = vmul.f32 %v3441_v1, %v3887_v53  ;;  %v2482_v19 = vadd.f32 %v2476_v32, %v2470_v28  ;;  %v2441_v27 = vadd.f32 %v2435_v8, %v2429_v25  ;;  %v5959_v28 = vld [vmem:[%s3854_s9 + $0x258] sm:$0x3f] }
 0x1d1   : > { %v2524_v31 = vsel %vm546_vm0, %v6566_v55, %v2523_v60  ;;  %v2525_v0 = vrot.slane %v2452_v33, 7  ;;  %v2567_v58 = vsel %vm593_vm2, %v2557_v3, 0.0  ;;  %v2600_v22 = vmul.f32 %v5593_v51, %v3914_v5 }
 0x1d2   : > { %v2541_v4 = vadd.f32 %v2524_v31, %v2481_v9  ;;  %v2471_v16 = vadd.f32 %v2465_v12, %v2459_v13  ;;  %v2606_v59 = vmul.f32 %v5766_v46, %v3847_v35  ;;  %v6567_v1 = vrot.slane %v5845_v54, 7  ;;  %v5971_v13 = vld [vmem:[%s3854_s9 + $0x288] sm:$0x3f] }
 0x1d3   : > { %v2453_v38 = vadd.f32 %v2447_v20, %v2441_v27  ;;  %v2618_v21 = vmul.f32 %v5934_v29, %v3859_v40  ;;  %v2630_v32 = vmul.f32 %v5593_v51, %v3922_v10  ;;  %v2636_v54 = vmul.f32 %v5766_v46, %v3865_v43 }
 0x1d4   : > { %v2571_v2 = vadd.f32 %v2565_v15, %v2541_v4  ;;  %v2526_v9 = vsel %vm546_vm0, %v6567_v1, %v2525_v0  ;;  %v2483_v17 = vadd.f32 %v2477_v26, %v2471_v16  ;;  %v2612_v3 = vadd.f32 %v2606_v59, %v2600_v22  ;;  %v5950_v15 = vld [vmem:[%s3854_s9 + $0x228] sm:$0x3f]  ;;  %v5978_v4 = vld [vmem:[%s3854_s9 + $0x278] sm:$0xff] }
 0x1d5   : > { %v2542_v39 = vadd.f32 %v2526_v9, %v2482_v19  ;;  %v2527_v45 = vrot.slane %v2453_v38, 7  ;;  %v2648_v60 = vmul.f32 %v5934_v29, %v3879_v49  ;;  %v2660_v25 = vmul.f32 %v5593_v51, %v3945_v23 }
 0x1d6   : > { %3445 = vst [vmem:[%s3978_s17 + $0x228] sm:$0x3f] %v2571_v2  ;;  %v5961_v8 = vadd.f32 %v2618_v21, %v2612_v3  ;;  %v2663_v20 = vmul.f32 %v5950_v15, %v3945_v23  ;;  %v2666_v55 = vmul.f32 %v5766_v46, %v3894_v56  ;;  %v2642_v12 = vadd.f32 %v2636_v54, %v2630_v32 }
 0x1d7   : > { %v2572_v33 = vadd.f32 %v2566_v34, %v2542_v39  ;;  %v2528_v31 = vsel %vm546_vm0, %v2522_v63, %v2527_v45  ;;  %v2669_v51 = vmul.f32 %v5959_v28, %v3894_v56  ;;  %v3546_v34 = vld [vmem:[%s3842_s16 + $0x18] ss:$0 sm:$0xff]  ;;  %v2601_v22 = vmul.f32 %v5640_v50, %v3916_v6 }
 0x1d8   : > { %v2678_v26 = vmul.f32 %v3546_v34, %v5934_v29  ;;  %v2543_v19 = vadd.f32 %v2528_v31, %v2483_v17  ;;  %v2672_v0 = vadd.f32 %v2666_v55, %v2660_v25  ;;  %v2681_v27 = vmul.f32 %v3546_v34, %v5971_v13 }
 0x1d9   : > { %3446 = vst [vmem:[%s3978_s17 + $0x230] sm:$0x3f] %v2572_v33  ;;  %v6482_v61 = vrot.slane %v5961_v8, 7  ;;  %v2654_v63 = vadd.f32 %v2648_v60, %v2642_v12  ;;  %v2675_v16 = vadd.f32 %v2669_v51, %v2663_v20  ;;  %v2607_v59 = vmul.f32 %v5811_v30, %v3849_v36  ;;  %v6008_v33 = vld [vmem:[%s3854_s9 + $0x260] sm:$0x3f] }
 0x1da   : > { %v2573_v2 = vadd.f32 %v2567_v58, %v2543_v19  ;;  %v2684_v1 = vadd.f32 %v2678_v26, %v2672_v0  ;;  %v2619_v38 = vmul.f32 %v5978_v4, %v3861_v41  ;;  %v2631_v3 = vmul.f32 %v5640_v50, %v3924_v11  ;;  %v5998_v58 = vld [vmem:[%s3854_s9 + $0x230] sm:$0x3f]  ;;  %v6025_v0 = vld [vmem:[%s3854_s9 + $0x280] sm:$0xff] }
 0x1db   : > { %v2711_v9 = vsel %vm546_vm0, 0.0, %v6482_v61  ;;  %v5992_v21 = vadd.f32 %v2681_v27, %v2675_v16  ;;  %v2613_v17 = vadd.f32 %v2607_v59, %v2601_v22  ;;  %v2637_v45 = vmul.f32 %v5811_v30, %v3875_v47  ;;  %v6011_v20 = vld [vmem:[%s3854_s9 + $0x290] sm:$0x3f] }
 0x1dc   : > { %v2714_v39 = vadd.f32 %v2711_v9, %v2654_v63  ;;  %3447 = vst [vmem:[%s3978_s17 + $0x238] sm:$0x3f] %v2573_v2  ;;  %v2726_v32 = vrot.slane %v2684_v1, 1  ;;  %v2649_v54 = vmul.f32 %v5978_v4, %v3885_v52  ;;  %v2661_v60 = vmul.f32 %v5640_v50, %v3947_v24  ;;  %v3547_v26 = vld [vmem:[%s3842_s16 + $0x20] ss:$0 sm:$0xff] }
 0x1dd   : > { %v6483_v25 = vrot.slane %v5992_v21, 1  ;;  %v6013_v55 = vadd.f32 %v2619_v38, %v2613_v17  ;;  %v2664_v31 = vmul.f32 %v5998_v58, %v3947_v24  ;;  %v2667_v12 = vmul.f32 %v5811_v30, %v3896_v57 }
 0x1de   : > { %v2643_v51 = vadd.f32 %v2637_v45, %v2631_v3  ;;  %v2670_v34 = vmul.f32 %v6008_v33, %v3896_v57  ;;  %v2679_v50 = vmul.f32 %v3547_v26, %v5978_v4  ;;  %v2682_v19 = vmul.f32 %v3547_v26, %v6011_v20 }
 0x1df   : > { %v2728_v27 = vsel %vm577_vm1, %v2726_v32, %v6483_v25  ;;  %v2673_v63 = vadd.f32 %v2667_v12, %v2661_v60  ;;  %v6481_v16 = vrot.slane %v6013_v55, 7  ;;  %v2602_v22 = vmul.f32 %v6562_v18, %v3918_v7 }
 0x1e0   : > { %v2744_v59 = vadd.f32 %v2728_v27, %v2714_v39  ;;  %v2655_v2 = vadd.f32 %v2649_v54, %v2643_v51  ;;  %v2676_v1 = vadd.f32 %v2670_v34, %v2664_v31  ;;  %v2608_v9 = vmul.f32 %v5860_v44, %v3851_v37  ;;  %v3453_v54 = vld [vmem:[%s3854_s9 + $0x238] sm:$0x3f]  ;;  %v3459_v27 = vld [vmem:[%s3854_s9 + $0x268] sm:$0x3f] }
 0x1e1   : > { %v2685_v38 = vadd.f32 %v2679_v50, %v2673_v63  ;;  %v2712_v17 = vsel %vm546_vm0, 0.0, %v6481_v16  ;;  %v2620_v3 = vmul.f32 %v6025_v0, %v3863_v42  ;;  %v2632_v32 = vmul.f32 %v6562_v18, %v3932_v14  ;;  %v3465_v63 = vld [vmem:[%s3854_s9 + $0x298] sm:$0x3f] }
 0x1e2   : > { %3466 = vst [vmem:[%s3978_s17 + $0x240] sm:$0xff] %v2744_v59  ;;  %v2688_v39 = vadd.f32 %v2682_v19, %v2676_v1  ;;  %v2715_v45 = vadd.f32 %v2712_v17, %v2655_v2  ;;  %v2614_v60 = vadd.f32 %v2608_v9, %v2602_v22  ;;  %v2638_v31 = vmul.f32 %v5860_v44, %v3877_v48  ;;  %v6568_v2 = vld [vmem:[#allocation5_spill] sm:$0xff]  ;;  %v3548_v9 = vld [vmem:[%s3842_s16 + $0x28] ss:$0 sm:$0xff] }
 0x1e3   : > { %v2729_v12 = vrot.slane %v2685_v38, 1  ;;  %v2650_v51 = vmul.f32 %v6025_v0, %v3887_v53  ;;  %v2662_v34 = vmul.f32 %v6562_v18, %v6563_v62  ;;  %v2665_v26 = vmul.f32 %v3453_v54, %v6563_v62 }
 0x1e4   : > { %v2730_v50 = vrot.slane %v2688_v39, 1  ;;  %v6053_v19 = vadd.f32 %v2620_v3, %v2614_v60  ;;  %v2644_v59 = vadd.f32 %v2638_v31, %v2632_v32  ;;  %v2668_v22 = vmul.f32 %v5860_v44, %v6568_v2 }
 0x1e5   : > { %v2671_v1 = vmul.f32 %v3459_v27, %v6568_v2  ;;  %v2680_v38 = vmul.f32 %v3548_v9, %v6025_v0  ;;  %v2683_v17 = vmul.f32 %v3548_v9, %v3465_v63  ;;  %v2603_v18 = vmul.f32 %v5950_v15, %v3914_v5 }
 0x1e6   : > { %v2731_v39 = vsel %vm577_vm1, %v2729_v12, %v2730_v50  ;;  %v2656_v16 = vadd.f32 %v2650_v51, %v2644_v59  ;;  %v2674_v61 = vadd.f32 %v2668_v22, %v2662_v34  ;;  %v2698_v3 = vrot.slane %v6053_v19, 7 }
 0x1e7   : > { %v2745_v32 = vadd.f32 %v2731_v39, %v2715_v45  ;;  %v2677_v60 = vadd.f32 %v2671_v1, %v2665_v26  ;;  %v2609_v31 = vmul.f32 %v5959_v28, %v3847_v35  ;;  %v2621_v25 = vmul.f32 %v5971_v13, %v3859_v40 }
 0x1e8   : > { %v2686_v2 = vadd.f32 %v2680_v38, %v2674_v61  ;;  %v2713_v9 = vsel %vm546_vm0, 0.0, %v2698_v3  ;;  %v2633_v12 = vmul.f32 %v5950_v15, %v3922_v10  ;;  %v2639_v51 = vmul.f32 %v5959_v28, %v3865_v43 }
 0x1e9   : > { %3467 = vst [vmem:[%s3978_s17 + $0x248] sm:$0xff] %v2745_v32  ;;  %v2689_v45 = vadd.f32 %v2683_v17, %v2677_v60  ;;  %v2716_v34 = vadd.f32 %v2713_v9, %v2656_v16  ;;  %v2615_v26 = vadd.f32 %v2609_v31, %v2603_v18  ;;  %v2651_v59 = vmul.f32 %v5971_v13, %v3879_v49 }
 0x1ea   : > { %v2732_v22 = vrot.slane %v2686_v2, 1  ;;  %v2645_v40 = vadd.f32 %v2639_v51, %v2633_v12  ;;  %v6569_v61 = vrot.slane %v5992_v21, 1  ;;  %v2604_v38 = vmul.f32 %v5998_v58, %v3916_v6 }
 0x1eb   : > { %v2733_v15 = vrot.slane %v2689_v45, 1  ;;  %v2627_v39 = vadd.f32 %v2621_v25, %v2615_v26  ;;  %v2610_v28 = vmul.f32 %v6008_v33, %v3849_v36  ;;  %v2622_v16 = vmul.f32 %v6011_v20, %v3861_v41 }
 0x1ec   : > { %v2741_v1 = vsel %vm593_vm2, %v6569_v61, 0.0  ;;  %v2657_v17 = vadd.f32 %v2651_v59, %v2645_v40  ;;  %v2634_v49 = vmul.f32 %v5998_v58, %v3924_v11  ;;  %v2640_v13 = vmul.f32 %v6008_v33, %v3875_v47 }
 0x1ed   : > { %v2652_v21 = vmul.f32 %v6011_v20, %v3885_v52  ;;  %v2734_v2 = vsel %vm577_vm1, %v2732_v22, %v2733_v15  ;;  %v2699_v25 = vrot.slane %v2627_v39, 7  ;;  %v2616_v18 = vadd.f32 %v2610_v28, %v2604_v38 }
 0x1ee   : > { %v2742_v32 = vsel %vm593_vm2, %v2730_v50, 0.0  ;;  %v2746_v60 = vadd.f32 %v2734_v2, %v2716_v34  ;;  %v2646_v31 = vadd.f32 %v2640_v13, %v2634_v49  ;;  %v2605_v41 = vmul.f32 %v3453_v54, %v3918_v7 }
 0x1ef   : > { %v2611_v9 = vmul.f32 %v3459_v27, %v3851_v37  ;;  %v6570_v58 = vrot.slane %v5961_v8, 7  ;;  %v2628_v33 = vadd.f32 %v2622_v16, %v2616_v18  ;;  %v2623_v51 = vmul.f32 %v3465_v63, %v3863_v42  ;;  %v3475_v16 = vld [vmem:[%s3854_s9 + $0x258] sm:$0x3f] }
 0x1f0   : > { %v2635_v52 = vmul.f32 %v3453_v54, %v3932_v14  ;;  %3468 = vst [vmem:[%s3978_s17 + $0x250] sm:$0xff] %v2746_v60  ;;  %v2658_v45 = vadd.f32 %v2652_v21, %v2646_v31  ;;  %v2641_v34 = vmul.f32 %v3459_v27, %v3877_v48  ;;  %v2653_v59 = vmul.f32 %v3465_v63, %v3887_v53 }
 0x1f1   : > { %v2700_v12 = vsel %vm546_vm0, %v6570_v58, %v2699_v25  ;;  %v2617_v50 = vadd.f32 %v2611_v9, %v2605_v41  ;;  %v2701_v26 = vrot.slane %v2628_v33, 7  ;;  %v2743_v8 = vsel %vm593_vm2, %v2733_v15, 0.0 }
 0x1f2   : > { %v2717_v20 = vadd.f32 %v2700_v12, %v2657_v17  ;;  %v2769_v22 = vmul.f32 %v5766_v46, %v3914_v5  ;;  %v2647_v54 = vadd.f32 %v2641_v34, %v2635_v52  ;;  %v2775_v61 = vmul.f32 %v5934_v29, %v3847_v35  ;;  %v3481_v17 = vld [vmem:[%s3854_s9 + $0x288] sm:$0x3f]  ;;  %v3482_v52 = vld [vmem:[%s3854_s9 + $0x290] sm:$0x3f] }
 0x1f3   : > { %v2629_v40 = vadd.f32 %v2623_v51, %v2617_v50  ;;  %v6571_v38 = vrot.slane %v6013_v55, 7  ;;  %v2787_v39 = vmul.f32 %v5766_v46, %v3922_v10  ;;  %v2793_v53 = vmul.f32 %v5934_v29, %v3865_v43  ;;  %v3476_v51 = vld [vmem:[%s3854_s9 + $0x260] sm:$0x3f] }
 0x1f4   : > { %v2747_v42 = vadd.f32 %v2741_v1, %v2717_v20  ;;  %v2805_v63 = vmul.f32 %v5766_v46, %v3945_v23  ;;  %v2659_v15 = vadd.f32 %v2653_v59, %v2647_v54  ;;  %v6122_v49 = vadd.f32 %v2775_v61, %v2769_v22  ;;  %v3477_v54 = vld [vmem:[%s3854_s9 + $0x268] sm:$0x3f] }
 0x1f5   : > { %v2702_v27 = vsel %vm546_vm0, %v6571_v38, %v2701_v26  ;;  %v2703_v28 = vrot.slane %v2629_v40, 7  ;;  %v2799_v55 = vadd.f32 %v2793_v53, %v2787_v39  ;;  %v2808_v13 = vmul.f32 %v3475_v16, %v3945_v23  ;;  %v3483_v53 = vld [vmem:[%s3854_s9 + $0x298] sm:$0x3f] }
 0x1f6   : > { %3469 = vst [vmem:[%s3978_s17 + $0x258] sm:$0x3f] %v2747_v42  ;;  %v2718_v1 = vadd.f32 %v2702_v27, %v2658_v45  ;;  %v2811_v21 = vmul.f32 %v5934_v29, %v3894_v56  ;;  %v2814_v2 = vmul.f32 %v3481_v17, %v3894_v56  ;;  %v2829_v18 = vrot.slane %v6122_v49, 7 }
 0x1f7   : > { %v2704_v46 = vsel %vm546_vm0, %v2698_v3, %v2703_v28  ;;  %v2770_v60 = vmul.f32 %v5811_v30, %v3916_v6  ;;  %v2776_v29 = vmul.f32 %v5978_v4, %v3849_v36  ;;  %v2788_v19 = vmul.f32 %v5811_v30, %v3924_v11 }
 0x1f8   : > { %v2748_v25 = vadd.f32 %v2742_v32, %v2718_v1  ;;  %v2719_v31 = vadd.f32 %v2704_v46, %v2659_v15  ;;  %v2817_v41 = vadd.f32 %v2811_v21, %v2805_v63  ;;  %v6134_v23 = vadd.f32 %v2814_v2, %v2808_v13  ;;  %v6572_v1 = vld [vmem:[#allocation5_spill] sm:$0xff] }
 0x1f9   : > { %v2844_v56 = vsel %vm546_vm0, 0.0, %v2829_v18  ;;  %v2794_v3 = vmul.f32 %v5978_v4, %v3875_v47  ;;  %v2806_v32 = vmul.f32 %v5811_v30, %v3947_v24  ;;  %v6151_v20 = vadd.f32 %v2776_v29, %v2770_v60 }
 0x1fa   : > { %3470 = vst [vmem:[%s3978_s17 + $0x260] sm:$0x3f] %v2748_v25  ;;  %v2749_v9 = vadd.f32 %v2743_v8, %v2719_v31  ;;  %v2847_v58 = vadd.f32 %v2844_v56, %v2799_v55  ;;  %v2859_v12 = vrot.slane %v2817_v41, 1  ;;  %v2860_v33 = vrot.slane %v6134_v23, 1 }
 0x1fb   : > { %v2800_v45 = vadd.f32 %v2794_v3, %v2788_v19  ;;  %v2809_v50 = vmul.f32 %v3476_v51, %v3947_v24  ;;  %v2812_v34 = vmul.f32 %v5978_v4, %v3896_v57  ;;  %v2815_v26 = vmul.f32 %v3482_v52, %v3896_v57 }
 0x1fc   : > { %3471 = vst [vmem:[%s3978_s17 + $0x268] sm:$0x3f] %v2749_v9  ;;  %v2861_v30 = vsel %vm577_vm1, %v2859_v12, %v2860_v33  ;;  %v2771_v59 = vmul.f32 %v5860_v44, %v3918_v7  ;;  %v2777_v8 = vmul.f32 %v6025_v0, %v3851_v37  ;;  %v2830_v24 = vrot.slane %v6151_v20, 7 }
 0x1fd   : > { %v2877_v22 = vadd.f32 %v2861_v30, %v2847_v58  ;;  %v2818_v42 = vadd.f32 %v2812_v34, %v2806_v32  ;;  %v2789_v40 = vmul.f32 %v5860_v44, %v3932_v14  ;;  %v2821_v4 = vadd.f32 %v2815_v26, %v2809_v50 }
 0x1fe   : > { %v2783_v61 = vadd.f32 %v2777_v8, %v2771_v59  ;;  %v2795_v38 = vmul.f32 %v6025_v0, %v3877_v48  ;;  %v2807_v57 = vmul.f32 %v5860_v44, %v6563_v62  ;;  %v2845_v27 = vsel %vm546_vm0, 0.0, %v2830_v24  ;;  %v2914_v8 = vld [vmem:[%s3978_s17] sm:$0xff] (%p3643_p6) }
 0x1ff   : > { %3484 = vst [vmem:[%s3978_s17 + $0x270] sm:$0xff] %v2877_v22  ;;  %v2862_v39 = vrot.slane %v2818_v42, 1  ;;  %v2810_v63 = vmul.f32 %v3477_v54, %v6563_v62  ;;  %v2813_v15 = vmul.f32 %v6025_v0, %v6572_v1  ;;  %v2848_v28 = vadd.f32 %v2845_v27, %v2800_v45  ;;  %v2916_v22 = vld [vmem:[%s3978_s17 + $0x8] sm:$0xff] (%p3643_p6)  ;;  %v2918_v42 = vld [vmem:[%s3978_s17 + $0x10] sm:$0xff] (%p3643_p6)  ;;  %2915 = vst [vmem:[%s6218_s22] sm:$0xff] (%p3643_p6), %v2914_v8 }
 0x200   : > { %v2863_v55 = vrot.slane %v2821_v4, 1  ;;  %v2801_v13 = vadd.f32 %v2795_v38, %v2789_v40  ;;  %v2816_v21 = vmul.f32 %v3483_v53, %v6572_v1  ;;  %v2831_v25 = vrot.slane %v2783_v61, 7  ;;  %v2922_v40 = vld [vmem:[%s3978_s17 + $0x20] sm:$0xff] (%p3643_p6)  ;;  %v2924_v4 = vld [vmem:[%s3978_s17 + $0x28] sm:$0xff] (%p3643_p6)  ;;  %v2928_v61 = vld [vmem:[%s3978_s17 + $0x38] sm:$0xff] (%p3643_p6)  ;;  %2917 = vst [vmem:[%s6218_s22 + $0x8] sm:$0xff] (%p3643_p6), %v2916_v22 }
 0x201   : > { %v2819_v2 = vadd.f32 %v2813_v15, %v2807_v57  ;;  %v2772_v44 = vmul.f32 %v3475_v16, %v3914_v5  ;;  %v2778_v46 = vmul.f32 %v3481_v17, %v3847_v35  ;;  %v2790_v62 = vmul.f32 %v3475_v16, %v3922_v10  ;;  %v2930_v38 = vld [vmem:[%s3978_s17 + $0x40] sm:$0xff] (%p3643_p6)  ;;  %2919 = vst [vmem:[%s6218_s22 + $0x10] sm:$0xff] (%p3643_p6), %v2918_v42  ;;  %v2932_v57 = vld [vmem:[%s3978_s17 + $0x48] sm:$0xff] (%p3643_p6)  ;;  %v2934_v27 = vld [vmem:[%s3978_s17 + $0x50] sm:$0xff] (%p3643_p6) }
 0x202   : > { %v2864_v60 = vsel %vm577_vm1, %v2862_v39, %v2863_v55  ;;  %v2822_v31 = vadd.f32 %v2816_v21, %v2810_v63  ;;  %v2796_v41 = vmul.f32 %v3481_v17, %v3865_v43  ;;  %v2846_v23 = vsel %vm546_vm0, 0.0, %v2831_v25  ;;  %2923 = vst [vmem:[%s6218_s22 + $0x50] sm:$0xff] (%p3643_p6), %v2922_v40  ;;  %2925 = vst [vmem:[%s6218_s22 + $0x58] sm:$0xff] (%p3643_p6), %v2924_v4  ;;  %v2936_v39 = vld [vmem:[%s3978_s17 + $0x58] sm:$0xff] (%p3643_p6)  ;;  %v2940_v63 = vld [vmem:[%s3978_s17 + $0x68] sm:$0xff] (%p3643_p6) }
 0x203   : > { %v2878_v0 = vadd.f32 %v2864_v60, %v2848_v28  ;;  %v2865_v29 = vrot.slane %v2819_v2, 1  ;;  %v2784_v56 = vadd.f32 %v2778_v46, %v2772_v44  ;;  %v2849_v19 = vadd.f32 %v2846_v23, %v2801_v13  ;;  %2929 = vst [vmem:[%s6218_s22 + $0x98] sm:$0xff] (%p3643_p6), %v2928_v61  ;;  %2931 = vst [vmem:[%s6218_s22 + $0xa0] sm:$0xff] (%p3643_p6), %v2930_v38  ;;  %v2942_v1 = vld [vmem:[%s3978_s17 + $0x70] sm:$0xff] (%p3643_p6)  ;;  %v2944_v15 = vld [vmem:[%s3978_s17 + $0x78] sm:$0xff] (%p3643_p6) }
 0x204   : > { %v2866_v3 = vrot.slane %v2822_v31, 1  ;;  %v2802_v32 = vadd.f32 %v2796_v41, %v2790_v62  ;;  %v2773_v35 = vmul.f32 %v3476_v51, %v3916_v6  ;;  %v2779_v5 = vmul.f32 %v3482_v52, %v3849_v36  ;;  %2933 = vst [vmem:[%s6218_s22 + $0xd8] sm:$0xff] (%p3643_p6), %v2932_v57  ;;  %2935 = vst [vmem:[%s6218_s22 + $0xe0] sm:$0xff] (%p3643_p6), %v2934_v27  ;;  %v2946_v28 = vld [vmem:[%s3978_s17 + $0x80] sm:$0xff] (%p3643_p6)  ;;  %v2950_v13 = vld [vmem:[%s3978_s17 + $0x90] sm:$0xff] (%p3643_p6) }
 0x205   : > { %3485 = vst [vmem:[%s3978_s17 + $0x278] sm:$0xff] %v2878_v0  ;;  %v2832_v9 = vrot.slane %v2784_v56, 7  ;;  %v2791_v58 = vmul.f32 %v3476_v51, %v3924_v11  ;;  %v2874_v43 = vsel %vm593_vm2, %v2860_v33, 0.0  ;;  %v2797_v16 = vmul.f32 %v3482_v52, %v3875_v47  ;;  %2937 = vst [vmem:[%s6218_s22 + $0xe8] sm:$0xff] (%p3643_p6), %v2936_v39  ;;  %v2952_v21 = vld [vmem:[%s3978_s17 + $0x98] sm:$0xff] (%p3643_p6)  ;;  %v2954_v2 = vld [vmem:[%s3978_s17 + $0xa0] sm:$0xff] (%p3643_p6) }
 0x206   : > { %v2867_v10 = vsel %vm577_vm1, %v2865_v29, %v2866_v3  ;;  %v2774_v17 = vmul.f32 %v3477_v54, %v3918_v7  ;;  %v2785_v45 = vadd.f32 %v2779_v5, %v2773_v35  ;;  %v2780_v6 = vmul.f32 %v3483_v53, %v3851_v37  ;;  %2941 = vst [vmem:[%s6218_s22 + $0x128] sm:$0xff] (%p3643_p6), %v2940_v63  ;;  %v2958_v44 = vld [vmem:[%s3978_s17 + $0xb0] sm:$0xff] (%p3643_p6)  ;;  %v2960_v46 = vld [vmem:[%s3978_s17 + $0xb8] sm:$0xff] (%p3643_p6)  ;;  %v2962_v60 = vld [vmem:[%s3978_s17 + $0xc0] sm:$0xff] (%p3643_p6) }
 0x207   : > { %v2879_v12 = vadd.f32 %v2867_v10, %v2849_v19  ;;  %v2833_v20 = vsel %vm546_vm0, %v2829_v18, %v2832_v9  ;;  %v2803_v50 = vadd.f32 %v2797_v16, %v2791_v58  ;;  %v2792_v11 = vmul.f32 %v3477_v54, %v3932_v14  ;;  %v2926_v54 = vld [vmem:[%s3978_s17 + $0x30] sm:$0xff] (%p3643_p6)  ;;  %2943 = vst [vmem:[%s6218_s22 + $0x130] sm:$0xff] (%p3643_p6), %v2942_v1  ;;  %v2964_v31 = vld [vmem:[%s3978_s17 + $0xc8] sm:$0xff] (%p3643_p6)  ;;  %v2968_v41 = vld [vmem:[%s3978_s17 + $0xd8] sm:$0xff] (%p3643_p6) }
 0x208   : > { %v2850_v36 = vadd.f32 %v2833_v20, %v2802_v32  ;;  %v2798_v33 = vmul.f32 %v3483_v53, %v3877_v48  ;;  %v2834_v47 = vrot.slane %v2785_v45, 7  ;;  %v2786_v7 = vadd.f32 %v2780_v6, %v2774_v17  ;;  %2927 = vst [vmem:[%s6218_s22 + $0x90] sm:$0xff] (%p3643_p6), %v2926_v54  ;;  %v2938_v53 = vld [vmem:[%s3978_s17 + $0x60] sm:$0xff] (%p3643_p6)  ;;  %2945 = vst [vmem:[%s6218_s22 + $0x168] sm:$0xff] (%p3643_p6), %v2944_v15  ;;  %v2966_v62 = vld [vmem:[%s3978_s17 + $0xd0] sm:$0xff] (%p3643_p6) }
 0x209   : > { %3486 = vst [vmem:[%s3978_s17 + $0x280] sm:$0xff] %v2879_v12  ;;  %v2875_v18 = vsel %vm593_vm2, %v2863_v55, 0.0  ;;  %v2876_v14 = vsel %vm593_vm2, %v2866_v3, 0.0  ;;  %2939 = vst [vmem:[%s6218_s22 + $0x120] sm:$0xff] (%p3643_p6), %v2938_v53  ;;  %v2948_v55 = vld [vmem:[%s3978_s17 + $0x88] sm:$0xff] (%p3643_p6)  ;;  %v2970_v0 = vld [vmem:[%s3978_s17 + $0xe0] sm:$0xff] (%p3643_p6) }
 0x20a   : > { %v2880_v51 = vadd.f32 %v2874_v43, %v2850_v36  ;;  %v2804_v52 = vadd.f32 %v2798_v33, %v2792_v11  ;;  %v2835_v49 = vsel %vm546_vm0, %v2830_v24, %v2834_v47  ;;  %v2836_v34 = vrot.slane %v2786_v7, 7  ;;  %v2920_v24 = vld [vmem:[%s3978_s17 + $0x18] sm:$0xff] (%p3643_p6)  ;;  %2947 = vst [vmem:[%s6218_s22 + $0x170] sm:$0xff] (%p3643_p6), %v2946_v28  ;;  %2949 = vst [vmem:[%s6218_s22 + $0x178] sm:$0xff] (%p3643_p6), %v2948_v55  ;;  %v2972_v23 = vld [vmem:[%s3978_s17 + $0xe8] sm:$0xff] (%p3643_p6) }
 0x20b   : > { %v2851_v37 = vadd.f32 %v2835_v49, %v2803_v50  ;;  %2921 = vst [vmem:[%s6218_s22 + $0x48] sm:$0xff] (%p3643_p6), %v2920_v24  ;;  %2951 = vst [vmem:[%s6218_s22 + $0x1b0] sm:$0xff] (%p3643_p6), %v2950_v13  ;;  %v2974_v29 = vld [vmem:[%s3978_s17 + $0xf0] sm:$0xff] (%p3643_p6)  ;;  %v2976_v56 = vld [vmem:[%s3978_s17 + $0xf8] sm:$0xff] (%p3643_p6) }
 0x20c   : > { %3487 = vst [vmem:[%s3978_s17 + $0x288] sm:$0x3f] %v2880_v51  ;;  %v2837_v30 = vsel %vm546_vm0, %v2831_v25, %v2836_v34  ;;  %2953 = vst [vmem:[%s6218_s22 + $0x1b8] sm:$0xff] (%p3643_p6), %v2952_v21  ;;  %v2956_v25 = vld [vmem:[%s3978_s17 + $0xa8] sm:$0xff] (%p3643_p6)  ;;  %v2978_v19 = vld [vmem:[%s3978_s17 + $0x100] sm:$0xff] (%p3643_p6) }
 0x20d   : > { %v2881_v26 = vadd.f32 %v2875_v18, %v2851_v37  ;;  %v2852_v59 = vadd.f32 %v2837_v30, %v2804_v52  ;;  %2896 = sbr.rel (!%p3643_p6) target bundleno = 558 (0x22e), region = 78  ;;  %2955 = vst [vmem:[%s6218_s22 + $0x1c0] sm:$0xff] (%p3643_p6), %v2954_v2  ;;  %2957 = vst [vmem:[%s6218_s22 + $0x1f8] sm:$0xff] (%p3643_p6), %v2956_v25  ;;  %v2980_v3 = vld [vmem:[%s3978_s17 + $0x108] sm:$0xff] (%p3643_p6)  ;;  %v2982_v32 = vld [vmem:[%s3978_s17 + $0x110] sm:$0xff] (%p3643_p6) }
 0x20e   : > { %2959 = vst [vmem:[%s6218_s22 + $0x200] sm:$0xff] (%p3643_p6), %v2958_v44  ;;  %2961 = vst [vmem:[%s6218_s22 + $0x208] sm:$0xff] (%p3643_p6), %v2960_v46  ;;  %v2984_v9 = vld [vmem:[%s3978_s17 + $0x118] sm:$0xff] (%p3643_p6)  ;;  %v2986_v35 = vld [vmem:[%s3978_s17 + $0x120] sm:$0xff] (%p3643_p6) }
 0x20f   : > { %3488 = vst [vmem:[%s3978_s17 + $0x290] sm:$0x3f] %v2881_v26  ;;  %v2882_v48 = vadd.f32 %v2876_v14, %v2852_v59  ;;  %2963 = vst [vmem:[%s6218_s22 + $0x240] sm:$0xff] (%p3643_p6), %v2962_v60  ;;  %v2988_v5 = vld [vmem:[%s3978_s17 + $0x128] sm:$0xff] (%p3643_p6)  ;;  %v2990_v58 = vld [vmem:[%s3978_s17 + $0x130] sm:$0xff] (%p3643_p6) }
 0x210   : > { %2965 = vst [vmem:[%s6218_s22 + $0x248] sm:$0xff] (%p3643_p6), %v2964_v31  ;;  %2967 = vst [vmem:[%s6218_s22 + $0x250] sm:$0xff] (%p3643_p6), %v2966_v62  ;;  %v2992_v10 = vld [vmem:[%s3978_s17 + $0x138] sm:$0xff] (%p3643_p6)  ;;  %v2994_v43 = vld [vmem:[%s3978_s17 + $0x140] sm:$0xff] (%p3643_p6) }
 0x211   : > { %3489 = vst [vmem:[%s3978_s17 + $0x298] sm:$0x3f] %v2882_v48  ;;  %2969 = vst [vmem:[%s6218_s22 + $0x288] sm:$0xff] (%p3643_p6), %v2968_v41  ;;  %v2996_v16 = vld [vmem:[%s3978_s17 + $0x148] sm:$0xff] (%p3643_p6)  ;;  %v2998_v17 = vld [vmem:[%s3978_s17 + $0x150] sm:$0xff] (%p3643_p6) }
 0x212   : > { %2971 = vst [vmem:[%s6218_s22 + $0x290] sm:$0xff] %v2970_v0  ;;  %2973 = vst [vmem:[%s6218_s22 + $0x298] sm:$0xff] %v2972_v23  ;;  %v3000_v12 = vld [vmem:[%s3978_s17 + $0x158] sm:$0xff]  ;;  %v3002_v20 = vld [vmem:[%s3978_s17 + $0x160] sm:$0xff] }
 0x213   : > { %2975 = vst [vmem:[%s6218_s22 + $0x2d0] sm:$0xff] %v2974_v29  ;;  %2977 = vst [vmem:[%s6218_s22 + $0x2d8] sm:$0xff] %v2976_v56  ;;  %v3004_v45 = vld [vmem:[%s3978_s17 + $0x168] sm:$0xff]  ;;  %v3006_v6 = vld [vmem:[%s3978_s17 + $0x170] sm:$0xff] }
 0x214   : > { %2979 = vst [vmem:[%s6218_s22 + $0x2e0] sm:$0xff] %v2978_v19  ;;  %2981 = vst [vmem:[%s6218_s22 + $0x318] sm:$0xff] %v2980_v3  ;;  %v3008_v36 = vld [vmem:[%s3978_s17 + $0x178] sm:$0xff]  ;;  %v3010_v50 = vld [vmem:[%s3978_s17 + $0x180] sm:$0xff] }
 0x215   : > { %2983 = vst [vmem:[%s6218_s22 + $0x320] sm:$0xff] %v2982_v32  ;;  %2985 = vst [vmem:[%s6218_s22 + $0x328] sm:$0xff] %v2984_v9  ;;  %v3012_v11 = vld [vmem:[%s3978_s17 + $0x188] sm:$0xff]  ;;  %v3014_v33 = vld [vmem:[%s3978_s17 + $0x190] sm:$0xff] }
 0x216   : > { %2987 = vst [vmem:[%s6218_s22 + $0x360] sm:$0xff] %v2986_v35  ;;  %2989 = vst [vmem:[%s6218_s22 + $0x368] sm:$0xff] %v2988_v5  ;;  %v3016_v47 = vld [vmem:[%s3978_s17 + $0x198] sm:$0xff]  ;;  %v3018_v7 = vld [vmem:[%s3978_s17 + $0x1a0] sm:$0xff] }
 0x217   : > { %2991 = vst [vmem:[%s6218_s22 + $0x370] sm:$0xff] %v2990_v58  ;;  %2993 = vst [vmem:[%s6218_s22 + $0x3a8] sm:$0xff] %v2992_v10  ;;  %v3020_v51 = vld [vmem:[%s3978_s17 + $0x1a8] sm:$0xff]  ;;  %v3022_v52 = vld [vmem:[%s3978_s17 + $0x1b0] sm:$0xff] }
 0x218   : > { %2995 = vst [vmem:[%s6218_s22 + $0x3b0] sm:$0xff] %v2994_v43  ;;  %2997 = vst [vmem:[%s6218_s22 + $0x3b8] sm:$0xff] %v2996_v16  ;;  %v3024_v49 = vld [vmem:[%s3978_s17 + $0x1b8] sm:$0xff]  ;;  %v3026_v18 = vld [vmem:[%s3978_s17 + $0x1c0] sm:$0xff] }
 0x219   : > { %2999 = vst [vmem:[%s6218_s22 + $0x3f0] sm:$0xff] %v2998_v17  ;;  %3001 = vst [vmem:[%s6218_s22 + $0x3f8] sm:$0xff] %v3000_v12  ;;  %v3028_v34 = vld [vmem:[%s3978_s17 + $0x1c8] sm:$0xff]  ;;  %v3030_v37 = vld [vmem:[%s3978_s17 + $0x1d0] sm:$0xff] }
 0x21a   : > { %3003 = vst [vmem:[%s6218_s22 + $0x400] sm:$0xff] %v3002_v20  ;;  %3005 = vst [vmem:[%s6218_s22 + $0x438] sm:$0xff] %v3004_v45  ;;  %v3032_v30 = vld [vmem:[%s3978_s17 + $0x1d8] sm:$0xff]  ;;  %v3034_v14 = vld [vmem:[%s3978_s17 + $0x1e0] sm:$0xff] }
 0x21b   : > { %3007 = vst [vmem:[%s6218_s22 + $0x440] sm:$0xff] %v3006_v6  ;;  %3009 = vst [vmem:[%s6218_s22 + $0x448] sm:$0xff] %v3008_v36  ;;  %v3036_v26 = vld [vmem:[%s3978_s17 + $0x1e8] sm:$0xff]  ;;  %v3038_v59 = vld [vmem:[%s3978_s17 + $0x1f0] sm:$0xff] }
 0x21c   : > { %3011 = vst [vmem:[%s6218_s22 + $0x480] sm:$0xff] %v3010_v50  ;;  %3013 = vst [vmem:[%s6218_s22 + $0x488] sm:$0xff] %v3012_v11  ;;  %v3040_v48 = vld [vmem:[%s3978_s17 + $0x1f8] sm:$0xff]  ;;  %v3042_v8 = vld [vmem:[%s3978_s17 + $0x200] sm:$0xff] }
 0x21d   : > { %3015 = vst [vmem:[%s6218_s22 + $0x490] sm:$0xff] %v3014_v33  ;;  %3017 = vst [vmem:[%s6218_s22 + $0x4c8] sm:$0xff] %v3016_v47  ;;  %v3044_v22 = vld [vmem:[%s3978_s17 + $0x208] sm:$0xff]  ;;  %v3046_v42 = vld [vmem:[%s3978_s17 + $0x210] sm:$0xff] }
 0x21e   : > { %3019 = vst [vmem:[%s6218_s22 + $0x4d0] sm:$0xff] %v3018_v7  ;;  %3021 = vst [vmem:[%s6218_s22 + $0x4d8] sm:$0xff] %v3020_v51  ;;  %v3048_v24 = vld [vmem:[%s3978_s17 + $0x218] sm:$0xff]  ;;  %v3050_v40 = vld [vmem:[%s3978_s17 + $0x220] sm:$0xff] }
 0x21f   : > { %3023 = vst [vmem:[%s6218_s22 + $0x510] sm:$0xff] %v3022_v52  ;;  %3025 = vst [vmem:[%s6218_s22 + $0x518] sm:$0xff] %v3024_v49  ;;  %v3052_v4 = vld [vmem:[%s3978_s17 + $0x228] sm:$0xff]  ;;  %v3054_v54 = vld [vmem:[%s3978_s17 + $0x230] sm:$0xff] }
 0x220   : > { %3027 = vst [vmem:[%s6218_s22 + $0x520] sm:$0xff] %v3026_v18  ;;  %3029 = vst [vmem:[%s6218_s22 + $0x558] sm:$0xff] %v3028_v34  ;;  %v3056_v61 = vld [vmem:[%s3978_s17 + $0x238] sm:$0xff]  ;;  %v3058_v38 = vld [vmem:[%s3978_s17 + $0x240] sm:$0xff] }
 0x221   : > { %3031 = vst [vmem:[%s6218_s22 + $0x560] sm:$0xff] %v3030_v37  ;;  %3033 = vst [vmem:[%s6218_s22 + $0x568] sm:$0xff] %v3032_v30  ;;  %v3060_v57 = vld [vmem:[%s3978_s17 + $0x248] sm:$0xff]  ;;  %v3062_v27 = vld [vmem:[%s3978_s17 + $0x250] sm:$0xff] }
 0x222   : > { %3035 = vst [vmem:[%s6218_s22 + $0x5a0] sm:$0xff] %v3034_v14  ;;  %3037 = vst [vmem:[%s6218_s22 + $0x5a8] sm:$0xff] %v3036_v26  ;;  %v3064_v39 = vld [vmem:[%s3978_s17 + $0x258] sm:$0xff]  ;;  %v3066_v53 = vld [vmem:[%s3978_s17 + $0x260] sm:$0xff] }
 0x223   : > { %3039 = vst [vmem:[%s6218_s22 + $0x5b0] sm:$0xff] %v3038_v59  ;;  %3041 = vst [vmem:[%s6218_s22 + $0x5e8] sm:$0xff] %v3040_v48  ;;  %v3068_v63 = vld [vmem:[%s3978_s17 + $0x268] sm:$0xff]  ;;  %v3070_v1 = vld [vmem:[%s3978_s17 + $0x270] sm:$0xff] }
 0x224   : > { %3043 = vst [vmem:[%s6218_s22 + $0x5f0] sm:$0xff] %v3042_v8  ;;  %3045 = vst [vmem:[%s6218_s22 + $0x5f8] sm:$0xff] %v3044_v22  ;;  %v3072_v15 = vld [vmem:[%s3978_s17 + $0x278] sm:$0xff]  ;;  %v3074_v28 = vld [vmem:[%s3978_s17 + $0x280] sm:$0xff] }
 0x225   : > { %3047 = vst [vmem:[%s6218_s22 + $0x630] sm:$0xff] %v3046_v42  ;;  %3049 = vst [vmem:[%s6218_s22 + $0x638] sm:$0xff] %v3048_v24  ;;  %v3076_v55 = vld [vmem:[%s3978_s17 + $0x288] sm:$0xff]  ;;  %v3078_v13 = vld [vmem:[%s3978_s17 + $0x290] sm:$0xff] }
 0x226   : > { %3051 = vst [vmem:[%s6218_s22 + $0x640] sm:$0xff] %v3050_v40  ;;  %3053 = vst [vmem:[%s6218_s22 + $0x678] sm:$0xff] %v3052_v4  ;;  %v3080_v21 = vld [vmem:[%s3978_s17 + $0x298] sm:$0xff] }
 0x227   : > { %3055 = vst [vmem:[%s6218_s22 + $0x680] sm:$0xff] %v3054_v54  ;;  %3057 = vst [vmem:[%s6218_s22 + $0x688] sm:$0xff] %v3056_v61 }
 0x228   : > { %3059 = vst [vmem:[%s6218_s22 + $0x6c0] sm:$0xff] %v3058_v38  ;;  %3061 = vst [vmem:[%s6218_s22 + $0x6c8] sm:$0xff] %v3060_v57 }
 0x229   : > { %3063 = vst [vmem:[%s6218_s22 + $0x6d0] sm:$0xff] %v3062_v27  ;;  %3065 = vst [vmem:[%s6218_s22 + $0x708] sm:$0xff] %v3064_v39 }
 0x22a   : > { %3067 = vst [vmem:[%s6218_s22 + $0x710] sm:$0xff] %v3066_v53  ;;  %3069 = vst [vmem:[%s6218_s22 + $0x718] sm:$0xff] %v3068_v63 }
 0x22b   : > { %3071 = vst [vmem:[%s6218_s22 + $0x750] sm:$0xff] %v3070_v1  ;;  %3073 = vst [vmem:[%s6218_s22 + $0x758] sm:$0xff] %v3072_v15 }
 0x22c   : > { %3075 = vst [vmem:[%s6218_s22 + $0x760] sm:$0xff] %v3074_v28  ;;  %3077 = vst [vmem:[%s6218_s22 + $0x798] sm:$0xff] %v3076_v55 }
 0x22d   : > { %3079 = vst [vmem:[%s6218_s22 + $0x7a0] sm:$0xff] %v3078_v13  ;;  %3081 = vst [vmem:[%s6218_s22 + $0x7a8] sm:$0xff] %v3080_v21 }
 0x22e PF: > { %s12_s13 = sadd.s32 1, %s3587_s13   ;;  %s6573_s9 = smov %s3575_s10 }
 0x22f   : > { %p9_p11 = scmp.ge.s32.totalorder %s12_s13, 5   ;;  %s6574_s10 = smov %s3648_s20 }
 0x230   : > { %s6575_s11 = smov %s3583_s12  ;;  %s6576_s12 = smov %s6578_s14 }
 0x231   :  { %11 = sbr.rel (!%p9_p11) target bundleno = 3 (0x3), region = 166 }

</bundles_post_ra>
